<compile_context>
chip_gen: v5e
topology: v5e:2x2
jax: 0.10.0
libtpu: 0.0.40
codegen_flags: <defaults>
</compile_context>

<pallas_src>
import jax
import jax.numpy as jnp
from jax.experimental import pallas as pl
from jax.experimental.pallas import tpu as pltpu

_MM_DTYPE = jnp.bfloat16      # matmul operand dtype (f32 accumulation in-kernel)
OUT_PAD = 128                 # lane-dense packed head-output width
_N_BUTTONS = 5
_MAIN_N, _C_N, _TRIG_N = 17, 17, 5
_MAIN_OFF = _N_BUTTONS
_C_OFF = _MAIN_OFF + _MAIN_N
_TRIG_OFF = _C_OFF + _C_N
_HEAD_KEYS = ("w1a", "w1b", "b1", "w2", "b2", "w3", "b3")


# -----------------------------------------------------------------------------
# Fused forward kernel
# -----------------------------------------------------------------------------
def _fused_forward_kernel(
    x_ref,
    embed_w_ref, embed_b_ref, enc_w_ref, enc_b_ref,
    w_ih_ref, w_hh_ref, b_lstm_ref, lin_w_ref, lin_b_ref, h0_ref, c0_ref,
    bw1a_ref, bw1b_ref, bb1_ref, bw2_ref, bb2_ref, bw3_ref, bb3_ref,
    mw1a_ref, mw1b_ref, mb1_ref, mw2_ref, mb2_ref, mw3_ref, mb3_ref,
    cw1a_ref, cw1b_ref, cb1_ref, cw2_ref, cb2_ref, cw3_ref, cb3_ref,
    tw1a_ref, tw1b_ref, tb1_ref, tw2_ref, tb2_ref, tw3_ref, tb3_ref,
    out_ref, state_ref,
    hseq_sc,
):
    M = x_ref.shape[0]
    L, H, _g4 = w_ih_ref.shape            # _g4 == 4*H
    B = h0_ref.shape[1]
    T = M // B
    out_pad = out_ref.shape[1]

    def mm(a, w):
        # MXU matmul: cast activation to the (bf16) weight dtype, accumulate f32.
        return jnp.dot(a.astype(w.dtype), w, preferred_element_type=jnp.float32)

    # ---- input embed + encoder (plain nn.Linear, no activation) -------------
    x = mm(x_ref[...], embed_w_ref[...]) + embed_b_ref[...]
    x = mm(x, enc_w_ref[...]) + enc_b_ref[...]

    # ---- deep residual LSTM stack --------------------------------------------
    for l in range(L):
        w_hh = w_hh_ref[l]                                    # (H, 4H)
        xproj = mm(x, w_ih_ref[l]) + b_lstm_ref[l]            # (M, 4H), bias=b_ih+b_hh
        h = h0_ref[l]                                         # (B, H) f32
        c = c0_ref[l]
        for t in range(T):                                    # static unroll (T small)
            gates = xproj[t * B:(t + 1) * B, :] + mm(h, w_hh)  # (B, 4H) f32
            sg = jax.nn.sigmoid(gates)                        # full-width EUP ops,
            tg = jnp.tanh(gates)                              # slice afterwards
            i_g = sg[:, 0 * H:1 * H]
            f_g = sg[:, 1 * H:2 * H]
            g_g = tg[:, 2 * H:3 * H]
            o_g = sg[:, 3 * H:4 * H]
            c = f_g * c + i_g * g_g
            h = o_g * jnp.tanh(c)
            hseq_sc[t * B:(t + 1) * B, :] = h                 # VMEM-only h-sequence
        state_ref[2 * l] = h
        state_ref[2 * l + 1] = c
        # residual + linear + relu on the whole sequence at once
        x = jnp.maximum(x + mm(hseq_sc[...], lin_w_ref[l]) + lin_b_ref[l], 0.0)

    # ---- autoregressive action heads (chained embedding) ---------------------
    col_iota = jax.lax.broadcasted_iota(jnp.int32, (1, out_pad), 1)
    out_acc = jnp.zeros((M, out_pad), jnp.float32)
    embed = jnp.zeros((M, H), jnp.float32)       # prev_embedding=None -> zeros

    def decode(prev, w1a, w1b, b1, w2, b2):
        h1 = jnp.maximum(mm(x, w1a) + mm(prev, w1b) + b1, 0.0)
        return jnp.maximum(mm(h1, w2) + b2, 0.0)

    # 5 button heads: sigmoid, output column k (w3/b3 pre-padded to out_pad lanes)
    for k in range(bw1a_ref.shape[0]):
        embed = decode(embed, bw1a_ref[k], bw1b_ref[k], bb1_ref[k],
                       bw2_ref[k], bb2_ref[k])
        y = mm(embed, bw3_ref[k]) + bb3_ref[k]                # (M, out_pad)
        out_acc = out_acc + jnp.where(col_iota == k, jax.nn.sigmoid(y), 0.0)

    # main stick / c stick / trigger heads: no activation, zero-padded w3/b3
    for (w1a, w1b, b1, w2, b2, w3, b3) in (
        (mw1a_ref, mw1b_ref, mb1_ref, mw2_ref, mb2_ref, mw3_ref, mb3_ref),
        (cw1a_ref, cw1b_ref, cb1_ref, cw2_ref, cb2_ref, cw3_ref, cb3_ref),
        (tw1a_ref, tw1b_ref, tb1_ref, tw2_ref, tb2_ref, tw3_ref, tb3_ref),
    ):
        embed = decode(embed, w1a[...], w1b[...], b1[...], w2[...], b2[...])
        out_acc = out_acc + mm(embed, w3[...]) + b3[...]

    out_ref[...] = out_acc                                     # single lane-dense store


def _full_spec(shape):
    return pl.BlockSpec(shape, lambda i: (0,) * len(shape))


# -----------------------------------------------------------------------------
# Parameter init (deterministic, PyTorch-default-like uniform bounds)
# -----------------------------------------------------------------------------
def _uniform(key, shape, bound):
    return jax.random.uniform(key, shape, jnp.float32, -bound, bound)


def _init_linear(key, fan_in, fan_out):
    k1, k2 = jax.random.split(key)
    bound = 1.0 / float(fan_in) ** 0.5
    return _uniform(k1, (fan_in, fan_out), bound), _uniform(k2, (1, fan_out), bound)


def _init_head(key, H, out_size):
    k1, k2, k3 = jax.random.split(key, 3)
    w1, b1 = _init_linear(k1, 2 * H, 2 * H)     # decode layer 1 (on concat)
    w2, b2 = _init_linear(k2, 2 * H, H)         # decode layer 2
    w3, b3 = _init_linear(k3, H, out_size)      # mapping
    return {"w1a": w1[:H], "w1b": w1[H:], "b1": b1,
            "w2": w2, "b2": b2, "w3": w3, "b3": b3}


def _pad_mapping(head, col_off):
    """Zero-pad mapping (w3, b3) to OUT_PAD output lanes at column col_off."""
    w3, b3 = head["w3"], head["b3"]
    o = w3.shape[1]
    head["w3"] = jnp.zeros((w3.shape[0], OUT_PAD), w3.dtype).at[:, col_off:col_off + o].set(w3)
    head["b3"] = jnp.zeros((1, OUT_PAD), b3.dtype).at[:, col_off:col_off + o].set(b3)
    return head


def _cast_head(head):
    # Only matmul operands go bf16; biases stay f32 (added post f32-accumulation).
    return {k: (v.astype(_MM_DTYPE) if k.startswith("w") else v)
            for k, v in head.items()}


def init_params(key, input_size, hidden_size, num_layers):
    H = hidden_size
    E = 32   # input embed size, hard-coded in the PyTorch module
    keys = jax.random.split(key, 3 + num_layers)
    p = {}
    w, b = _init_linear(keys[0], input_size, E)
    p["embed_w"], p["embed_b"] = w.astype(_MM_DTYPE), b
    w, b = _init_linear(keys[1], E, H)
    p["enc_w"], p["enc_b"] = w.astype(_MM_DTYPE), b

    bound = 1.0 / float(H) ** 0.5
    w_ih, w_hh, b_lstm, lin_w, lin_b = [], [], [], [], []
    for l in range(num_layers):
        kk = jax.random.split(keys[2 + l], 5)
        w_ih.append(_uniform(kk[0], (H, 4 * H), bound))
        w_hh.append(_uniform(kk[1], (H, 4 * H), bound))
        # fused (b_ih + b_hh) precomputed once at setup, not per forward
        b_lstm.append(_uniform(kk[2], (1, 4 * H), bound)
                      + _uniform(kk[3], (1, 4 * H), bound))
        lw, lb = _init_linear(kk[4], H, H)
        lin_w.append(lw)
        lin_b.append(lb)
    p["w_ih"] = jnp.stack(w_ih).astype(_MM_DTYPE)      # (L, H, 4H)
    p["w_hh"] = jnp.stack(w_hh).astype(_MM_DTYPE)      # (L, H, 4H)
    p["b_lstm"] = jnp.stack(b_lstm)                    # (L, 1, 4H) f32
    p["lin_w"] = jnp.stack(lin_w).astype(_MM_DTYPE)    # (L, H, H)
    p["lin_b"] = jnp.stack(lin_b)                      # (L, 1, H) f32

    hk = jax.random.split(keys[2 + num_layers], 8)
    btn_heads = [_pad_mapping(_init_head(hk[i], H, 1), i) for i in range(_N_BUTTONS)]
    btn = {k: jnp.stack([h[k] for h in btn_heads]) for k in _HEAD_KEYS}
    p["btn"] = _cast_head(btn)
    p["main"] = _cast_head(_pad_mapping(_init_head(hk[5], H, _MAIN_N), _MAIN_OFF))
    p["cstick"] = _cast_head(_pad_mapping(_init_head(hk[6], H, _C_N), _C_OFF))
    p["trig"] = _cast_head(_pad_mapping(_init_head(hk[7], H, _TRIG_N), _TRIG_OFF))
    return p


# -----------------------------------------------------------------------------
# Network forward: one fused pallas_call, plain-JAX unpack of the packed output
# -----------------------------------------------------------------------------
def forward(params, inputs, prev_state):
    T, B, I = inputs.shape
    H = params["enc_w"].shape[1]
    L = params["w_ih"].shape[0]
    M = T * B

    h0 = jnp.concatenate([h for (h, _) in prev_state], axis=0)   # (L, B, H)
    c0 = jnp.concatenate([c for (_, c) in prev_state], axis=0)   # (L, B, H)

    operands = (
        inputs.reshape(M, I),
        params["embed_w"], params["embed_b"], params["enc_w"], params["enc_b"],
        params["w_ih"], params["w_hh"], params["b_lstm"],
        params["lin_w"], params["lin_b"], h0, c0,
        *(params["btn"][k] for k in _HEAD_KEYS),
        *(params["main"][k] for k in _HEAD_KEYS),
        *(params["cstick"][k] for k in _HEAD_KEYS),
        *(params["trig"][k] for k in _HEAD_KEYS),
    )

    out, states = pl.pallas_call(
        _fused_forward_kernel,
        out_shape=(
            jax.ShapeDtypeStruct((M, OUT_PAD), jnp.float32),
            jax.ShapeDtypeStruct((2 * L, B, H), jnp.float32),
        ),
        grid=(1,),
        in_specs=[_full_spec(o.shape) for o in operands],
        out_specs=(
            _full_spec((M, OUT_PAD)),
            _full_spec((2 * L, B, H)),
        ),
        scratch_shapes=[pltpu.VMEM((M, H), jnp.float32)],
        compiler_params=pltpu.CompilerParams(
            dimension_semantics=("arbitrary",)),
    )(*operands)

    buttons = [out[:, k:k + 1].reshape(T, B, 1) for k in range(_N_BUTTONS)]
    main_out = out[:, _MAIN_OFF:_MAIN_OFF + _MAIN_N].reshape(T, B, _MAIN_N)
    c_out = out[:, _C_OFF:_C_OFF + _C_N].reshape(T, B, _C_N)
    trig_out = out[:, _TRIG_OFF:_TRIG_OFF + _TRIG_N].reshape(T, B, _TRIG_N)
    new_states = [(states[2 * l][None], states[2 * l + 1][None]) for l in range(L)]
    return buttons, main_out, c_out, trig_out, new_states


# -----------------------------------------------------------------------------
if __name__ == "__main__":
    T, B = 8, 4
    hidden_size, input_size, output_size, num_layers = 32, 16, 7, 2

    key = jax.random.PRNGKey(0)
    kp, kx = jax.random.split(key)
    params = init_params(kp, input_size, hidden_size, num_layers)

    inputs = jax.random.normal(kx, (T, B, input_size), jnp.float32)
    prev_state = [(jnp.zeros((1, B, hidden_size), jnp.float32),
                   jnp.zeros((1, B, hidden_size), jnp.float32))
                  for _ in range(num_layers)]

    fwd = jax.jit(forward)
    buttons, main_out, c_out, trig_out, state = fwd(params, inputs, prev_state)
    jax.block_until_ready((buttons, main_out, c_out, trig_out, state))

    assert len(buttons) == 5 and buttons[0].shape == (T, B, 1)
    assert main_out.shape == (T, B, 17) and c_out.shape == (T, B, 17)
    assert trig_out.shape == (T, B, 5)
    assert len(state) == num_layers and state[0][0].shape == (1, B, hidden_size)
    assert all(bool(jnp.all(jnp.isfinite(x))) for x in (main_out, c_out, trig_out))
    print("KERNEL_OK")
</pallas_src>

<mosaic_0001>
module attributes {stable_mosaic.version = 11 : i64} {
  func.func @_fused_forward_kernel(%arg0: i32, %arg1: memref<32x16xf32, #tpu.memory_space<vmem>>, %arg2: memref<16x32xbf16, #tpu.memory_space<vmem>>, %arg3: memref<1x32xf32, #tpu.memory_space<vmem>>, %arg4: memref<32x32xbf16, #tpu.memory_space<vmem>>, %arg5: memref<1x32xf32, #tpu.memory_space<vmem>>, %arg6: memref<2x32x128xbf16, #tpu.memory_space<vmem>>, %arg7: memref<2x32x128xbf16, #tpu.memory_space<vmem>>, %arg8: memref<2x1x128xf32, #tpu.memory_space<vmem>>, %arg9: memref<2x32x32xbf16, #tpu.memory_space<vmem>>, %arg10: memref<2x1x32xf32, #tpu.memory_space<vmem>>, %arg11: memref<2x4x32xf32, #tpu.memory_space<vmem>>, %arg12: memref<2x4x32xf32, #tpu.memory_space<vmem>>, %arg13: memref<5x32x64xbf16, #tpu.memory_space<vmem>>, %arg14: memref<5x32x64xbf16, #tpu.memory_space<vmem>>, %arg15: memref<5x1x64xf32, #tpu.memory_space<vmem>>, %arg16: memref<5x64x32xbf16, #tpu.memory_space<vmem>>, %arg17: memref<5x1x32xf32, #tpu.memory_space<vmem>>, %arg18: memref<5x32x128xbf16, #tpu.memory_space<vmem>>, %arg19: memref<5x1x128xf32, #tpu.memory_space<vmem>>, %arg20: memref<32x64xbf16, #tpu.memory_space<vmem>>, %arg21: memref<32x64xbf16, #tpu.memory_space<vmem>>, %arg22: memref<1x64xf32, #tpu.memory_space<vmem>>, %arg23: memref<64x32xbf16, #tpu.memory_space<vmem>>, %arg24: memref<1x32xf32, #tpu.memory_space<vmem>>, %arg25: memref<32x128xbf16, #tpu.memory_space<vmem>>, %arg26: memref<1x128xf32, #tpu.memory_space<vmem>>, %arg27: memref<32x64xbf16, #tpu.memory_space<vmem>>, %arg28: memref<32x64xbf16, #tpu.memory_space<vmem>>, %arg29: memref<1x64xf32, #tpu.memory_space<vmem>>, %arg30: memref<64x32xbf16, #tpu.memory_space<vmem>>, %arg31: memref<1x32xf32, #tpu.memory_space<vmem>>, %arg32: memref<32x128xbf16, #tpu.memory_space<vmem>>, %arg33: memref<1x128xf32, #tpu.memory_space<vmem>>, %arg34: memref<32x64xbf16, #tpu.memory_space<vmem>>, %arg35: memref<32x64xbf16, #tpu.memory_space<vmem>>, %arg36: memref<1x64xf32, #tpu.memory_space<vmem>>, %arg37: memref<64x32xbf16, #tpu.memory_space<vmem>>, %arg38: memref<1x32xf32, #tpu.memory_space<vmem>>, %arg39: memref<32x128xbf16, #tpu.memory_space<vmem>>, %arg40: memref<1x128xf32, #tpu.memory_space<vmem>>, %arg41: memref<32x128xf32, #tpu.memory_space<vmem>>, %arg42: memref<4x4x32xf32, #tpu.memory_space<vmem>>, %arg43: memref<32x32xf32, #tpu.memory_space<vmem>>) attributes {dimension_semantics = [#tpu.dimension_semantics<arbitrary>], iteration_bounds = array<i64: 1>, scalar_prefetch = 0 : i64, scratch_operands = 1 : i64, tpu.core_type = #tpu.core_type<tc>, window_params = [{pipeline_mode = #tpu.pipeline_mode<synchronous>, transform_indices = @transform_0, window_bounds = array<i64: 32, 16>}, {pipeline_mode = #tpu.pipeline_mode<synchronous>, transform_indices = @transform_1, window_bounds = array<i64: 16, 32>}, {pipeline_mode = #tpu.pipeline_mode<synchronous>, transform_indices = @transform_2, window_bounds = array<i64: 1, 32>}, {pipeline_mode = #tpu.pipeline_mode<synchronous>, transform_indices = @transform_3, window_bounds = array<i64: 32, 32>}, {pipeline_mode = #tpu.pipeline_mode<synchronous>, transform_indices = @transform_4, window_bounds = array<i64: 1, 32>}, {pipeline_mode = #tpu.pipeline_mode<synchronous>, transform_indices = @transform_5, window_bounds = array<i64: 2, 32, 128>}, {pipeline_mode = #tpu.pipeline_mode<synchronous>, transform_indices = @transform_6, window_bounds = array<i64: 2, 32, 128>}, {pipeline_mode = #tpu.pipeline_mode<synchronous>, transform_indices = @transform_7, window_bounds = array<i64: 2, 1, 128>}, {pipeline_mode = #tpu.pipeline_mode<synchronous>, transform_indices = @transform_8, window_bounds = array<i64: 2, 32, 32>}, {pipeline_mode = #tpu.pipeline_mode<synchronous>, transform_indices = @transform_9, window_bounds = array<i64: 2, 1, 32>}, {pipeline_mode = #tpu.pipeline_mode<synchronous>, transform_indices = @transform_10, window_bounds = array<i64: 2, 4, 32>}, {pipeline_mode = #tpu.pipeline_mode<synchronous>, transform_indices = @transform_11, window_bounds = array<i64: 2, 4, 32>}, {pipeline_mode = #tpu.pipeline_mode<synchronous>, transform_indices = @transform_12, window_bounds = array<i64: 5, 32, 64>}, {pipeline_mode = #tpu.pipeline_mode<synchronous>, transform_indices = @transform_13, window_bounds = array<i64: 5, 32, 64>}, {pipeline_mode = #tpu.pipeline_mode<synchronous>, transform_indices = @transform_14, window_bounds = array<i64: 5, 1, 64>}, {pipeline_mode = #tpu.pipeline_mode<synchronous>, transform_indices = @transform_15, window_bounds = array<i64: 5, 64, 32>}, {pipeline_mode = #tpu.pipeline_mode<synchronous>, transform_indices = @transform_16, window_bounds = array<i64: 5, 1, 32>}, {pipeline_mode = #tpu.pipeline_mode<synchronous>, transform_indices = @transform_17, window_bounds = array<i64: 5, 32, 128>}, {pipeline_mode = #tpu.pipeline_mode<synchronous>, transform_indices = @transform_18, window_bounds = array<i64: 5, 1, 128>}, {pipeline_mode = #tpu.pipeline_mode<synchronous>, transform_indices = @transform_19, window_bounds = array<i64: 32, 64>}, {pipeline_mode = #tpu.pipeline_mode<synchronous>, transform_indices = @transform_20, window_bounds = array<i64: 32, 64>}, {pipeline_mode = #tpu.pipeline_mode<synchronous>, transform_indices = @transform_21, window_bounds = array<i64: 1, 64>}, {pipeline_mode = #tpu.pipeline_mode<synchronous>, transform_indices = @transform_22, window_bounds = array<i64: 64, 32>}, {pipeline_mode = #tpu.pipeline_mode<synchronous>, transform_indices = @transform_23, window_bounds = array<i64: 1, 32>}, {pipeline_mode = #tpu.pipeline_mode<synchronous>, transform_indices = @transform_24, window_bounds = array<i64: 32, 128>}, {pipeline_mode = #tpu.pipeline_mode<synchronous>, transform_indices = @transform_25, window_bounds = array<i64: 1, 128>}, {pipeline_mode = #tpu.pipeline_mode<synchronous>, transform_indices = @transform_26, window_bounds = array<i64: 32, 64>}, {pipeline_mode = #tpu.pipeline_mode<synchronous>, transform_indices = @transform_27, window_bounds = array<i64: 32, 64>}, {pipeline_mode = #tpu.pipeline_mode<synchronous>, transform_indices = @transform_28, window_bounds = array<i64: 1, 64>}, {pipeline_mode = #tpu.pipeline_mode<synchronous>, transform_indices = @transform_29, window_bounds = array<i64: 64, 32>}, {pipeline_mode = #tpu.pipeline_mode<synchronous>, transform_indices = @transform_30, window_bounds = array<i64: 1, 32>}, {pipeline_mode = #tpu.pipeline_mode<synchronous>, transform_indices = @transform_31, window_bounds = array<i64: 32, 128>}, {pipeline_mode = #tpu.pipeline_mode<synchronous>, transform_indices = @transform_32, window_bounds = array<i64: 1, 128>}, {pipeline_mode = #tpu.pipeline_mode<synchronous>, transform_indices = @transform_33, window_bounds = array<i64: 32, 64>}, {pipeline_mode = #tpu.pipeline_mode<synchronous>, transform_indices = @transform_34, window_bounds = array<i64: 32, 64>}, {pipeline_mode = #tpu.pipeline_mode<synchronous>, transform_indices = @transform_35, window_bounds = array<i64: 1, 64>}, {pipeline_mode = #tpu.pipeline_mode<synchronous>, transform_indices = @transform_36, window_bounds = array<i64: 64, 32>}, {pipeline_mode = #tpu.pipeline_mode<synchronous>, transform_indices = @transform_37, window_bounds = array<i64: 1, 32>}, {pipeline_mode = #tpu.pipeline_mode<synchronous>, transform_indices = @transform_38, window_bounds = array<i64: 32, 128>}, {pipeline_mode = #tpu.pipeline_mode<synchronous>, transform_indices = @transform_39, window_bounds = array<i64: 1, 128>}, {pipeline_mode = #tpu.pipeline_mode<synchronous>, transform_indices = @transform_40, window_bounds = array<i64: 32, 128>}, {pipeline_mode = #tpu.pipeline_mode<synchronous>, transform_indices = @transform_41, window_bounds = array<i64: 4, 4, 32>}]} {
    %c0 = arith.constant 0 : index
    %c0_0 = arith.constant 0 : index
    %0 = vector.load %arg1[%c0, %c0_0] : memref<32x16xf32, #tpu.memory_space<vmem>>, vector<32x16xf32>
    %c0_1 = arith.constant 0 : index
    %c0_2 = arith.constant 0 : index
    %1 = vector.load %arg2[%c0_1, %c0_2] : memref<16x32xbf16, #tpu.memory_space<vmem>>, vector<16x32xbf16>
    %2 = arith.truncf %0 : vector<32x16xf32> to vector<32x16xbf16>
    %cst = arith.constant dense<0.000000e+00> : vector<32x32xf32>
    %3 = tpu.matmul %2, %1, %cst {dimension_numbers = #tpu.dot_dimension_numbers<[1], [0], [0], [1], [0, 0, 1, 1], [], []>} : vector<32x16xbf16>, vector<16x32xbf16>, vector<32x32xf32> -> vector<32x32xf32>
    %c0_3 = arith.constant 0 : index
    %c0_4 = arith.constant 0 : index
    %4 = vector.load %arg3[%c0_3, %c0_4] : memref<1x32xf32, #tpu.memory_space<vmem>>, vector<1x32xf32>
    %5 = vector.broadcast %4 : vector<1x32xf32> to vector<32x32xf32>
    %6 = arith.addf %3, %5 : vector<32x32xf32>
    %c0_5 = arith.constant 0 : index
    %c0_6 = arith.constant 0 : index
    %7 = vector.load %arg4[%c0_5, %c0_6] : memref<32x32xbf16, #tpu.memory_space<vmem>>, vector<32x32xbf16>
    %8 = arith.truncf %6 : vector<32x32xf32> to vector<32x32xbf16>
    %cst_7 = arith.constant dense<0.000000e+00> : vector<32x32xf32>
    %9 = tpu.matmul %8, %7, %cst_7 {dimension_numbers = #tpu.dot_dimension_numbers<[1], [0], [0], [1], [0, 0, 1, 1], [], []>} : vector<32x32xbf16>, vector<32x32xbf16>, vector<32x32xf32> -> vector<32x32xf32>
    %c0_8 = arith.constant 0 : index
    %c0_9 = arith.constant 0 : index
    %10 = vector.load %arg5[%c0_8, %c0_9] : memref<1x32xf32, #tpu.memory_space<vmem>>, vector<1x32xf32>
    %11 = vector.broadcast %10 : vector<1x32xf32> to vector<32x32xf32>
    %12 = arith.addf %9, %11 : vector<32x32xf32>
    %c0_10 = arith.constant 0 : index
    %c0_11 = arith.constant 0 : index
    %c0_12 = arith.constant 0 : index
    %13 = vector.load %arg7[%c0_10, %c0_11, %c0_12] : memref<2x32x128xbf16, #tpu.memory_space<vmem>>, vector<1x32x128xbf16>
    %14 = vector.shape_cast %13 : vector<1x32x128xbf16> to vector<32x128xbf16>
    %c0_13 = arith.constant 0 : index
    %c0_14 = arith.constant 0 : index
    %c0_15 = arith.constant 0 : index
    %15 = vector.load %arg6[%c0_13, %c0_14, %c0_15] : memref<2x32x128xbf16, #tpu.memory_space<vmem>>, vector<1x32x128xbf16>
    %16 = vector.shape_cast %15 : vector<1x32x128xbf16> to vector<32x128xbf16>
    %17 = arith.truncf %12 : vector<32x32xf32> to vector<32x32xbf16>
    %cst_16 = arith.constant dense<0.000000e+00> : vector<32x128xf32>
    %18 = tpu.matmul %17, %16, %cst_16 {dimension_numbers = #tpu.dot_dimension_numbers<[1], [0], [0], [1], [0, 0, 1, 1], [], []>} : vector<32x32xbf16>, vector<32x128xbf16>, vector<32x128xf32> -> vector<32x128xf32>
    %c0_17 = arith.constant 0 : index
    %c0_18 = arith.constant 0 : index
    %c0_19 = arith.constant 0 : index
    %19 = vector.load %arg8[%c0_17, %c0_18, %c0_19] : memref<2x1x128xf32, #tpu.memory_space<vmem>>, vector<1x1x128xf32>
    %20 = vector.shape_cast %19 : vector<1x1x128xf32> to vector<1x128xf32>
    %21 = vector.broadcast %20 : vector<1x128xf32> to vector<32x128xf32>
    %22 = arith.addf %18, %21 : vector<32x128xf32>
    %c0_20 = arith.constant 0 : index
    %c0_21 = arith.constant 0 : index
    %c0_22 = arith.constant 0 : index
    %23 = vector.load %arg11[%c0_20, %c0_21, %c0_22] : memref<2x4x32xf32, #tpu.memory_space<vmem>>, vector<1x4x32xf32>
    %24 = vector.shape_cast %23 : vector<1x4x32xf32> to vector<4x32xf32>
    %c0_23 = arith.constant 0 : index
    %c0_24 = arith.constant 0 : index
    %c0_25 = arith.constant 0 : index
    %25 = vector.load %arg12[%c0_23, %c0_24, %c0_25] : memref<2x4x32xf32, #tpu.memory_space<vmem>>, vector<1x4x32xf32>
    %26 = vector.shape_cast %25 : vector<1x4x32xf32> to vector<4x32xf32>
    %27 = vector.extract_strided_slice %22 {offsets = [0, 0], sizes = [4, 128], strides = [1, 1]} : vector<32x128xf32> to vector<4x128xf32>
    %28 = arith.truncf %24 : vector<4x32xf32> to vector<4x32xbf16>
    %cst_26 = arith.constant dense<0.000000e+00> : vector<4x128xf32>
    %29 = tpu.matmul %28, %14, %cst_26 {dimension_numbers = #tpu.dot_dimension_numbers<[1], [0], [0], [1], [0, 0, 1, 1], [], []>} : vector<4x32xbf16>, vector<32x128xbf16>, vector<4x128xf32> -> vector<4x128xf32>
    %30 = arith.addf %27, %29 : vector<4x128xf32>
    %31 = arith.negf %30 : vector<4x128xf32>
    %32 = math.exp %31 : vector<4x128xf32>
    %cst_27 = arith.constant 1.000000e+00 : f32
    %33 = vector.broadcast %cst_27 : f32 to vector<4x128xf32>
    %34 = arith.addf %33, %32 : vector<4x128xf32>
    %35 = arith.divf %33, %34 : vector<4x128xf32>
    %36 = math.tanh %30 : vector<4x128xf32>
    %37 = vector.extract_strided_slice %35 {offsets = [0, 0], sizes = [4, 32], strides = [1, 1]} : vector<4x128xf32> to vector<4x32xf32>
    %38 = vector.extract_strided_slice %35 {offsets = [0, 32], sizes = [4, 32], strides = [1, 1]} : vector<4x128xf32> to vector<4x32xf32>
    %39 = vector.extract_strided_slice %36 {offsets = [0, 64], sizes = [4, 32], strides = [1, 1]} : vector<4x128xf32> to vector<4x32xf32>
    %40 = vector.extract_strided_slice %35 {offsets = [0, 96], sizes = [4, 32], strides = [1, 1]} : vector<4x128xf32> to vector<4x32xf32>
    %41 = arith.mulf %38, %26 : vector<4x32xf32>
    %42 = arith.mulf %37, %39 : vector<4x32xf32>
    %43 = arith.addf %41, %42 : vector<4x32xf32>
    %44 = math.tanh %43 : vector<4x32xf32>
    %45 = arith.mulf %40, %44 : vector<4x32xf32>
    %c0_28 = arith.constant 0 : index
    %c0_29 = arith.constant 0 : index
    %46 = vector.load %arg43[%c0_28, %c0_29] : memref<32x32xf32, #tpu.memory_space<vmem>>, vector<4x32xf32>
    tpu.vector_store %arg43[%c0_28, %c0_29], %45 {strides = array<i32>} : memref<32x32xf32, #tpu.memory_space<vmem>>, vector<4x32xf32>,
    %47 = vector.extract_strided_slice %22 {offsets = [4, 0], sizes = [4, 128], strides = [1, 1]} : vector<32x128xf32> to vector<4x128xf32>
    %48 = arith.truncf %45 : vector<4x32xf32> to vector<4x32xbf16>
    %cst_30 = arith.constant dense<0.000000e+00> : vector<4x128xf32>
    %49 = tpu.matmul %48, %14, %cst_30 {dimension_numbers = #tpu.dot_dimension_numbers<[1], [0], [0], [1], [0, 0, 1, 1], [], []>} : vector<4x32xbf16>, vector<32x128xbf16>, vector<4x128xf32> -> vector<4x128xf32>
    %50 = arith.addf %47, %49 : vector<4x128xf32>
    %51 = arith.negf %50 : vector<4x128xf32>
    %52 = math.exp %51 : vector<4x128xf32>
    %cst_31 = arith.constant 1.000000e+00 : f32
    %53 = vector.broadcast %cst_31 : f32 to vector<4x128xf32>
    %54 = arith.addf %53, %52 : vector<4x128xf32>
    %55 = arith.divf %53, %54 : vector<4x128xf32>
    %56 = math.tanh %50 : vector<4x128xf32>
    %57 = vector.extract_strided_slice %55 {offsets = [0, 0], sizes = [4, 32], strides = [1, 1]} : vector<4x128xf32> to vector<4x32xf32>
    %58 = vector.extract_strided_slice %55 {offsets = [0, 32], sizes = [4, 32], strides = [1, 1]} : vector<4x128xf32> to vector<4x32xf32>
    %59 = vector.extract_strided_slice %56 {offsets = [0, 64], sizes = [4, 32], strides = [1, 1]} : vector<4x128xf32> to vector<4x32xf32>
    %60 = vector.extract_strided_slice %55 {offsets = [0, 96], sizes = [4, 32], strides = [1, 1]} : vector<4x128xf32> to vector<4x32xf32>
    %61 = arith.mulf %58, %43 : vector<4x32xf32>
    %62 = arith.mulf %57, %59 : vector<4x32xf32>
    %63 = arith.addf %61, %62 : vector<4x32xf32>
    %64 = math.tanh %63 : vector<4x32xf32>
    %65 = arith.mulf %60, %64 : vector<4x32xf32>
    %c4 = arith.constant 4 : index
    %c0_32 = arith.constant 0 : index
    %66 = vector.load %arg43[%c4, %c0_32] : memref<32x32xf32, #tpu.memory_space<vmem>>, vector<4x32xf32>
    tpu.vector_store %arg43[%c4, %c0_32], %65 {strides = array<i32>} : memref<32x32xf32, #tpu.memory_space<vmem>>, vector<4x32xf32>,
    %67 = vector.extract_strided_slice %22 {offsets = [8, 0], sizes = [4, 128], strides = [1, 1]} : vector<32x128xf32> to vector<4x128xf32>
    %68 = arith.truncf %65 : vector<4x32xf32> to vector<4x32xbf16>
    %cst_33 = arith.constant dense<0.000000e+00> : vector<4x128xf32>
    %69 = tpu.matmul %68, %14, %cst_33 {dimension_numbers = #tpu.dot_dimension_numbers<[1], [0], [0], [1], [0, 0, 1, 1], [], []>} : vector<4x32xbf16>, vector<32x128xbf16>, vector<4x128xf32> -> vector<4x128xf32>
    %70 = arith.addf %67, %69 : vector<4x128xf32>
    %71 = arith.negf %70 : vector<4x128xf32>
    %72 = math.exp %71 : vector<4x128xf32>
    %cst_34 = arith.constant 1.000000e+00 : f32
    %73 = vector.broadcast %cst_34 : f32 to vector<4x128xf32>
    %74 = arith.addf %73, %72 : vector<4x128xf32>
    %75 = arith.divf %73, %74 : vector<4x128xf32>
    %76 = math.tanh %70 : vector<4x128xf32>
    %77 = vector.extract_strided_slice %75 {offsets = [0, 0], sizes = [4, 32], strides = [1, 1]} : vector<4x128xf32> to vector<4x32xf32>
    %78 = vector.extract_strided_slice %75 {offsets = [0, 32], sizes = [4, 32], strides = [1, 1]} : vector<4x128xf32> to vector<4x32xf32>
    %79 = vector.extract_strided_slice %76 {offsets = [0, 64], sizes = [4, 32], strides = [1, 1]} : vector<4x128xf32> to vector<4x32xf32>
    %80 = vector.extract_strided_slice %75 {offsets = [0, 96], sizes = [4, 32], strides = [1, 1]} : vector<4x128xf32> to vector<4x32xf32>
    %81 = arith.mulf %78, %63 : vector<4x32xf32>
    %82 = arith.mulf %77, %79 : vector<4x32xf32>
    %83 = arith.addf %81, %82 : vector<4x32xf32>
    %84 = math.tanh %83 : vector<4x32xf32>
    %85 = arith.mulf %80, %84 : vector<4x32xf32>
    %c8 = arith.constant 8 : index
    %c0_35 = arith.constant 0 : index
    %86 = vector.load %arg43[%c8, %c0_35] : memref<32x32xf32, #tpu.memory_space<vmem>>, vector<4x32xf32>
    tpu.vector_store %arg43[%c8, %c0_35], %85 {strides = array<i32>} : memref<32x32xf32, #tpu.memory_space<vmem>>, vector<4x32xf32>,
    %87 = vector.extract_strided_slice %22 {offsets = [12, 0], sizes = [4, 128], strides = [1, 1]} : vector<32x128xf32> to vector<4x128xf32>
    %88 = arith.truncf %85 : vector<4x32xf32> to vector<4x32xbf16>
    %cst_36 = arith.constant dense<0.000000e+00> : vector<4x128xf32>
    %89 = tpu.matmul %88, %14, %cst_36 {dimension_numbers = #tpu.dot_dimension_numbers<[1], [0], [0], [1], [0, 0, 1, 1], [], []>} : vector<4x32xbf16>, vector<32x128xbf16>, vector<4x128xf32> -> vector<4x128xf32>
    %90 = arith.addf %87, %89 : vector<4x128xf32>
    %91 = arith.negf %90 : vector<4x128xf32>
    %92 = math.exp %91 : vector<4x128xf32>
    %cst_37 = arith.constant 1.000000e+00 : f32
    %93 = vector.broadcast %cst_37 : f32 to vector<4x128xf32>
    %94 = arith.addf %93, %92 : vector<4x128xf32>
    %95 = arith.divf %93, %94 : vector<4x128xf32>
    %96 = math.tanh %90 : vector<4x128xf32>
    %97 = vector.extract_strided_slice %95 {offsets = [0, 0], sizes = [4, 32], strides = [1, 1]} : vector<4x128xf32> to vector<4x32xf32>
    %98 = vector.extract_strided_slice %95 {offsets = [0, 32], sizes = [4, 32], strides = [1, 1]} : vector<4x128xf32> to vector<4x32xf32>
    %99 = vector.extract_strided_slice %96 {offsets = [0, 64], sizes = [4, 32], strides = [1, 1]} : vector<4x128xf32> to vector<4x32xf32>
    %100 = vector.extract_strided_slice %95 {offsets = [0, 96], sizes = [4, 32], strides = [1, 1]} : vector<4x128xf32> to vector<4x32xf32>
    %101 = arith.mulf %98, %83 : vector<4x32xf32>
    %102 = arith.mulf %97, %99 : vector<4x32xf32>
    %103 = arith.addf %101, %102 : vector<4x32xf32>
    %104 = math.tanh %103 : vector<4x32xf32>
    %105 = arith.mulf %100, %104 : vector<4x32xf32>
    %c12 = arith.constant 12 : index
    %c0_38 = arith.constant 0 : index
    %106 = vector.load %arg43[%c12, %c0_38] : memref<32x32xf32, #tpu.memory_space<vmem>>, vector<4x32xf32>
    tpu.vector_store %arg43[%c12, %c0_38], %105 {strides = array<i32>} : memref<32x32xf32, #tpu.memory_space<vmem>>, vector<4x32xf32>,
    %107 = vector.extract_strided_slice %22 {offsets = [16, 0], sizes = [4, 128], strides = [1, 1]} : vector<32x128xf32> to vector<4x128xf32>
    %108 = arith.truncf %105 : vector<4x32xf32> to vector<4x32xbf16>
    %cst_39 = arith.constant dense<0.000000e+00> : vector<4x128xf32>
    %109 = tpu.matmul %108, %14, %cst_39 {dimension_numbers = #tpu.dot_dimension_numbers<[1], [0], [0], [1], [0, 0, 1, 1], [], []>} : vector<4x32xbf16>, vector<32x128xbf16>, vector<4x128xf32> -> vector<4x128xf32>
    %110 = arith.addf %107, %109 : vector<4x128xf32>
    %111 = arith.negf %110 : vector<4x128xf32>
    %112 = math.exp %111 : vector<4x128xf32>
    %cst_40 = arith.constant 1.000000e+00 : f32
    %113 = vector.broadcast %cst_40 : f32 to vector<4x128xf32>
    %114 = arith.addf %113, %112 : vector<4x128xf32>
    %115 = arith.divf %113, %114 : vector<4x128xf32>
    %116 = math.tanh %110 : vector<4x128xf32>
    %117 = vector.extract_strided_slice %115 {offsets = [0, 0], sizes = [4, 32], strides = [1, 1]} : vector<4x128xf32> to vector<4x32xf32>
    %118 = vector.extract_strided_slice %115 {offsets = [0, 32], sizes = [4, 32], strides = [1, 1]} : vector<4x128xf32> to vector<4x32xf32>
    %119 = vector.extract_strided_slice %116 {offsets = [0, 64], sizes = [4, 32], strides = [1, 1]} : vector<4x128xf32> to vector<4x32xf32>
    %120 = vector.extract_strided_slice %115 {offsets = [0, 96], sizes = [4, 32], strides = [1, 1]} : vector<4x128xf32> to vector<4x32xf32>
    %121 = arith.mulf %118, %103 : vector<4x32xf32>
    %122 = arith.mulf %117, %119 : vector<4x32xf32>
    %123 = arith.addf %121, %122 : vector<4x32xf32>
    %124 = math.tanh %123 : vector<4x32xf32>
    %125 = arith.mulf %120, %124 : vector<4x32xf32>
    %c16 = arith.constant 16 : index
    %c0_41 = arith.constant 0 : index
    %126 = vector.load %arg43[%c16, %c0_41] : memref<32x32xf32, #tpu.memory_space<vmem>>, vector<4x32xf32>
    tpu.vector_store %arg43[%c16, %c0_41], %125 {strides = array<i32>} : memref<32x32xf32, #tpu.memory_space<vmem>>, vector<4x32xf32>,
    %127 = vector.extract_strided_slice %22 {offsets = [20, 0], sizes = [4, 128], strides = [1, 1]} : vector<32x128xf32> to vector<4x128xf32>
    %128 = arith.truncf %125 : vector<4x32xf32> to vector<4x32xbf16>
    %cst_42 = arith.constant dense<0.000000e+00> : vector<4x128xf32>
    %129 = tpu.matmul %128, %14, %cst_42 {dimension_numbers = #tpu.dot_dimension_numbers<[1], [0], [0], [1], [0, 0, 1, 1], [], []>} : vector<4x32xbf16>, vector<32x128xbf16>, vector<4x128xf32> -> vector<4x128xf32>
    %130 = arith.addf %127, %129 : vector<4x128xf32>
    %131 = arith.negf %130 : vector<4x128xf32>
    %132 = math.exp %131 : vector<4x128xf32>
    %cst_43 = arith.constant 1.000000e+00 : f32
    %133 = vector.broadcast %cst_43 : f32 to vector<4x128xf32>
    %134 = arith.addf %133, %132 : vector<4x128xf32>
    %135 = arith.divf %133, %134 : vector<4x128xf32>
    %136 = math.tanh %130 : vector<4x128xf32>
    %137 = vector.extract_strided_slice %135 {offsets = [0, 0], sizes = [4, 32], strides = [1, 1]} : vector<4x128xf32> to vector<4x32xf32>
    %138 = vector.extract_strided_slice %135 {offsets = [0, 32], sizes = [4, 32], strides = [1, 1]} : vector<4x128xf32> to vector<4x32xf32>
    %139 = vector.extract_strided_slice %136 {offsets = [0, 64], sizes = [4, 32], strides = [1, 1]} : vector<4x128xf32> to vector<4x32xf32>
    %140 = vector.extract_strided_slice %135 {offsets = [0, 96], sizes = [4, 32], strides = [1, 1]} : vector<4x128xf32> to vector<4x32xf32>
    %141 = arith.mulf %138, %123 : vector<4x32xf32>
    %142 = arith.mulf %137, %139 : vector<4x32xf32>
    %143 = arith.addf %141, %142 : vector<4x32xf32>
    %144 = math.tanh %143 : vector<4x32xf32>
    %145 = arith.mulf %140, %144 : vector<4x32xf32>
    %c20 = arith.constant 20 : index
    %c0_44 = arith.constant 0 : index
    %146 = vector.load %arg43[%c20, %c0_44] : memref<32x32xf32, #tpu.memory_space<vmem>>, vector<4x32xf32>
    tpu.vector_store %arg43[%c20, %c0_44], %145 {strides = array<i32>} : memref<32x32xf32, #tpu.memory_space<vmem>>, vector<4x32xf32>,
    %147 = vector.extract_strided_slice %22 {offsets = [24, 0], sizes = [4, 128], strides = [1, 1]} : vector<32x128xf32> to vector<4x128xf32>
    %148 = arith.truncf %145 : vector<4x32xf32> to vector<4x32xbf16>
    %cst_45 = arith.constant dense<0.000000e+00> : vector<4x128xf32>
    %149 = tpu.matmul %148, %14, %cst_45 {dimension_numbers = #tpu.dot_dimension_numbers<[1], [0], [0], [1], [0, 0, 1, 1], [], []>} : vector<4x32xbf16>, vector<32x128xbf16>, vector<4x128xf32> -> vector<4x128xf32>
    %150 = arith.addf %147, %149 : vector<4x128xf32>
    %151 = arith.negf %150 : vector<4x128xf32>
    %152 = math.exp %151 : vector<4x128xf32>
    %cst_46 = arith.constant 1.000000e+00 : f32
    %153 = vector.broadcast %cst_46 : f32 to vector<4x128xf32>
    %154 = arith.addf %153, %152 : vector<4x128xf32>
    %155 = arith.divf %153, %154 : vector<4x128xf32>
    %156 = math.tanh %150 : vector<4x128xf32>
    %157 = vector.extract_strided_slice %155 {offsets = [0, 0], sizes = [4, 32], strides = [1, 1]} : vector<4x128xf32> to vector<4x32xf32>
    %158 = vector.extract_strided_slice %155 {offsets = [0, 32], sizes = [4, 32], strides = [1, 1]} : vector<4x128xf32> to vector<4x32xf32>
    %159 = vector.extract_strided_slice %156 {offsets = [0, 64], sizes = [4, 32], strides = [1, 1]} : vector<4x128xf32> to vector<4x32xf32>
    %160 = vector.extract_strided_slice %155 {offsets = [0, 96], sizes = [4, 32], strides = [1, 1]} : vector<4x128xf32> to vector<4x32xf32>
    %161 = arith.mulf %158, %143 : vector<4x32xf32>
    %162 = arith.mulf %157, %159 : vector<4x32xf32>
    %163 = arith.addf %161, %162 : vector<4x32xf32>
    %164 = math.tanh %163 : vector<4x32xf32>
    %165 = arith.mulf %160, %164 : vector<4x32xf32>
    %c24 = arith.constant 24 : index
    %c0_47 = arith.constant 0 : index
    %166 = vector.load %arg43[%c24, %c0_47] : memref<32x32xf32, #tpu.memory_space<vmem>>, vector<4x32xf32>
    tpu.vector_store %arg43[%c24, %c0_47], %165 {strides = array<i32>} : memref<32x32xf32, #tpu.memory_space<vmem>>, vector<4x32xf32>,
    %167 = vector.extract_strided_slice %22 {offsets = [28, 0], sizes = [4, 128], strides = [1, 1]} : vector<32x128xf32> to vector<4x128xf32>
    %168 = arith.truncf %165 : vector<4x32xf32> to vector<4x32xbf16>
    %cst_48 = arith.constant dense<0.000000e+00> : vector<4x128xf32>
    %169 = tpu.matmul %168, %14, %cst_48 {dimension_numbers = #tpu.dot_dimension_numbers<[1], [0], [0], [1], [0, 0, 1, 1], [], []>} : vector<4x32xbf16>, vector<32x128xbf16>, vector<4x128xf32> -> vector<4x128xf32>
    %170 = arith.addf %167, %169 : vector<4x128xf32>
    %171 = arith.negf %170 : vector<4x128xf32>
    %172 = math.exp %171 : vector<4x128xf32>
    %cst_49 = arith.constant 1.000000e+00 : f32
    %173 = vector.broadcast %cst_49 : f32 to vector<4x128xf32>
    %174 = arith.addf %173, %172 : vector<4x128xf32>
    %175 = arith.divf %173, %174 : vector<4x128xf32>
    %176 = math.tanh %170 : vector<4x128xf32>
    %177 = vector.extract_strided_slice %175 {offsets = [0, 0], sizes = [4, 32], strides = [1, 1]} : vector<4x128xf32> to vector<4x32xf32>
    %178 = vector.extract_strided_slice %175 {offsets = [0, 32], sizes = [4, 32], strides = [1, 1]} : vector<4x128xf32> to vector<4x32xf32>
    %179 = vector.extract_strided_slice %176 {offsets = [0, 64], sizes = [4, 32], strides = [1, 1]} : vector<4x128xf32> to vector<4x32xf32>
    %180 = vector.extract_strided_slice %175 {offsets = [0, 96], sizes = [4, 32], strides = [1, 1]} : vector<4x128xf32> to vector<4x32xf32>
    %181 = arith.mulf %178, %163 : vector<4x32xf32>
    %182 = arith.mulf %177, %179 : vector<4x32xf32>
    %183 = arith.addf %181, %182 : vector<4x32xf32>
    %184 = math.tanh %183 : vector<4x32xf32>
    %185 = arith.mulf %180, %184 : vector<4x32xf32>
    %c28 = arith.constant 28 : index
    %c0_50 = arith.constant 0 : index
    %186 = vector.load %arg43[%c28, %c0_50] : memref<32x32xf32, #tpu.memory_space<vmem>>, vector<4x32xf32>
    tpu.vector_store %arg43[%c28, %c0_50], %185 {strides = array<i32>} : memref<32x32xf32, #tpu.memory_space<vmem>>, vector<4x32xf32>,
    %c0_51 = arith.constant 0 : index
    %c0_52 = arith.constant 0 : index
    %c0_53 = arith.constant 0 : index
    %187 = vector.load %arg42[%c0_51, %c0_52, %c0_53] : memref<4x4x32xf32, #tpu.memory_space<vmem>>, vector<1x4x32xf32>
    %188 = vector.shape_cast %187 : vector<1x4x32xf32> to vector<4x32xf32>
    %189 = vector.shape_cast %185 : vector<4x32xf32> to vector<1x4x32xf32>
    tpu.vector_store %arg42[%c0_51, %c0_52, %c0_53], %189 {strides = array<i32>} : memref<4x4x32xf32, #tpu.memory_space<vmem>>, vector<1x4x32xf32>,
    %c1 = arith.constant 1 : index
    %c0_54 = arith.constant 0 : index
    %c0_55 = arith.constant 0 : index
    %190 = vector.load %arg42[%c1, %c0_54, %c0_55] : memref<4x4x32xf32, #tpu.memory_space<vmem>>, vector<1x4x32xf32>
    %191 = vector.shape_cast %190 : vector<1x4x32xf32> to vector<4x32xf32>
    %192 = vector.shape_cast %183 : vector<4x32xf32> to vector<1x4x32xf32>
    tpu.vector_store %arg42[%c1, %c0_54, %c0_55], %192 {strides = array<i32>} : memref<4x4x32xf32, #tpu.memory_space<vmem>>, vector<1x4x32xf32>,
    %c0_56 = arith.constant 0 : index
    %c0_57 = arith.constant 0 : index
    %193 = vector.load %arg43[%c0_56, %c0_57] : memref<32x32xf32, #tpu.memory_space<vmem>>, vector<32x32xf32>
    %c0_58 = arith.constant 0 : index
    %c0_59 = arith.constant 0 : index
    %c0_60 = arith.constant 0 : index
    %194 = vector.load %arg9[%c0_58, %c0_59, %c0_60] : memref<2x32x32xbf16, #tpu.memory_space<vmem>>, vector<1x32x32xbf16>
    %195 = vector.shape_cast %194 : vector<1x32x32xbf16> to vector<32x32xbf16>
    %196 = arith.truncf %193 : vector<32x32xf32> to vector<32x32xbf16>
    %cst_61 = arith.constant dense<0.000000e+00> : vector<32x32xf32>
    %197 = tpu.matmul %196, %195, %cst_61 {dimension_numbers = #tpu.dot_dimension_numbers<[1], [0], [0], [1], [0, 0, 1, 1], [], []>} : vector<32x32xbf16>, vector<32x32xbf16>, vector<32x32xf32> -> vector<32x32xf32>
    %198 = arith.addf %12, %197 : vector<32x32xf32>
    %c0_62 = arith.constant 0 : index
    %c0_63 = arith.constant 0 : index
    %c0_64 = arith.constant 0 : index
    %199 = vector.load %arg10[%c0_62, %c0_63, %c0_64] : memref<2x1x32xf32, #tpu.memory_space<vmem>>, vector<1x1x32xf32>
    %200 = vector.shape_cast %199 : vector<1x1x32xf32> to vector<1x32xf32>
    %201 = vector.broadcast %200 : vector<1x32xf32> to vector<32x32xf32>
    %202 = arith.addf %198, %201 : vector<32x32xf32>
    %cst_65 = arith.constant 0.000000e+00 : f32
    %203 = vector.broadcast %cst_65 : f32 to vector<32x32xf32>
    %204 = arith.maximumf %202, %203 : vector<32x32xf32>
    %c1_66 = arith.constant 1 : index
    %c0_67 = arith.constant 0 : index
    %c0_68 = arith.constant 0 : index
    %205 = vector.load %arg7[%c1_66, %c0_67, %c0_68] : memref<2x32x128xbf16, #tpu.memory_space<vmem>>, vector<1x32x128xbf16>
    %206 = vector.shape_cast %205 : vector<1x32x128xbf16> to vector<32x128xbf16>
    %c1_69 = arith.constant 1 : index
    %c0_70 = arith.constant 0 : index
    %c0_71 = arith.constant 0 : index
    %207 = vector.load %arg6[%c1_69, %c0_70, %c0_71] : memref<2x32x128xbf16, #tpu.memory_space<vmem>>, vector<1x32x128xbf16>
    %208 = vector.shape_cast %207 : vector<1x32x128xbf16> to vector<32x128xbf16>
    %209 = arith.truncf %204 : vector<32x32xf32> to vector<32x32xbf16>
    %cst_72 = arith.constant dense<0.000000e+00> : vector<32x128xf32>
    %210 = tpu.matmul %209, %208, %cst_72 {dimension_numbers = #tpu.dot_dimension_numbers<[1], [0], [0], [1], [0, 0, 1, 1], [], []>} : vector<32x32xbf16>, vector<32x128xbf16>, vector<32x128xf32> -> vector<32x128xf32>
    %c1_73 = arith.constant 1 : index
    %c0_74 = arith.constant 0 : index
    %c0_75 = arith.constant 0 : index
    %211 = vector.load %arg8[%c1_73, %c0_74, %c0_75] : memref<2x1x128xf32, #tpu.memory_space<vmem>>, vector<1x1x128xf32>
    %212 = vector.shape_cast %211 : vector<1x1x128xf32> to vector<1x128xf32>
    %213 = vector.broadcast %212 : vector<1x128xf32> to vector<32x128xf32>
    %214 = arith.addf %210, %213 : vector<32x128xf32>
    %c1_76 = arith.constant 1 : index
    %c0_77 = arith.constant 0 : index
    %c0_78 = arith.constant 0 : index
    %215 = vector.load %arg11[%c1_76, %c0_77, %c0_78] : memref<2x4x32xf32, #tpu.memory_space<vmem>>, vector<1x4x32xf32>
    %216 = vector.shape_cast %215 : vector<1x4x32xf32> to vector<4x32xf32>
    %c1_79 = arith.constant 1 : index
    %c0_80 = arith.constant 0 : index
    %c0_81 = arith.constant 0 : index
    %217 = vector.load %arg12[%c1_79, %c0_80, %c0_81] : memref<2x4x32xf32, #tpu.memory_space<vmem>>, vector<1x4x32xf32>
    %218 = vector.shape_cast %217 : vector<1x4x32xf32> to vector<4x32xf32>
    %219 = vector.extract_strided_slice %214 {offsets = [0, 0], sizes = [4, 128], strides = [1, 1]} : vector<32x128xf32> to vector<4x128xf32>
    %220 = arith.truncf %216 : vector<4x32xf32> to vector<4x32xbf16>
    %cst_82 = arith.constant dense<0.000000e+00> : vector<4x128xf32>
    %221 = tpu.matmul %220, %206, %cst_82 {dimension_numbers = #tpu.dot_dimension_numbers<[1], [0], [0], [1], [0, 0, 1, 1], [], []>} : vector<4x32xbf16>, vector<32x128xbf16>, vector<4x128xf32> -> vector<4x128xf32>
    %222 = arith.addf %219, %221 : vector<4x128xf32>
    %223 = arith.negf %222 : vector<4x128xf32>
    %224 = math.exp %223 : vector<4x128xf32>
    %cst_83 = arith.constant 1.000000e+00 : f32
    %225 = vector.broadcast %cst_83 : f32 to vector<4x128xf32>
    %226 = arith.addf %225, %224 : vector<4x128xf32>
    %227 = arith.divf %225, %226 : vector<4x128xf32>
    %228 = math.tanh %222 : vector<4x128xf32>
    %229 = vector.extract_strided_slice %227 {offsets = [0, 0], sizes = [4, 32], strides = [1, 1]} : vector<4x128xf32> to vector<4x32xf32>
    %230 = vector.extract_strided_slice %227 {offsets = [0, 32], sizes = [4, 32], strides = [1, 1]} : vector<4x128xf32> to vector<4x32xf32>
    %231 = vector.extract_strided_slice %228 {offsets = [0, 64], sizes = [4, 32], strides = [1, 1]} : vector<4x128xf32> to vector<4x32xf32>
    %232 = vector.extract_strided_slice %227 {offsets = [0, 96], sizes = [4, 32], strides = [1, 1]} : vector<4x128xf32> to vector<4x32xf32>
    %233 = arith.mulf %230, %218 : vector<4x32xf32>
    %234 = arith.mulf %229, %231 : vector<4x32xf32>
    %235 = arith.addf %233, %234 : vector<4x32xf32>
    %236 = math.tanh %235 : vector<4x32xf32>
    %237 = arith.mulf %232, %236 : vector<4x32xf32>
    %c0_84 = arith.constant 0 : index
    %c0_85 = arith.constant 0 : index
    %238 = vector.load %arg43[%c0_84, %c0_85] : memref<32x32xf32, #tpu.memory_space<vmem>>, vector<4x32xf32>
    tpu.vector_store %arg43[%c0_84, %c0_85], %237 {strides = array<i32>} : memref<32x32xf32, #tpu.memory_space<vmem>>, vector<4x32xf32>,
    %239 = vector.extract_strided_slice %214 {offsets = [4, 0], sizes = [4, 128], strides = [1, 1]} : vector<32x128xf32> to vector<4x128xf32>
    %240 = arith.truncf %237 : vector<4x32xf32> to vector<4x32xbf16>
    %cst_86 = arith.constant dense<0.000000e+00> : vector<4x128xf32>
    %241 = tpu.matmul %240, %206, %cst_86 {dimension_numbers = #tpu.dot_dimension_numbers<[1], [0], [0], [1], [0, 0, 1, 1], [], []>} : vector<4x32xbf16>, vector<32x128xbf16>, vector<4x128xf32> -> vector<4x128xf32>
    %242 = arith.addf %239, %241 : vector<4x128xf32>
    %243 = arith.negf %242 : vector<4x128xf32>
    %244 = math.exp %243 : vector<4x128xf32>
    %cst_87 = arith.constant 1.000000e+00 : f32
    %245 = vector.broadcast %cst_87 : f32 to vector<4x128xf32>
    %246 = arith.addf %245, %244 : vector<4x128xf32>
    %247 = arith.divf %245, %246 : vector<4x128xf32>
    %248 = math.tanh %242 : vector<4x128xf32>
    %249 = vector.extract_strided_slice %247 {offsets = [0, 0], sizes = [4, 32], strides = [1, 1]} : vector<4x128xf32> to vector<4x32xf32>
    %250 = vector.extract_strided_slice %247 {offsets = [0, 32], sizes = [4, 32], strides = [1, 1]} : vector<4x128xf32> to vector<4x32xf32>
    %251 = vector.extract_strided_slice %248 {offsets = [0, 64], sizes = [4, 32], strides = [1, 1]} : vector<4x128xf32> to vector<4x32xf32>
    %252 = vector.extract_strided_slice %247 {offsets = [0, 96], sizes = [4, 32], strides = [1, 1]} : vector<4x128xf32> to vector<4x32xf32>
    %253 = arith.mulf %250, %235 : vector<4x32xf32>
    %254 = arith.mulf %249, %251 : vector<4x32xf32>
    %255 = arith.addf %253, %254 : vector<4x32xf32>
    %256 = math.tanh %255 : vector<4x32xf32>
    %257 = arith.mulf %252, %256 : vector<4x32xf32>
    %c4_88 = arith.constant 4 : index
    %c0_89 = arith.constant 0 : index
    %258 = vector.load %arg43[%c4_88, %c0_89] : memref<32x32xf32, #tpu.memory_space<vmem>>, vector<4x32xf32>
    tpu.vector_store %arg43[%c4_88, %c0_89], %257 {strides = array<i32>} : memref<32x32xf32, #tpu.memory_space<vmem>>, vector<4x32xf32>,
    %259 = vector.extract_strided_slice %214 {offsets = [8, 0], sizes = [4, 128], strides = [1, 1]} : vector<32x128xf32> to vector<4x128xf32>
    %260 = arith.truncf %257 : vector<4x32xf32> to vector<4x32xbf16>
    %cst_90 = arith.constant dense<0.000000e+00> : vector<4x128xf32>
    %261 = tpu.matmul %260, %206, %cst_90 {dimension_numbers = #tpu.dot_dimension_numbers<[1], [0], [0], [1], [0, 0, 1, 1], [], []>} : vector<4x32xbf16>, vector<32x128xbf16>, vector<4x128xf32> -> vector<4x128xf32>
    %262 = arith.addf %259, %261 : vector<4x128xf32>
    %263 = arith.negf %262 : vector<4x128xf32>
    %264 = math.exp %263 : vector<4x128xf32>
    %cst_91 = arith.constant 1.000000e+00 : f32
    %265 = vector.broadcast %cst_91 : f32 to vector<4x128xf32>
    %266 = arith.addf %265, %264 : vector<4x128xf32>
    %267 = arith.divf %265, %266 : vector<4x128xf32>
    %268 = math.tanh %262 : vector<4x128xf32>
    %269 = vector.extract_strided_slice %267 {offsets = [0, 0], sizes = [4, 32], strides = [1, 1]} : vector<4x128xf32> to vector<4x32xf32>
    %270 = vector.extract_strided_slice %267 {offsets = [0, 32], sizes = [4, 32], strides = [1, 1]} : vector<4x128xf32> to vector<4x32xf32>
    %271 = vector.extract_strided_slice %268 {offsets = [0, 64], sizes = [4, 32], strides = [1, 1]} : vector<4x128xf32> to vector<4x32xf32>
    %272 = vector.extract_strided_slice %267 {offsets = [0, 96], sizes = [4, 32], strides = [1, 1]} : vector<4x128xf32> to vector<4x32xf32>
    %273 = arith.mulf %270, %255 : vector<4x32xf32>
    %274 = arith.mulf %269, %271 : vector<4x32xf32>
    %275 = arith.addf %273, %274 : vector<4x32xf32>
    %276 = math.tanh %275 : vector<4x32xf32>
    %277 = arith.mulf %272, %276 : vector<4x32xf32>
    %c8_92 = arith.constant 8 : index
    %c0_93 = arith.constant 0 : index
    %278 = vector.load %arg43[%c8_92, %c0_93] : memref<32x32xf32, #tpu.memory_space<vmem>>, vector<4x32xf32>
    tpu.vector_store %arg43[%c8_92, %c0_93], %277 {strides = array<i32>} : memref<32x32xf32, #tpu.memory_space<vmem>>, vector<4x32xf32>,
    %279 = vector.extract_strided_slice %214 {offsets = [12, 0], sizes = [4, 128], strides = [1, 1]} : vector<32x128xf32> to vector<4x128xf32>
    %280 = arith.truncf %277 : vector<4x32xf32> to vector<4x32xbf16>
    %cst_94 = arith.constant dense<0.000000e+00> : vector<4x128xf32>
    %281 = tpu.matmul %280, %206, %cst_94 {dimension_numbers = #tpu.dot_dimension_numbers<[1], [0], [0], [1], [0, 0, 1, 1], [], []>} : vector<4x32xbf16>, vector<32x128xbf16>, vector<4x128xf32> -> vector<4x128xf32>
    %282 = arith.addf %279, %281 : vector<4x128xf32>
    %283 = arith.negf %282 : vector<4x128xf32>
    %284 = math.exp %283 : vector<4x128xf32>
    %cst_95 = arith.constant 1.000000e+00 : f32
    %285 = vector.broadcast %cst_95 : f32 to vector<4x128xf32>
    %286 = arith.addf %285, %284 : vector<4x128xf32>
    %287 = arith.divf %285, %286 : vector<4x128xf32>
    %288 = math.tanh %282 : vector<4x128xf32>
    %289 = vector.extract_strided_slice %287 {offsets = [0, 0], sizes = [4, 32], strides = [1, 1]} : vector<4x128xf32> to vector<4x32xf32>
    %290 = vector.extract_strided_slice %287 {offsets = [0, 32], sizes = [4, 32], strides = [1, 1]} : vector<4x128xf32> to vector<4x32xf32>
    %291 = vector.extract_strided_slice %288 {offsets = [0, 64], sizes = [4, 32], strides = [1, 1]} : vector<4x128xf32> to vector<4x32xf32>
    %292 = vector.extract_strided_slice %287 {offsets = [0, 96], sizes = [4, 32], strides = [1, 1]} : vector<4x128xf32> to vector<4x32xf32>
    %293 = arith.mulf %290, %275 : vector<4x32xf32>
    %294 = arith.mulf %289, %291 : vector<4x32xf32>
    %295 = arith.addf %293, %294 : vector<4x32xf32>
    %296 = math.tanh %295 : vector<4x32xf32>
    %297 = arith.mulf %292, %296 : vector<4x32xf32>
    %c12_96 = arith.constant 12 : index
    %c0_97 = arith.constant 0 : index
    %298 = vector.load %arg43[%c12_96, %c0_97] : memref<32x32xf32, #tpu.memory_space<vmem>>, vector<4x32xf32>
    tpu.vector_store %arg43[%c12_96, %c0_97], %297 {strides = array<i32>} : memref<32x32xf32, #tpu.memory_space<vmem>>, vector<4x32xf32>,
    %299 = vector.extract_strided_slice %214 {offsets = [16, 0], sizes = [4, 128], strides = [1, 1]} : vector<32x128xf32> to vector<4x128xf32>
    %300 = arith.truncf %297 : vector<4x32xf32> to vector<4x32xbf16>
    %cst_98 = arith.constant dense<0.000000e+00> : vector<4x128xf32>
    %301 = tpu.matmul %300, %206, %cst_98 {dimension_numbers = #tpu.dot_dimension_numbers<[1], [0], [0], [1], [0, 0, 1, 1], [], []>} : vector<4x32xbf16>, vector<32x128xbf16>, vector<4x128xf32> -> vector<4x128xf32>
    %302 = arith.addf %299, %301 : vector<4x128xf32>
    %303 = arith.negf %302 : vector<4x128xf32>
    %304 = math.exp %303 : vector<4x128xf32>
    %cst_99 = arith.constant 1.000000e+00 : f32
    %305 = vector.broadcast %cst_99 : f32 to vector<4x128xf32>
    %306 = arith.addf %305, %304 : vector<4x128xf32>
    %307 = arith.divf %305, %306 : vector<4x128xf32>
    %308 = math.tanh %302 : vector<4x128xf32>
    %309 = vector.extract_strided_slice %307 {offsets = [0, 0], sizes = [4, 32], strides = [1, 1]} : vector<4x128xf32> to vector<4x32xf32>
    %310 = vector.extract_strided_slice %307 {offsets = [0, 32], sizes = [4, 32], strides = [1, 1]} : vector<4x128xf32> to vector<4x32xf32>
    %311 = vector.extract_strided_slice %308 {offsets = [0, 64], sizes = [4, 32], strides = [1, 1]} : vector<4x128xf32> to vector<4x32xf32>
    %312 = vector.extract_strided_slice %307 {offsets = [0, 96], sizes = [4, 32], strides = [1, 1]} : vector<4x128xf32> to vector<4x32xf32>
    %313 = arith.mulf %310, %295 : vector<4x32xf32>
    %314 = arith.mulf %309, %311 : vector<4x32xf32>
    %315 = arith.addf %313, %314 : vector<4x32xf32>
    %316 = math.tanh %315 : vector<4x32xf32>
    %317 = arith.mulf %312, %316 : vector<4x32xf32>
    %c16_100 = arith.constant 16 : index
    %c0_101 = arith.constant 0 : index
    %318 = vector.load %arg43[%c16_100, %c0_101] : memref<32x32xf32, #tpu.memory_space<vmem>>, vector<4x32xf32>
    tpu.vector_store %arg43[%c16_100, %c0_101], %317 {strides = array<i32>} : memref<32x32xf32, #tpu.memory_space<vmem>>, vector<4x32xf32>,
    %319 = vector.extract_strided_slice %214 {offsets = [20, 0], sizes = [4, 128], strides = [1, 1]} : vector<32x128xf32> to vector<4x128xf32>
    %320 = arith.truncf %317 : vector<4x32xf32> to vector<4x32xbf16>
    %cst_102 = arith.constant dense<0.000000e+00> : vector<4x128xf32>
    %321 = tpu.matmul %320, %206, %cst_102 {dimension_numbers = #tpu.dot_dimension_numbers<[1], [0], [0], [1], [0, 0, 1, 1], [], []>} : vector<4x32xbf16>, vector<32x128xbf16>, vector<4x128xf32> -> vector<4x128xf32>
    %322 = arith.addf %319, %321 : vector<4x128xf32>
    %323 = arith.negf %322 : vector<4x128xf32>
    %324 = math.exp %323 : vector<4x128xf32>
    %cst_103 = arith.constant 1.000000e+00 : f32
    %325 = vector.broadcast %cst_103 : f32 to vector<4x128xf32>
    %326 = arith.addf %325, %324 : vector<4x128xf32>
    %327 = arith.divf %325, %326 : vector<4x128xf32>
    %328 = math.tanh %322 : vector<4x128xf32>
    %329 = vector.extract_strided_slice %327 {offsets = [0, 0], sizes = [4, 32], strides = [1, 1]} : vector<4x128xf32> to vector<4x32xf32>
    %330 = vector.extract_strided_slice %327 {offsets = [0, 32], sizes = [4, 32], strides = [1, 1]} : vector<4x128xf32> to vector<4x32xf32>
    %331 = vector.extract_strided_slice %328 {offsets = [0, 64], sizes = [4, 32], strides = [1, 1]} : vector<4x128xf32> to vector<4x32xf32>
    %332 = vector.extract_strided_slice %327 {offsets = [0, 96], sizes = [4, 32], strides = [1, 1]} : vector<4x128xf32> to vector<4x32xf32>
    %333 = arith.mulf %330, %315 : vector<4x32xf32>
    %334 = arith.mulf %329, %331 : vector<4x32xf32>
    %335 = arith.addf %333, %334 : vector<4x32xf32>
    %336 = math.tanh %335 : vector<4x32xf32>
    %337 = arith.mulf %332, %336 : vector<4x32xf32>
    %c20_104 = arith.constant 20 : index
    %c0_105 = arith.constant 0 : index
    %338 = vector.load %arg43[%c20_104, %c0_105] : memref<32x32xf32, #tpu.memory_space<vmem>>, vector<4x32xf32>
    tpu.vector_store %arg43[%c20_104, %c0_105], %337 {strides = array<i32>} : memref<32x32xf32, #tpu.memory_space<vmem>>, vector<4x32xf32>,
    %339 = vector.extract_strided_slice %214 {offsets = [24, 0], sizes = [4, 128], strides = [1, 1]} : vector<32x128xf32> to vector<4x128xf32>
    %340 = arith.truncf %337 : vector<4x32xf32> to vector<4x32xbf16>
    %cst_106 = arith.constant dense<0.000000e+00> : vector<4x128xf32>
    %341 = tpu.matmul %340, %206, %cst_106 {dimension_numbers = #tpu.dot_dimension_numbers<[1], [0], [0], [1], [0, 0, 1, 1], [], []>} : vector<4x32xbf16>, vector<32x128xbf16>, vector<4x128xf32> -> vector<4x128xf32>
    %342 = arith.addf %339, %341 : vector<4x128xf32>
    %343 = arith.negf %342 : vector<4x128xf32>
    %344 = math.exp %343 : vector<4x128xf32>
    %cst_107 = arith.constant 1.000000e+00 : f32
    %345 = vector.broadcast %cst_107 : f32 to vector<4x128xf32>
    %346 = arith.addf %345, %344 : vector<4x128xf32>
    %347 = arith.divf %345, %346 : vector<4x128xf32>
    %348 = math.tanh %342 : vector<4x128xf32>
    %349 = vector.extract_strided_slice %347 {offsets = [0, 0], sizes = [4, 32], strides = [1, 1]} : vector<4x128xf32> to vector<4x32xf32>
    %350 = vector.extract_strided_slice %347 {offsets = [0, 32], sizes = [4, 32], strides = [1, 1]} : vector<4x128xf32> to vector<4x32xf32>
    %351 = vector.extract_strided_slice %348 {offsets = [0, 64], sizes = [4, 32], strides = [1, 1]} : vector<4x128xf32> to vector<4x32xf32>
    %352 = vector.extract_strided_slice %347 {offsets = [0, 96], sizes = [4, 32], strides = [1, 1]} : vector<4x128xf32> to vector<4x32xf32>
    %353 = arith.mulf %350, %335 : vector<4x32xf32>
    %354 = arith.mulf %349, %351 : vector<4x32xf32>
    %355 = arith.addf %353, %354 : vector<4x32xf32>
    %356 = math.tanh %355 : vector<4x32xf32>
    %357 = arith.mulf %352, %356 : vector<4x32xf32>
    %c24_108 = arith.constant 24 : index
    %c0_109 = arith.constant 0 : index
    %358 = vector.load %arg43[%c24_108, %c0_109] : memref<32x32xf32, #tpu.memory_space<vmem>>, vector<4x32xf32>
    tpu.vector_store %arg43[%c24_108, %c0_109], %357 {strides = array<i32>} : memref<32x32xf32, #tpu.memory_space<vmem>>, vector<4x32xf32>,
    %359 = vector.extract_strided_slice %214 {offsets = [28, 0], sizes = [4, 128], strides = [1, 1]} : vector<32x128xf32> to vector<4x128xf32>
    %360 = arith.truncf %357 : vector<4x32xf32> to vector<4x32xbf16>
    %cst_110 = arith.constant dense<0.000000e+00> : vector<4x128xf32>
    %361 = tpu.matmul %360, %206, %cst_110 {dimension_numbers = #tpu.dot_dimension_numbers<[1], [0], [0], [1], [0, 0, 1, 1], [], []>} : vector<4x32xbf16>, vector<32x128xbf16>, vector<4x128xf32> -> vector<4x128xf32>
    %362 = arith.addf %359, %361 : vector<4x128xf32>
    %363 = arith.negf %362 : vector<4x128xf32>
    %364 = math.exp %363 : vector<4x128xf32>
    %cst_111 = arith.constant 1.000000e+00 : f32
    %365 = vector.broadcast %cst_111 : f32 to vector<4x128xf32>
    %366 = arith.addf %365, %364 : vector<4x128xf32>
    %367 = arith.divf %365, %366 : vector<4x128xf32>
    %368 = math.tanh %362 : vector<4x128xf32>
    %369 = vector.extract_strided_slice %367 {offsets = [0, 0], sizes = [4, 32], strides = [1, 1]} : vector<4x128xf32> to vector<4x32xf32>
    %370 = vector.extract_strided_slice %367 {offsets = [0, 32], sizes = [4, 32], strides = [1, 1]} : vector<4x128xf32> to vector<4x32xf32>
    %371 = vector.extract_strided_slice %368 {offsets = [0, 64], sizes = [4, 32], strides = [1, 1]} : vector<4x128xf32> to vector<4x32xf32>
    %372 = vector.extract_strided_slice %367 {offsets = [0, 96], sizes = [4, 32], strides = [1, 1]} : vector<4x128xf32> to vector<4x32xf32>
    %373 = arith.mulf %370, %355 : vector<4x32xf32>
    %374 = arith.mulf %369, %371 : vector<4x32xf32>
    %375 = arith.addf %373, %374 : vector<4x32xf32>
    %376 = math.tanh %375 : vector<4x32xf32>
    %377 = arith.mulf %372, %376 : vector<4x32xf32>
    %c28_112 = arith.constant 28 : index
    %c0_113 = arith.constant 0 : index
    %378 = vector.load %arg43[%c28_112, %c0_113] : memref<32x32xf32, #tpu.memory_space<vmem>>, vector<4x32xf32>
    tpu.vector_store %arg43[%c28_112, %c0_113], %377 {strides = array<i32>} : memref<32x32xf32, #tpu.memory_space<vmem>>, vector<4x32xf32>,
    %c2 = arith.constant 2 : index
    %c0_114 = arith.constant 0 : index
    %c0_115 = arith.constant 0 : index
    %379 = vector.load %arg42[%c2, %c0_114, %c0_115] : memref<4x4x32xf32, #tpu.memory_space<vmem>>, vector<1x4x32xf32>
    %380 = vector.shape_cast %379 : vector<1x4x32xf32> to vector<4x32xf32>
    %381 = vector.shape_cast %377 : vector<4x32xf32> to vector<1x4x32xf32>
    tpu.vector_store %arg42[%c2, %c0_114, %c0_115], %381 {strides = array<i32>} : memref<4x4x32xf32, #tpu.memory_space<vmem>>, vector<1x4x32xf32>,
    %c3 = arith.constant 3 : index
    %c0_116 = arith.constant 0 : index
    %c0_117 = arith.constant 0 : index
    %382 = vector.load %arg42[%c3, %c0_116, %c0_117] : memref<4x4x32xf32, #tpu.memory_space<vmem>>, vector<1x4x32xf32>
    %383 = vector.shape_cast %382 : vector<1x4x32xf32> to vector<4x32xf32>
    %384 = vector.shape_cast %375 : vector<4x32xf32> to vector<1x4x32xf32>
    tpu.vector_store %arg42[%c3, %c0_116, %c0_117], %384 {strides = array<i32>} : memref<4x4x32xf32, #tpu.memory_space<vmem>>, vector<1x4x32xf32>,
    %c0_118 = arith.constant 0 : index
    %c0_119 = arith.constant 0 : index
    %385 = vector.load %arg43[%c0_118, %c0_119] : memref<32x32xf32, #tpu.memory_space<vmem>>, vector<32x32xf32>
    %c1_120 = arith.constant 1 : index
    %c0_121 = arith.constant 0 : index
    %c0_122 = arith.constant 0 : index
    %386 = vector.load %arg9[%c1_120, %c0_121, %c0_122] : memref<2x32x32xbf16, #tpu.memory_space<vmem>>, vector<1x32x32xbf16>
    %387 = vector.shape_cast %386 : vector<1x32x32xbf16> to vector<32x32xbf16>
    %388 = arith.truncf %385 : vector<32x32xf32> to vector<32x32xbf16>
    %cst_123 = arith.constant dense<0.000000e+00> : vector<32x32xf32>
    %389 = tpu.matmul %388, %387, %cst_123 {dimension_numbers = #tpu.dot_dimension_numbers<[1], [0], [0], [1], [0, 0, 1, 1], [], []>} : vector<32x32xbf16>, vector<32x32xbf16>, vector<32x32xf32> -> vector<32x32xf32>
    %390 = arith.addf %204, %389 : vector<32x32xf32>
    %c1_124 = arith.constant 1 : index
    %c0_125 = arith.constant 0 : index
    %c0_126 = arith.constant 0 : index
    %391 = vector.load %arg10[%c1_124, %c0_125, %c0_126] : memref<2x1x32xf32, #tpu.memory_space<vmem>>, vector<1x1x32xf32>
    %392 = vector.shape_cast %391 : vector<1x1x32xf32> to vector<1x32xf32>
    %393 = vector.broadcast %392 : vector<1x32xf32> to vector<32x32xf32>
    %394 = arith.addf %390, %393 : vector<32x32xf32>
    %cst_127 = arith.constant 0.000000e+00 : f32
    %395 = vector.broadcast %cst_127 : f32 to vector<32x32xf32>
    %396 = arith.maximumf %394, %395 : vector<32x32xf32>
    %397 = tpu.iota {dimensions = array<i32: 1>} : vector<1x128xi32>
    %cst_128 = arith.constant 0.000000e+00 : f32
    %398 = vector.broadcast %cst_128 : f32 to vector<32x128xf32>
    %cst_129 = arith.constant 0.000000e+00 : f32
    %399 = vector.broadcast %cst_129 : f32 to vector<32x32xf32>
    %c0_130 = arith.constant 0 : index
    %c0_131 = arith.constant 0 : index
    %c0_132 = arith.constant 0 : index
    %400 = vector.load %arg13[%c0_130, %c0_131, %c0_132] : memref<5x32x64xbf16, #tpu.memory_space<vmem>>, vector<1x32x64xbf16>
    %401 = vector.shape_cast %400 : vector<1x32x64xbf16> to vector<32x64xbf16>
    %c0_133 = arith.constant 0 : index
    %c0_134 = arith.constant 0 : index
    %c0_135 = arith.constant 0 : index
    %402 = vector.load %arg14[%c0_133, %c0_134, %c0_135] : memref<5x32x64xbf16, #tpu.memory_space<vmem>>, vector<1x32x64xbf16>
    %403 = vector.shape_cast %402 : vector<1x32x64xbf16> to vector<32x64xbf16>
    %c0_136 = arith.constant 0 : index
    %c0_137 = arith.constant 0 : index
    %c0_138 = arith.constant 0 : index
    %404 = vector.load %arg15[%c0_136, %c0_137, %c0_138] : memref<5x1x64xf32, #tpu.memory_space<vmem>>, vector<1x1x64xf32>
    %405 = vector.shape_cast %404 : vector<1x1x64xf32> to vector<1x64xf32>
    %c0_139 = arith.constant 0 : index
    %c0_140 = arith.constant 0 : index
    %c0_141 = arith.constant 0 : index
    %406 = vector.load %arg16[%c0_139, %c0_140, %c0_141] : memref<5x64x32xbf16, #tpu.memory_space<vmem>>, vector<1x64x32xbf16>
    %407 = vector.shape_cast %406 : vector<1x64x32xbf16> to vector<64x32xbf16>
    %c0_142 = arith.constant 0 : index
    %c0_143 = arith.constant 0 : index
    %c0_144 = arith.constant 0 : index
    %408 = vector.load %arg17[%c0_142, %c0_143, %c0_144] : memref<5x1x32xf32, #tpu.memory_space<vmem>>, vector<1x1x32xf32>
    %409 = vector.shape_cast %408 : vector<1x1x32xf32> to vector<1x32xf32>
    %410 = arith.truncf %396 : vector<32x32xf32> to vector<32x32xbf16>
    %cst_145 = arith.constant dense<0.000000e+00> : vector<32x64xf32>
    %411 = tpu.matmul %410, %401, %cst_145 {dimension_numbers = #tpu.dot_dimension_numbers<[1], [0], [0], [1], [0, 0, 1, 1], [], []>} : vector<32x32xbf16>, vector<32x64xbf16>, vector<32x64xf32> -> vector<32x64xf32>
    %412 = arith.truncf %399 : vector<32x32xf32> to vector<32x32xbf16>
    %cst_146 = arith.constant dense<0.000000e+00> : vector<32x64xf32>
    %413 = tpu.matmul %412, %403, %cst_146 {dimension_numbers = #tpu.dot_dimension_numbers<[1], [0], [0], [1], [0, 0, 1, 1], [], []>} : vector<32x32xbf16>, vector<32x64xbf16>, vector<32x64xf32> -> vector<32x64xf32>
    %414 = arith.addf %411, %413 : vector<32x64xf32>
    %415 = vector.broadcast %405 : vector<1x64xf32> to vector<32x64xf32>
    %416 = arith.addf %414, %415 : vector<32x64xf32>
    %cst_147 = arith.constant 0.000000e+00 : f32
    %417 = vector.broadcast %cst_147 : f32 to vector<32x64xf32>
    %418 = arith.maximumf %416, %417 : vector<32x64xf32>
    %419 = arith.truncf %418 : vector<32x64xf32> to vector<32x64xbf16>
    %cst_148 = arith.constant dense<0.000000e+00> : vector<32x32xf32>
    %420 = tpu.matmul %419, %407, %cst_148 {dimension_numbers = #tpu.dot_dimension_numbers<[1], [0], [0], [1], [0, 0, 1, 1], [], []>} : vector<32x64xbf16>, vector<64x32xbf16>, vector<32x32xf32> -> vector<32x32xf32>
    %421 = vector.broadcast %409 : vector<1x32xf32> to vector<32x32xf32>
    %422 = arith.addf %420, %421 : vector<32x32xf32>
    %cst_149 = arith.constant 0.000000e+00 : f32
    %423 = vector.broadcast %cst_149 : f32 to vector<32x32xf32>
    %424 = arith.maximumf %422, %423 : vector<32x32xf32>
    %c0_150 = arith.constant 0 : index
    %c0_151 = arith.constant 0 : index
    %c0_152 = arith.constant 0 : index
    %425 = vector.load %arg18[%c0_150, %c0_151, %c0_152] : memref<5x32x128xbf16, #tpu.memory_space<vmem>>, vector<1x32x128xbf16>
    %426 = vector.shape_cast %425 : vector<1x32x128xbf16> to vector<32x128xbf16>
    %427 = arith.truncf %424 : vector<32x32xf32> to vector<32x32xbf16>
    %cst_153 = arith.constant dense<0.000000e+00> : vector<32x128xf32>
    %428 = tpu.matmul %427, %426, %cst_153 {dimension_numbers = #tpu.dot_dimension_numbers<[1], [0], [0], [1], [0, 0, 1, 1], [], []>} : vector<32x32xbf16>, vector<32x128xbf16>, vector<32x128xf32> -> vector<32x128xf32>
    %c0_154 = arith.constant 0 : index
    %c0_155 = arith.constant 0 : index
    %c0_156 = arith.constant 0 : index
    %429 = vector.load %arg19[%c0_154, %c0_155, %c0_156] : memref<5x1x128xf32, #tpu.memory_space<vmem>>, vector<1x1x128xf32>
    %430 = vector.shape_cast %429 : vector<1x1x128xf32> to vector<1x128xf32>
    %431 = vector.broadcast %430 : vector<1x128xf32> to vector<32x128xf32>
    %432 = arith.addf %428, %431 : vector<32x128xf32>
    %c0_i32 = arith.constant 0 : i32
    %433 = vector.broadcast %c0_i32 : i32 to vector<1x128xi32>
    %434 = arith.cmpi eq, %397, %433 : vector<1x128xi32>
    %435 = arith.negf %432 : vector<32x128xf32>
    %436 = math.exp %435 : vector<32x128xf32>
    %cst_157 = arith.constant 1.000000e+00 : f32
    %437 = vector.broadcast %cst_157 : f32 to vector<32x128xf32>
    %438 = arith.addf %437, %436 : vector<32x128xf32>
    %439 = arith.divf %437, %438 : vector<32x128xf32>
    %cst_158 = arith.constant 0.000000e+00 : f32
    %440 = vector.shape_cast %434 : vector<1x128xi1> to vector<1x128xi1>
    %441 = vector.broadcast %440 : vector<1x128xi1> to vector<32x128xi1>
    %442 = vector.broadcast %cst_158 : f32 to vector<32x128xf32>
    %443 = arith.select %441, %439, %442 : vector<32x128xi1>, vector<32x128xf32>
    %444 = arith.addf %398, %443 : vector<32x128xf32>
    %c1_159 = arith.constant 1 : index
    %c0_160 = arith.constant 0 : index
    %c0_161 = arith.constant 0 : index
    %445 = vector.load %arg13[%c1_159, %c0_160, %c0_161] : memref<5x32x64xbf16, #tpu.memory_space<vmem>>, vector<1x32x64xbf16>
    %446 = vector.shape_cast %445 : vector<1x32x64xbf16> to vector<32x64xbf16>
    %c1_162 = arith.constant 1 : index
    %c0_163 = arith.constant 0 : index
    %c0_164 = arith.constant 0 : index
    %447 = vector.load %arg14[%c1_162, %c0_163, %c0_164] : memref<5x32x64xbf16, #tpu.memory_space<vmem>>, vector<1x32x64xbf16>
    %448 = vector.shape_cast %447 : vector<1x32x64xbf16> to vector<32x64xbf16>
    %c1_165 = arith.constant 1 : index
    %c0_166 = arith.constant 0 : index
    %c0_167 = arith.constant 0 : index
    %449 = vector.load %arg15[%c1_165, %c0_166, %c0_167] : memref<5x1x64xf32, #tpu.memory_space<vmem>>, vector<1x1x64xf32>
    %450 = vector.shape_cast %449 : vector<1x1x64xf32> to vector<1x64xf32>
    %c1_168 = arith.constant 1 : index
    %c0_169 = arith.constant 0 : index
    %c0_170 = arith.constant 0 : index
    %451 = vector.load %arg16[%c1_168, %c0_169, %c0_170] : memref<5x64x32xbf16, #tpu.memory_space<vmem>>, vector<1x64x32xbf16>
    %452 = vector.shape_cast %451 : vector<1x64x32xbf16> to vector<64x32xbf16>
    %c1_171 = arith.constant 1 : index
    %c0_172 = arith.constant 0 : index
    %c0_173 = arith.constant 0 : index
    %453 = vector.load %arg17[%c1_171, %c0_172, %c0_173] : memref<5x1x32xf32, #tpu.memory_space<vmem>>, vector<1x1x32xf32>
    %454 = vector.shape_cast %453 : vector<1x1x32xf32> to vector<1x32xf32>
    %455 = arith.truncf %396 : vector<32x32xf32> to vector<32x32xbf16>
    %cst_174 = arith.constant dense<0.000000e+00> : vector<32x64xf32>
    %456 = tpu.matmul %455, %446, %cst_174 {dimension_numbers = #tpu.dot_dimension_numbers<[1], [0], [0], [1], [0, 0, 1, 1], [], []>} : vector<32x32xbf16>, vector<32x64xbf16>, vector<32x64xf32> -> vector<32x64xf32>
    %457 = arith.truncf %424 : vector<32x32xf32> to vector<32x32xbf16>
    %cst_175 = arith.constant dense<0.000000e+00> : vector<32x64xf32>
    %458 = tpu.matmul %457, %448, %cst_175 {dimension_numbers = #tpu.dot_dimension_numbers<[1], [0], [0], [1], [0, 0, 1, 1], [], []>} : vector<32x32xbf16>, vector<32x64xbf16>, vector<32x64xf32> -> vector<32x64xf32>
    %459 = arith.addf %456, %458 : vector<32x64xf32>
    %460 = vector.broadcast %450 : vector<1x64xf32> to vector<32x64xf32>
    %461 = arith.addf %459, %460 : vector<32x64xf32>
    %cst_176 = arith.constant 0.000000e+00 : f32
    %462 = vector.broadcast %cst_176 : f32 to vector<32x64xf32>
    %463 = arith.maximumf %461, %462 : vector<32x64xf32>
    %464 = arith.truncf %463 : vector<32x64xf32> to vector<32x64xbf16>
    %cst_177 = arith.constant dense<0.000000e+00> : vector<32x32xf32>
    %465 = tpu.matmul %464, %452, %cst_177 {dimension_numbers = #tpu.dot_dimension_numbers<[1], [0], [0], [1], [0, 0, 1, 1], [], []>} : vector<32x64xbf16>, vector<64x32xbf16>, vector<32x32xf32> -> vector<32x32xf32>
    %466 = vector.broadcast %454 : vector<1x32xf32> to vector<32x32xf32>
    %467 = arith.addf %465, %466 : vector<32x32xf32>
    %cst_178 = arith.constant 0.000000e+00 : f32
    %468 = vector.broadcast %cst_178 : f32 to vector<32x32xf32>
    %469 = arith.maximumf %467, %468 : vector<32x32xf32>
    %c1_179 = arith.constant 1 : index
    %c0_180 = arith.constant 0 : index
    %c0_181 = arith.constant 0 : index
    %470 = vector.load %arg18[%c1_179, %c0_180, %c0_181] : memref<5x32x128xbf16, #tpu.memory_space<vmem>>, vector<1x32x128xbf16>
    %471 = vector.shape_cast %470 : vector<1x32x128xbf16> to vector<32x128xbf16>
    %472 = arith.truncf %469 : vector<32x32xf32> to vector<32x32xbf16>
    %cst_182 = arith.constant dense<0.000000e+00> : vector<32x128xf32>
    %473 = tpu.matmul %472, %471, %cst_182 {dimension_numbers = #tpu.dot_dimension_numbers<[1], [0], [0], [1], [0, 0, 1, 1], [], []>} : vector<32x32xbf16>, vector<32x128xbf16>, vector<32x128xf32> -> vector<32x128xf32>
    %c1_183 = arith.constant 1 : index
    %c0_184 = arith.constant 0 : index
    %c0_185 = arith.constant 0 : index
    %474 = vector.load %arg19[%c1_183, %c0_184, %c0_185] : memref<5x1x128xf32, #tpu.memory_space<vmem>>, vector<1x1x128xf32>
    %475 = vector.shape_cast %474 : vector<1x1x128xf32> to vector<1x128xf32>
    %476 = vector.broadcast %475 : vector<1x128xf32> to vector<32x128xf32>
    %477 = arith.addf %473, %476 : vector<32x128xf32>
    %c1_i32 = arith.constant 1 : i32
    %478 = vector.broadcast %c1_i32 : i32 to vector<1x128xi32>
    %479 = arith.cmpi eq, %397, %478 : vector<1x128xi32>
    %480 = arith.negf %477 : vector<32x128xf32>
    %481 = math.exp %480 : vector<32x128xf32>
    %cst_186 = arith.constant 1.000000e+00 : f32
    %482 = vector.broadcast %cst_186 : f32 to vector<32x128xf32>
    %483 = arith.addf %482, %481 : vector<32x128xf32>
    %484 = arith.divf %482, %483 : vector<32x128xf32>
    %cst_187 = arith.constant 0.000000e+00 : f32
    %485 = vector.shape_cast %479 : vector<1x128xi1> to vector<1x128xi1>
    %486 = vector.broadcast %485 : vector<1x128xi1> to vector<32x128xi1>
    %487 = vector.broadcast %cst_187 : f32 to vector<32x128xf32>
    %488 = arith.select %486, %484, %487 : vector<32x128xi1>, vector<32x128xf32>
    %489 = arith.addf %444, %488 : vector<32x128xf32>
    %c2_188 = arith.constant 2 : index
    %c0_189 = arith.constant 0 : index
    %c0_190 = arith.constant 0 : index
    %490 = vector.load %arg13[%c2_188, %c0_189, %c0_190] : memref<5x32x64xbf16, #tpu.memory_space<vmem>>, vector<1x32x64xbf16>
    %491 = vector.shape_cast %490 : vector<1x32x64xbf16> to vector<32x64xbf16>
    %c2_191 = arith.constant 2 : index
    %c0_192 = arith.constant 0 : index
    %c0_193 = arith.constant 0 : index
    %492 = vector.load %arg14[%c2_191, %c0_192, %c0_193] : memref<5x32x64xbf16, #tpu.memory_space<vmem>>, vector<1x32x64xbf16>
    %493 = vector.shape_cast %492 : vector<1x32x64xbf16> to vector<32x64xbf16>
    %c2_194 = arith.constant 2 : index
    %c0_195 = arith.constant 0 : index
    %c0_196 = arith.constant 0 : index
    %494 = vector.load %arg15[%c2_194, %c0_195, %c0_196] : memref<5x1x64xf32, #tpu.memory_space<vmem>>, vector<1x1x64xf32>
    %495 = vector.shape_cast %494 : vector<1x1x64xf32> to vector<1x64xf32>
    %c2_197 = arith.constant 2 : index
    %c0_198 = arith.constant 0 : index
    %c0_199 = arith.constant 0 : index
    %496 = vector.load %arg16[%c2_197, %c0_198, %c0_199] : memref<5x64x32xbf16, #tpu.memory_space<vmem>>, vector<1x64x32xbf16>
    %497 = vector.shape_cast %496 : vector<1x64x32xbf16> to vector<64x32xbf16>
    %c2_200 = arith.constant 2 : index
    %c0_201 = arith.constant 0 : index
    %c0_202 = arith.constant 0 : index
    %498 = vector.load %arg17[%c2_200, %c0_201, %c0_202] : memref<5x1x32xf32, #tpu.memory_space<vmem>>, vector<1x1x32xf32>
    %499 = vector.shape_cast %498 : vector<1x1x32xf32> to vector<1x32xf32>
    %500 = arith.truncf %396 : vector<32x32xf32> to vector<32x32xbf16>
    %cst_203 = arith.constant dense<0.000000e+00> : vector<32x64xf32>
    %501 = tpu.matmul %500, %491, %cst_203 {dimension_numbers = #tpu.dot_dimension_numbers<[1], [0], [0], [1], [0, 0, 1, 1], [], []>} : vector<32x32xbf16>, vector<32x64xbf16>, vector<32x64xf32> -> vector<32x64xf32>
    %502 = arith.truncf %469 : vector<32x32xf32> to vector<32x32xbf16>
    %cst_204 = arith.constant dense<0.000000e+00> : vector<32x64xf32>
    %503 = tpu.matmul %502, %493, %cst_204 {dimension_numbers = #tpu.dot_dimension_numbers<[1], [0], [0], [1], [0, 0, 1, 1], [], []>} : vector<32x32xbf16>, vector<32x64xbf16>, vector<32x64xf32> -> vector<32x64xf32>
    %504 = arith.addf %501, %503 : vector<32x64xf32>
    %505 = vector.broadcast %495 : vector<1x64xf32> to vector<32x64xf32>
    %506 = arith.addf %504, %505 : vector<32x64xf32>
    %cst_205 = arith.constant 0.000000e+00 : f32
    %507 = vector.broadcast %cst_205 : f32 to vector<32x64xf32>
    %508 = arith.maximumf %506, %507 : vector<32x64xf32>
    %509 = arith.truncf %508 : vector<32x64xf32> to vector<32x64xbf16>
    %cst_206 = arith.constant dense<0.000000e+00> : vector<32x32xf32>
    %510 = tpu.matmul %509, %497, %cst_206 {dimension_numbers = #tpu.dot_dimension_numbers<[1], [0], [0], [1], [0, 0, 1, 1], [], []>} : vector<32x64xbf16>, vector<64x32xbf16>, vector<32x32xf32> -> vector<32x32xf32>
    %511 = vector.broadcast %499 : vector<1x32xf32> to vector<32x32xf32>
    %512 = arith.addf %510, %511 : vector<32x32xf32>
    %cst_207 = arith.constant 0.000000e+00 : f32
    %513 = vector.broadcast %cst_207 : f32 to vector<32x32xf32>
    %514 = arith.maximumf %512, %513 : vector<32x32xf32>
    %c2_208 = arith.constant 2 : index
    %c0_209 = arith.constant 0 : index
    %c0_210 = arith.constant 0 : index
    %515 = vector.load %arg18[%c2_208, %c0_209, %c0_210] : memref<5x32x128xbf16, #tpu.memory_space<vmem>>, vector<1x32x128xbf16>
    %516 = vector.shape_cast %515 : vector<1x32x128xbf16> to vector<32x128xbf16>
    %517 = arith.truncf %514 : vector<32x32xf32> to vector<32x32xbf16>
    %cst_211 = arith.constant dense<0.000000e+00> : vector<32x128xf32>
    %518 = tpu.matmul %517, %516, %cst_211 {dimension_numbers = #tpu.dot_dimension_numbers<[1], [0], [0], [1], [0, 0, 1, 1], [], []>} : vector<32x32xbf16>, vector<32x128xbf16>, vector<32x128xf32> -> vector<32x128xf32>
    %c2_212 = arith.constant 2 : index
    %c0_213 = arith.constant 0 : index
    %c0_214 = arith.constant 0 : index
    %519 = vector.load %arg19[%c2_212, %c0_213, %c0_214] : memref<5x1x128xf32, #tpu.memory_space<vmem>>, vector<1x1x128xf32>
    %520 = vector.shape_cast %519 : vector<1x1x128xf32> to vector<1x128xf32>
    %521 = vector.broadcast %520 : vector<1x128xf32> to vector<32x128xf32>
    %522 = arith.addf %518, %521 : vector<32x128xf32>
    %c2_i32 = arith.constant 2 : i32
    %523 = vector.broadcast %c2_i32 : i32 to vector<1x128xi32>
    %524 = arith.cmpi eq, %397, %523 : vector<1x128xi32>
    %525 = arith.negf %522 : vector<32x128xf32>
    %526 = math.exp %525 : vector<32x128xf32>
    %cst_215 = arith.constant 1.000000e+00 : f32
    %527 = vector.broadcast %cst_215 : f32 to vector<32x128xf32>
    %528 = arith.addf %527, %526 : vector<32x128xf32>
    %529 = arith.divf %527, %528 : vector<32x128xf32>
    %cst_216 = arith.constant 0.000000e+00 : f32
    %530 = vector.shape_cast %524 : vector<1x128xi1> to vector<1x128xi1>
    %531 = vector.broadcast %530 : vector<1x128xi1> to vector<32x128xi1>
    %532 = vector.broadcast %cst_216 : f32 to vector<32x128xf32>
    %533 = arith.select %531, %529, %532 : vector<32x128xi1>, vector<32x128xf32>
    %534 = arith.addf %489, %533 : vector<32x128xf32>
    %c3_217 = arith.constant 3 : index
    %c0_218 = arith.constant 0 : index
    %c0_219 = arith.constant 0 : index
    %535 = vector.load %arg13[%c3_217, %c0_218, %c0_219] : memref<5x32x64xbf16, #tpu.memory_space<vmem>>, vector<1x32x64xbf16>
    %536 = vector.shape_cast %535 : vector<1x32x64xbf16> to vector<32x64xbf16>
    %c3_220 = arith.constant 3 : index
    %c0_221 = arith.constant 0 : index
    %c0_222 = arith.constant 0 : index
    %537 = vector.load %arg14[%c3_220, %c0_221, %c0_222] : memref<5x32x64xbf16, #tpu.memory_space<vmem>>, vector<1x32x64xbf16>
    %538 = vector.shape_cast %537 : vector<1x32x64xbf16> to vector<32x64xbf16>
    %c3_223 = arith.constant 3 : index
    %c0_224 = arith.constant 0 : index
    %c0_225 = arith.constant 0 : index
    %539 = vector.load %arg15[%c3_223, %c0_224, %c0_225] : memref<5x1x64xf32, #tpu.memory_space<vmem>>, vector<1x1x64xf32>
    %540 = vector.shape_cast %539 : vector<1x1x64xf32> to vector<1x64xf32>
    %c3_226 = arith.constant 3 : index
    %c0_227 = arith.constant 0 : index
    %c0_228 = arith.constant 0 : index
    %541 = vector.load %arg16[%c3_226, %c0_227, %c0_228] : memref<5x64x32xbf16, #tpu.memory_space<vmem>>, vector<1x64x32xbf16>
    %542 = vector.shape_cast %541 : vector<1x64x32xbf16> to vector<64x32xbf16>
    %c3_229 = arith.constant 3 : index
    %c0_230 = arith.constant 0 : index
    %c0_231 = arith.constant 0 : index
    %543 = vector.load %arg17[%c3_229, %c0_230, %c0_231] : memref<5x1x32xf32, #tpu.memory_space<vmem>>, vector<1x1x32xf32>
    %544 = vector.shape_cast %543 : vector<1x1x32xf32> to vector<1x32xf32>
    %545 = arith.truncf %396 : vector<32x32xf32> to vector<32x32xbf16>
    %cst_232 = arith.constant dense<0.000000e+00> : vector<32x64xf32>
    %546 = tpu.matmul %545, %536, %cst_232 {dimension_numbers = #tpu.dot_dimension_numbers<[1], [0], [0], [1], [0, 0, 1, 1], [], []>} : vector<32x32xbf16>, vector<32x64xbf16>, vector<32x64xf32> -> vector<32x64xf32>
    %547 = arith.truncf %514 : vector<32x32xf32> to vector<32x32xbf16>
    %cst_233 = arith.constant dense<0.000000e+00> : vector<32x64xf32>
    %548 = tpu.matmul %547, %538, %cst_233 {dimension_numbers = #tpu.dot_dimension_numbers<[1], [0], [0], [1], [0, 0, 1, 1], [], []>} : vector<32x32xbf16>, vector<32x64xbf16>, vector<32x64xf32> -> vector<32x64xf32>
    %549 = arith.addf %546, %548 : vector<32x64xf32>
    %550 = vector.broadcast %540 : vector<1x64xf32> to vector<32x64xf32>
    %551 = arith.addf %549, %550 : vector<32x64xf32>
    %cst_234 = arith.constant 0.000000e+00 : f32
    %552 = vector.broadcast %cst_234 : f32 to vector<32x64xf32>
    %553 = arith.maximumf %551, %552 : vector<32x64xf32>
    %554 = arith.truncf %553 : vector<32x64xf32> to vector<32x64xbf16>
    %cst_235 = arith.constant dense<0.000000e+00> : vector<32x32xf32>
    %555 = tpu.matmul %554, %542, %cst_235 {dimension_numbers = #tpu.dot_dimension_numbers<[1], [0], [0], [1], [0, 0, 1, 1], [], []>} : vector<32x64xbf16>, vector<64x32xbf16>, vector<32x32xf32> -> vector<32x32xf32>
    %556 = vector.broadcast %544 : vector<1x32xf32> to vector<32x32xf32>
    %557 = arith.addf %555, %556 : vector<32x32xf32>
    %cst_236 = arith.constant 0.000000e+00 : f32
    %558 = vector.broadcast %cst_236 : f32 to vector<32x32xf32>
    %559 = arith.maximumf %557, %558 : vector<32x32xf32>
    %c3_237 = arith.constant 3 : index
    %c0_238 = arith.constant 0 : index
    %c0_239 = arith.constant 0 : index
    %560 = vector.load %arg18[%c3_237, %c0_238, %c0_239] : memref<5x32x128xbf16, #tpu.memory_space<vmem>>, vector<1x32x128xbf16>
    %561 = vector.shape_cast %560 : vector<1x32x128xbf16> to vector<32x128xbf16>
    %562 = arith.truncf %559 : vector<32x32xf32> to vector<32x32xbf16>
    %cst_240 = arith.constant dense<0.000000e+00> : vector<32x128xf32>
    %563 = tpu.matmul %562, %561, %cst_240 {dimension_numbers = #tpu.dot_dimension_numbers<[1], [0], [0], [1], [0, 0, 1, 1], [], []>} : vector<32x32xbf16>, vector<32x128xbf16>, vector<32x128xf32> -> vector<32x128xf32>
    %c3_241 = arith.constant 3 : index
    %c0_242 = arith.constant 0 : index
    %c0_243 = arith.constant 0 : index
    %564 = vector.load %arg19[%c3_241, %c0_242, %c0_243] : memref<5x1x128xf32, #tpu.memory_space<vmem>>, vector<1x1x128xf32>
    %565 = vector.shape_cast %564 : vector<1x1x128xf32> to vector<1x128xf32>
    %566 = vector.broadcast %565 : vector<1x128xf32> to vector<32x128xf32>
    %567 = arith.addf %563, %566 : vector<32x128xf32>
    %c3_i32 = arith.constant 3 : i32
    %568 = vector.broadcast %c3_i32 : i32 to vector<1x128xi32>
    %569 = arith.cmpi eq, %397, %568 : vector<1x128xi32>
    %570 = arith.negf %567 : vector<32x128xf32>
    %571 = math.exp %570 : vector<32x128xf32>
    %cst_244 = arith.constant 1.000000e+00 : f32
    %572 = vector.broadcast %cst_244 : f32 to vector<32x128xf32>
    %573 = arith.addf %572, %571 : vector<32x128xf32>
    %574 = arith.divf %572, %573 : vector<32x128xf32>
    %cst_245 = arith.constant 0.000000e+00 : f32
    %575 = vector.shape_cast %569 : vector<1x128xi1> to vector<1x128xi1>
    %576 = vector.broadcast %575 : vector<1x128xi1> to vector<32x128xi1>
    %577 = vector.broadcast %cst_245 : f32 to vector<32x128xf32>
    %578 = arith.select %576, %574, %577 : vector<32x128xi1>, vector<32x128xf32>
    %579 = arith.addf %534, %578 : vector<32x128xf32>
    %c4_246 = arith.constant 4 : index
    %c0_247 = arith.constant 0 : index
    %c0_248 = arith.constant 0 : index
    %580 = vector.load %arg13[%c4_246, %c0_247, %c0_248] : memref<5x32x64xbf16, #tpu.memory_space<vmem>>, vector<1x32x64xbf16>
    %581 = vector.shape_cast %580 : vector<1x32x64xbf16> to vector<32x64xbf16>
    %c4_249 = arith.constant 4 : index
    %c0_250 = arith.constant 0 : index
    %c0_251 = arith.constant 0 : index
    %582 = vector.load %arg14[%c4_249, %c0_250, %c0_251] : memref<5x32x64xbf16, #tpu.memory_space<vmem>>, vector<1x32x64xbf16>
    %583 = vector.shape_cast %582 : vector<1x32x64xbf16> to vector<32x64xbf16>
    %c4_252 = arith.constant 4 : index
    %c0_253 = arith.constant 0 : index
    %c0_254 = arith.constant 0 : index
    %584 = vector.load %arg15[%c4_252, %c0_253, %c0_254] : memref<5x1x64xf32, #tpu.memory_space<vmem>>, vector<1x1x64xf32>
    %585 = vector.shape_cast %584 : vector<1x1x64xf32> to vector<1x64xf32>
    %c4_255 = arith.constant 4 : index
    %c0_256 = arith.constant 0 : index
    %c0_257 = arith.constant 0 : index
    %586 = vector.load %arg16[%c4_255, %c0_256, %c0_257] : memref<5x64x32xbf16, #tpu.memory_space<vmem>>, vector<1x64x32xbf16>
    %587 = vector.shape_cast %586 : vector<1x64x32xbf16> to vector<64x32xbf16>
    %c4_258 = arith.constant 4 : index
    %c0_259 = arith.constant 0 : index
    %c0_260 = arith.constant 0 : index
    %588 = vector.load %arg17[%c4_258, %c0_259, %c0_260] : memref<5x1x32xf32, #tpu.memory_space<vmem>>, vector<1x1x32xf32>
    %589 = vector.shape_cast %588 : vector<1x1x32xf32> to vector<1x32xf32>
    %590 = arith.truncf %396 : vector<32x32xf32> to vector<32x32xbf16>
    %cst_261 = arith.constant dense<0.000000e+00> : vector<32x64xf32>
    %591 = tpu.matmul %590, %581, %cst_261 {dimension_numbers = #tpu.dot_dimension_numbers<[1], [0], [0], [1], [0, 0, 1, 1], [], []>} : vector<32x32xbf16>, vector<32x64xbf16>, vector<32x64xf32> -> vector<32x64xf32>
    %592 = arith.truncf %559 : vector<32x32xf32> to vector<32x32xbf16>
    %cst_262 = arith.constant dense<0.000000e+00> : vector<32x64xf32>
    %593 = tpu.matmul %592, %583, %cst_262 {dimension_numbers = #tpu.dot_dimension_numbers<[1], [0], [0], [1], [0, 0, 1, 1], [], []>} : vector<32x32xbf16>, vector<32x64xbf16>, vector<32x64xf32> -> vector<32x64xf32>
    %594 = arith.addf %591, %593 : vector<32x64xf32>
    %595 = vector.broadcast %585 : vector<1x64xf32> to vector<32x64xf32>
    %596 = arith.addf %594, %595 : vector<32x64xf32>
    %cst_263 = arith.constant 0.000000e+00 : f32
    %597 = vector.broadcast %cst_263 : f32 to vector<32x64xf32>
    %598 = arith.maximumf %596, %597 : vector<32x64xf32>
    %599 = arith.truncf %598 : vector<32x64xf32> to vector<32x64xbf16>
    %cst_264 = arith.constant dense<0.000000e+00> : vector<32x32xf32>
    %600 = tpu.matmul %599, %587, %cst_264 {dimension_numbers = #tpu.dot_dimension_numbers<[1], [0], [0], [1], [0, 0, 1, 1], [], []>} : vector<32x64xbf16>, vector<64x32xbf16>, vector<32x32xf32> -> vector<32x32xf32>
    %601 = vector.broadcast %589 : vector<1x32xf32> to vector<32x32xf32>
    %602 = arith.addf %600, %601 : vector<32x32xf32>
    %cst_265 = arith.constant 0.000000e+00 : f32
    %603 = vector.broadcast %cst_265 : f32 to vector<32x32xf32>
    %604 = arith.maximumf %602, %603 : vector<32x32xf32>
    %c4_266 = arith.constant 4 : index
    %c0_267 = arith.constant 0 : index
    %c0_268 = arith.constant 0 : index
    %605 = vector.load %arg18[%c4_266, %c0_267, %c0_268] : memref<5x32x128xbf16, #tpu.memory_space<vmem>>, vector<1x32x128xbf16>
    %606 = vector.shape_cast %605 : vector<1x32x128xbf16> to vector<32x128xbf16>
    %607 = arith.truncf %604 : vector<32x32xf32> to vector<32x32xbf16>
    %cst_269 = arith.constant dense<0.000000e+00> : vector<32x128xf32>
    %608 = tpu.matmul %607, %606, %cst_269 {dimension_numbers = #tpu.dot_dimension_numbers<[1], [0], [0], [1], [0, 0, 1, 1], [], []>} : vector<32x32xbf16>, vector<32x128xbf16>, vector<32x128xf32> -> vector<32x128xf32>
    %c4_270 = arith.constant 4 : index
    %c0_271 = arith.constant 0 : index
    %c0_272 = arith.constant 0 : index
    %609 = vector.load %arg19[%c4_270, %c0_271, %c0_272] : memref<5x1x128xf32, #tpu.memory_space<vmem>>, vector<1x1x128xf32>
    %610 = vector.shape_cast %609 : vector<1x1x128xf32> to vector<1x128xf32>
    %611 = vector.broadcast %610 : vector<1x128xf32> to vector<32x128xf32>
    %612 = arith.addf %608, %611 : vector<32x128xf32>
    %c4_i32 = arith.constant 4 : i32
    %613 = vector.broadcast %c4_i32 : i32 to vector<1x128xi32>
    %614 = arith.cmpi eq, %397, %613 : vector<1x128xi32>
    %615 = arith.negf %612 : vector<32x128xf32>
    %616 = math.exp %615 : vector<32x128xf32>
    %cst_273 = arith.constant 1.000000e+00 : f32
    %617 = vector.broadcast %cst_273 : f32 to vector<32x128xf32>
    %618 = arith.addf %617, %616 : vector<32x128xf32>
    %619 = arith.divf %617, %618 : vector<32x128xf32>
    %cst_274 = arith.constant 0.000000e+00 : f32
    %620 = vector.shape_cast %614 : vector<1x128xi1> to vector<1x128xi1>
    %621 = vector.broadcast %620 : vector<1x128xi1> to vector<32x128xi1>
    %622 = vector.broadcast %cst_274 : f32 to vector<32x128xf32>
    %623 = arith.select %621, %619, %622 : vector<32x128xi1>, vector<32x128xf32>
    %624 = arith.addf %579, %623 : vector<32x128xf32>
    %c0_275 = arith.constant 0 : index
    %c0_276 = arith.constant 0 : index
    %625 = vector.load %arg20[%c0_275, %c0_276] : memref<32x64xbf16, #tpu.memory_space<vmem>>, vector<32x64xbf16>
    %c0_277 = arith.constant 0 : index
    %c0_278 = arith.constant 0 : index
    %626 = vector.load %arg21[%c0_277, %c0_278] : memref<32x64xbf16, #tpu.memory_space<vmem>>, vector<32x64xbf16>
    %c0_279 = arith.constant 0 : index
    %c0_280 = arith.constant 0 : index
    %627 = vector.load %arg22[%c0_279, %c0_280] : memref<1x64xf32, #tpu.memory_space<vmem>>, vector<1x64xf32>
    %c0_281 = arith.constant 0 : index
    %c0_282 = arith.constant 0 : index
    %628 = vector.load %arg23[%c0_281, %c0_282] : memref<64x32xbf16, #tpu.memory_space<vmem>>, vector<64x32xbf16>
    %c0_283 = arith.constant 0 : index
    %c0_284 = arith.constant 0 : index
    %629 = vector.load %arg24[%c0_283, %c0_284] : memref<1x32xf32, #tpu.memory_space<vmem>>, vector<1x32xf32>
    %630 = arith.truncf %396 : vector<32x32xf32> to vector<32x32xbf16>
    %cst_285 = arith.constant dense<0.000000e+00> : vector<32x64xf32>
    %631 = tpu.matmul %630, %625, %cst_285 {dimension_numbers = #tpu.dot_dimension_numbers<[1], [0], [0], [1], [0, 0, 1, 1], [], []>} : vector<32x32xbf16>, vector<32x64xbf16>, vector<32x64xf32> -> vector<32x64xf32>
    %632 = arith.truncf %604 : vector<32x32xf32> to vector<32x32xbf16>
    %cst_286 = arith.constant dense<0.000000e+00> : vector<32x64xf32>
    %633 = tpu.matmul %632, %626, %cst_286 {dimension_numbers = #tpu.dot_dimension_numbers<[1], [0], [0], [1], [0, 0, 1, 1], [], []>} : vector<32x32xbf16>, vector<32x64xbf16>, vector<32x64xf32> -> vector<32x64xf32>
    %634 = arith.addf %631, %633 : vector<32x64xf32>
    %635 = vector.broadcast %627 : vector<1x64xf32> to vector<32x64xf32>
    %636 = arith.addf %634, %635 : vector<32x64xf32>
    %cst_287 = arith.constant 0.000000e+00 : f32
    %637 = vector.broadcast %cst_287 : f32 to vector<32x64xf32>
    %638 = arith.maximumf %636, %637 : vector<32x64xf32>
    %639 = arith.truncf %638 : vector<32x64xf32> to vector<32x64xbf16>
    %cst_288 = arith.constant dense<0.000000e+00> : vector<32x32xf32>
    %640 = tpu.matmul %639, %628, %cst_288 {dimension_numbers = #tpu.dot_dimension_numbers<[1], [0], [0], [1], [0, 0, 1, 1], [], []>} : vector<32x64xbf16>, vector<64x32xbf16>, vector<32x32xf32> -> vector<32x32xf32>
    %641 = vector.broadcast %629 : vector<1x32xf32> to vector<32x32xf32>
    %642 = arith.addf %640, %641 : vector<32x32xf32>
    %cst_289 = arith.constant 0.000000e+00 : f32
    %643 = vector.broadcast %cst_289 : f32 to vector<32x32xf32>
    %644 = arith.maximumf %642, %643 : vector<32x32xf32>
    %c0_290 = arith.constant 0 : index
    %c0_291 = arith.constant 0 : index
    %645 = vector.load %arg25[%c0_290, %c0_291] : memref<32x128xbf16, #tpu.memory_space<vmem>>, vector<32x128xbf16>
    %646 = arith.truncf %644 : vector<32x32xf32> to vector<32x32xbf16>
    %cst_292 = arith.constant dense<0.000000e+00> : vector<32x128xf32>
    %647 = tpu.matmul %646, %645, %cst_292 {dimension_numbers = #tpu.dot_dimension_numbers<[1], [0], [0], [1], [0, 0, 1, 1], [], []>} : vector<32x32xbf16>, vector<32x128xbf16>, vector<32x128xf32> -> vector<32x128xf32>
    %648 = arith.addf %624, %647 : vector<32x128xf32>
    %c0_293 = arith.constant 0 : index
    %c0_294 = arith.constant 0 : index
    %649 = vector.load %arg26[%c0_293, %c0_294] : memref<1x128xf32, #tpu.memory_space<vmem>>, vector<1x128xf32>
    %650 = vector.broadcast %649 : vector<1x128xf32> to vector<32x128xf32>
    %651 = arith.addf %648, %650 : vector<32x128xf32>
    %c0_295 = arith.constant 0 : index
    %c0_296 = arith.constant 0 : index
    %652 = vector.load %arg27[%c0_295, %c0_296] : memref<32x64xbf16, #tpu.memory_space<vmem>>, vector<32x64xbf16>
    %c0_297 = arith.constant 0 : index
    %c0_298 = arith.constant 0 : index
    %653 = vector.load %arg28[%c0_297, %c0_298] : memref<32x64xbf16, #tpu.memory_space<vmem>>, vector<32x64xbf16>
    %c0_299 = arith.constant 0 : index
    %c0_300 = arith.constant 0 : index
    %654 = vector.load %arg29[%c0_299, %c0_300] : memref<1x64xf32, #tpu.memory_space<vmem>>, vector<1x64xf32>
    %c0_301 = arith.constant 0 : index
    %c0_302 = arith.constant 0 : index
    %655 = vector.load %arg30[%c0_301, %c0_302] : memref<64x32xbf16, #tpu.memory_space<vmem>>, vector<64x32xbf16>
    %c0_303 = arith.constant 0 : index
    %c0_304 = arith.constant 0 : index
    %656 = vector.load %arg31[%c0_303, %c0_304] : memref<1x32xf32, #tpu.memory_space<vmem>>, vector<1x32xf32>
    %657 = arith.truncf %396 : vector<32x32xf32> to vector<32x32xbf16>
    %cst_305 = arith.constant dense<0.000000e+00> : vector<32x64xf32>
    %658 = tpu.matmul %657, %652, %cst_305 {dimension_numbers = #tpu.dot_dimension_numbers<[1], [0], [0], [1], [0, 0, 1, 1], [], []>} : vector<32x32xbf16>, vector<32x64xbf16>, vector<32x64xf32> -> vector<32x64xf32>
    %659 = arith.truncf %644 : vector<32x32xf32> to vector<32x32xbf16>
    %cst_306 = arith.constant dense<0.000000e+00> : vector<32x64xf32>
    %660 = tpu.matmul %659, %653, %cst_306 {dimension_numbers = #tpu.dot_dimension_numbers<[1], [0], [0], [1], [0, 0, 1, 1], [], []>} : vector<32x32xbf16>, vector<32x64xbf16>, vector<32x64xf32> -> vector<32x64xf32>
    %661 = arith.addf %658, %660 : vector<32x64xf32>
    %662 = vector.broadcast %654 : vector<1x64xf32> to vector<32x64xf32>
    %663 = arith.addf %661, %662 : vector<32x64xf32>
    %cst_307 = arith.constant 0.000000e+00 : f32
    %664 = vector.broadcast %cst_307 : f32 to vector<32x64xf32>
    %665 = arith.maximumf %663, %664 : vector<32x64xf32>
    %666 = arith.truncf %665 : vector<32x64xf32> to vector<32x64xbf16>
    %cst_308 = arith.constant dense<0.000000e+00> : vector<32x32xf32>
    %667 = tpu.matmul %666, %655, %cst_308 {dimension_numbers = #tpu.dot_dimension_numbers<[1], [0], [0], [1], [0, 0, 1, 1], [], []>} : vector<32x64xbf16>, vector<64x32xbf16>, vector<32x32xf32> -> vector<32x32xf32>
    %668 = vector.broadcast %656 : vector<1x32xf32> to vector<32x32xf32>
    %669 = arith.addf %667, %668 : vector<32x32xf32>
    %cst_309 = arith.constant 0.000000e+00 : f32
    %670 = vector.broadcast %cst_309 : f32 to vector<32x32xf32>
    %671 = arith.maximumf %669, %670 : vector<32x32xf32>
    %c0_310 = arith.constant 0 : index
    %c0_311 = arith.constant 0 : index
    %672 = vector.load %arg32[%c0_310, %c0_311] : memref<32x128xbf16, #tpu.memory_space<vmem>>, vector<32x128xbf16>
    %673 = arith.truncf %671 : vector<32x32xf32> to vector<32x32xbf16>
    %cst_312 = arith.constant dense<0.000000e+00> : vector<32x128xf32>
    %674 = tpu.matmul %673, %672, %cst_312 {dimension_numbers = #tpu.dot_dimension_numbers<[1], [0], [0], [1], [0, 0, 1, 1], [], []>} : vector<32x32xbf16>, vector<32x128xbf16>, vector<32x128xf32> -> vector<32x128xf32>
    %675 = arith.addf %651, %674 : vector<32x128xf32>
    %c0_313 = arith.constant 0 : index
    %c0_314 = arith.constant 0 : index
    %676 = vector.load %arg33[%c0_313, %c0_314] : memref<1x128xf32, #tpu.memory_space<vmem>>, vector<1x128xf32>
    %677 = vector.broadcast %676 : vector<1x128xf32> to vector<32x128xf32>
    %678 = arith.addf %675, %677 : vector<32x128xf32>
    %c0_315 = arith.constant 0 : index
    %c0_316 = arith.constant 0 : index
    %679 = vector.load %arg34[%c0_315, %c0_316] : memref<32x64xbf16, #tpu.memory_space<vmem>>, vector<32x64xbf16>
    %c0_317 = arith.constant 0 : index
    %c0_318 = arith.constant 0 : index
    %680 = vector.load %arg35[%c0_317, %c0_318] : memref<32x64xbf16, #tpu.memory_space<vmem>>, vector<32x64xbf16>
    %c0_319 = arith.constant 0 : index
    %c0_320 = arith.constant 0 : index
    %681 = vector.load %arg36[%c0_319, %c0_320] : memref<1x64xf32, #tpu.memory_space<vmem>>, vector<1x64xf32>
    %c0_321 = arith.constant 0 : index
    %c0_322 = arith.constant 0 : index
    %682 = vector.load %arg37[%c0_321, %c0_322] : memref<64x32xbf16, #tpu.memory_space<vmem>>, vector<64x32xbf16>
    %c0_323 = arith.constant 0 : index
    %c0_324 = arith.constant 0 : index
    %683 = vector.load %arg38[%c0_323, %c0_324] : memref<1x32xf32, #tpu.memory_space<vmem>>, vector<1x32xf32>
    %684 = arith.truncf %396 : vector<32x32xf32> to vector<32x32xbf16>
    %cst_325 = arith.constant dense<0.000000e+00> : vector<32x64xf32>
    %685 = tpu.matmul %684, %679, %cst_325 {dimension_numbers = #tpu.dot_dimension_numbers<[1], [0], [0], [1], [0, 0, 1, 1], [], []>} : vector<32x32xbf16>, vector<32x64xbf16>, vector<32x64xf32> -> vector<32x64xf32>
    %686 = arith.truncf %671 : vector<32x32xf32> to vector<32x32xbf16>
    %cst_326 = arith.constant dense<0.000000e+00> : vector<32x64xf32>
    %687 = tpu.matmul %686, %680, %cst_326 {dimension_numbers = #tpu.dot_dimension_numbers<[1], [0], [0], [1], [0, 0, 1, 1], [], []>} : vector<32x32xbf16>, vector<32x64xbf16>, vector<32x64xf32> -> vector<32x64xf32>
    %688 = arith.addf %685, %687 : vector<32x64xf32>
    %689 = vector.broadcast %681 : vector<1x64xf32> to vector<32x64xf32>
    %690 = arith.addf %688, %689 : vector<32x64xf32>
    %cst_327 = arith.constant 0.000000e+00 : f32
    %691 = vector.broadcast %cst_327 : f32 to vector<32x64xf32>
    %692 = arith.maximumf %690, %691 : vector<32x64xf32>
    %693 = arith.truncf %692 : vector<32x64xf32> to vector<32x64xbf16>
    %cst_328 = arith.constant dense<0.000000e+00> : vector<32x32xf32>
    %694 = tpu.matmul %693, %682, %cst_328 {dimension_numbers = #tpu.dot_dimension_numbers<[1], [0], [0], [1], [0, 0, 1, 1], [], []>} : vector<32x64xbf16>, vector<64x32xbf16>, vector<32x32xf32> -> vector<32x32xf32>
    %695 = vector.broadcast %683 : vector<1x32xf32> to vector<32x32xf32>
    %696 = arith.addf %694, %695 : vector<32x32xf32>
    %cst_329 = arith.constant 0.000000e+00 : f32
    %697 = vector.broadcast %cst_329 : f32 to vector<32x32xf32>
    %698 = arith.maximumf %696, %697 : vector<32x32xf32>
    %c0_330 = arith.constant 0 : index
    %c0_331 = arith.constant 0 : index
    %699 = vector.load %arg39[%c0_330, %c0_331] : memref<32x128xbf16, #tpu.memory_space<vmem>>, vector<32x128xbf16>
    %700 = arith.truncf %698 : vector<32x32xf32> to vector<32x32xbf16>
    %cst_332 = arith.constant dense<0.000000e+00> : vector<32x128xf32>
    %701 = tpu.matmul %700, %699, %cst_332 {dimension_numbers = #tpu.dot_dimension_numbers<[1], [0], [0], [1], [0, 0, 1, 1], [], []>} : vector<32x32xbf16>, vector<32x128xbf16>, vector<32x128xf32> -> vector<32x128xf32>
    %702 = arith.addf %678, %701 : vector<32x128xf32>
    %c0_333 = arith.constant 0 : index
    %c0_334 = arith.constant 0 : index
    %703 = vector.load %arg40[%c0_333, %c0_334] : memref<1x128xf32, #tpu.memory_space<vmem>>, vector<1x128xf32>
    %704 = vector.broadcast %703 : vector<1x128xf32> to vector<32x128xf32>
    %705 = arith.addf %702, %704 : vector<32x128xf32>
    %c0_335 = arith.constant 0 : index
    %c0_336 = arith.constant 0 : index
    %706 = vector.load %arg41[%c0_335, %c0_336] : memref<32x128xf32, #tpu.memory_space<vmem>>, vector<32x128xf32>
    tpu.vector_store %arg41[%c0_335, %c0_336], %705 {strides = array<i32>} : memref<32x128xf32, #tpu.memory_space<vmem>>, vector<32x128xf32>,
    return
  }
  func.func @transform_0(%arg0: i32) -> (i32, i32) {
    %c0_i32 = arith.constant 0 : i32
    %c0_i32_0 = arith.constant 0 : i32
    %c0_i32_1 = arith.constant 0 : i32
    return %c0_i32, %c0_i32_0 : i32, i32
  }
  func.func @transform_1(%arg0: i32) -> (i32, i32) {
    %c0_i32 = arith.constant 0 : i32
    %c0_i32_0 = arith.constant 0 : i32
    %c0_i32_1 = arith.constant 0 : i32
    return %c0_i32, %c0_i32_0 : i32, i32
  }
  func.func @transform_2(%arg0: i32) -> (i32, i32) {
    %c0_i32 = arith.constant 0 : i32
    %c0_i32_0 = arith.constant 0 : i32
    %c0_i32_1 = arith.constant 0 : i32
    return %c0_i32, %c0_i32_0 : i32, i32
  }
  func.func @transform_3(%arg0: i32) -> (i32, i32) {
    %c0_i32 = arith.constant 0 : i32
    %c0_i32_0 = arith.constant 0 : i32
    %c0_i32_1 = arith.constant 0 : i32
    return %c0_i32, %c0_i32_0 : i32, i32
  }
  func.func @transform_4(%arg0: i32) -> (i32, i32) {
    %c0_i32 = arith.constant 0 : i32
    %c0_i32_0 = arith.constant 0 : i32
    %c0_i32_1 = arith.constant 0 : i32
    return %c0_i32, %c0_i32_0 : i32, i32
  }
  func.func @transform_5(%arg0: i32) -> (i32, i32, i32) {
    %c0_i32 = arith.constant 0 : i32
    %c0_i32_0 = arith.constant 0 : i32
    %c0_i32_1 = arith.constant 0 : i32
    %c0_i32_2 = arith.constant 0 : i32
    return %c0_i32, %c0_i32_0, %c0_i32_1 : i32, i32, i32
  }
  func.func @transform_6(%arg0: i32) -> (i32, i32, i32) {
    %c0_i32 = arith.constant 0 : i32
    %c0_i32_0 = arith.constant 0 : i32
    %c0_i32_1 = arith.constant 0 : i32
    %c0_i32_2 = arith.constant 0 : i32
    return %c0_i32, %c0_i32_0, %c0_i32_1 : i32, i32, i32
  }
  func.func @transform_7(%arg0: i32) -> (i32, i32, i32) {
    %c0_i32 = arith.constant 0 : i32
    %c0_i32_0 = arith.constant 0 : i32
    %c0_i32_1 = arith.constant 0 : i32
    %c0_i32_2 = arith.constant 0 : i32
    return %c0_i32, %c0_i32_0, %c0_i32_1 : i32, i32, i32
  }
  func.func @transform_8(%arg0: i32) -> (i32, i32, i32) {
    %c0_i32 = arith.constant 0 : i32
    %c0_i32_0 = arith.constant 0 : i32
    %c0_i32_1 = arith.constant 0 : i32
    %c0_i32_2 = arith.constant 0 : i32
    return %c0_i32, %c0_i32_0, %c0_i32_1 : i32, i32, i32
  }
  func.func @transform_9(%arg0: i32) -> (i32, i32, i32) {
    %c0_i32 = arith.constant 0 : i32
    %c0_i32_0 = arith.constant 0 : i32
    %c0_i32_1 = arith.constant 0 : i32
    %c0_i32_2 = arith.constant 0 : i32
    return %c0_i32, %c0_i32_0, %c0_i32_1 : i32, i32, i32
  }
  func.func @transform_10(%arg0: i32) -> (i32, i32, i32) {
    %c0_i32 = arith.constant 0 : i32
    %c0_i32_0 = arith.constant 0 : i32
    %c0_i32_1 = arith.constant 0 : i32
    %c0_i32_2 = arith.constant 0 : i32
    return %c0_i32, %c0_i32_0, %c0_i32_1 : i32, i32, i32
  }
  func.func @transform_11(%arg0: i32) -> (i32, i32, i32) {
    %c0_i32 = arith.constant 0 : i32
    %c0_i32_0 = arith.constant 0 : i32
    %c0_i32_1 = arith.constant 0 : i32
    %c0_i32_2 = arith.constant 0 : i32
    return %c0_i32, %c0_i32_0, %c0_i32_1 : i32, i32, i32
  }
  func.func @transform_12(%arg0: i32) -> (i32, i32, i32) {
    %c0_i32 = arith.constant 0 : i32
    %c0_i32_0 = arith.constant 0 : i32
    %c0_i32_1 = arith.constant 0 : i32
    %c0_i32_2 = arith.constant 0 : i32
    return %c0_i32, %c0_i32_0, %c0_i32_1 : i32, i32, i32
  }
  func.func @transform_13(%arg0: i32) -> (i32, i32, i32) {
    %c0_i32 = arith.constant 0 : i32
    %c0_i32_0 = arith.constant 0 : i32
    %c0_i32_1 = arith.constant 0 : i32
    %c0_i32_2 = arith.constant 0 : i32
    return %c0_i32, %c0_i32_0, %c0_i32_1 : i32, i32, i32
  }
  func.func @transform_14(%arg0: i32) -> (i32, i32, i32) {
    %c0_i32 = arith.constant 0 : i32
    %c0_i32_0 = arith.constant 0 : i32
    %c0_i32_1 = arith.constant 0 : i32
    %c0_i32_2 = arith.constant 0 : i32
    return %c0_i32, %c0_i32_0, %c0_i32_1 : i32, i32, i32
  }
  func.func @transform_15(%arg0: i32) -> (i32, i32, i32) {
    %c0_i32 = arith.constant 0 : i32
    %c0_i32_0 = arith.constant 0 : i32
    %c0_i32_1 = arith.constant 0 : i32
    %c0_i32_2 = arith.constant 0 : i32
    return %c0_i32, %c0_i32_0, %c0_i32_1 : i32, i32, i32
  }
  func.func @transform_16(%arg0: i32) -> (i32, i32, i32) {
    %c0_i32 = arith.constant 0 : i32
    %c0_i32_0 = arith.constant 0 : i32
    %c0_i32_1 = arith.constant 0 : i32
    %c0_i32_2 = arith.constant 0 : i32
    return %c0_i32, %c0_i32_0, %c0_i32_1 : i32, i32, i32
  }
  func.func @transform_17(%arg0: i32) -> (i32, i32, i32) {
    %c0_i32 = arith.constant 0 : i32
    %c0_i32_0 = arith.constant 0 : i32
    %c0_i32_1 = arith.constant 0 : i32
    %c0_i32_2 = arith.constant 0 : i32
    return %c0_i32, %c0_i32_0, %c0_i32_1 : i32, i32, i32
  }
  func.func @transform_18(%arg0: i32) -> (i32, i32, i32) {
    %c0_i32 = arith.constant 0 : i32
    %c0_i32_0 = arith.constant 0 : i32
    %c0_i32_1 = arith.constant 0 : i32
    %c0_i32_2 = arith.constant 0 : i32
    return %c0_i32, %c0_i32_0, %c0_i32_1 : i32, i32, i32
  }
  func.func @transform_19(%arg0: i32) -> (i32, i32) {
    %c0_i32 = arith.constant 0 : i32
    %c0_i32_0 = arith.constant 0 : i32
    %c0_i32_1 = arith.constant 0 : i32
    return %c0_i32, %c0_i32_0 : i32, i32
  }
  func.func @transform_20(%arg0: i32) -> (i32, i32) {
    %c0_i32 = arith.constant 0 : i32
    %c0_i32_0 = arith.constant 0 : i32
    %c0_i32_1 = arith.constant 0 : i32
    return %c0_i32, %c0_i32_0 : i32, i32
  }
  func.func @transform_21(%arg0: i32) -> (i32, i32) {
    %c0_i32 = arith.constant 0 : i32
    %c0_i32_0 = arith.constant 0 : i32
    %c0_i32_1 = arith.constant 0 : i32
    return %c0_i32, %c0_i32_0 : i32, i32
  }
  func.func @transform_22(%arg0: i32) -> (i32, i32) {
    %c0_i32 = arith.constant 0 : i32
    %c0_i32_0 = arith.constant 0 : i32
    %c0_i32_1 = arith.constant 0 : i32
    return %c0_i32, %c0_i32_0 : i32, i32
  }
  func.func @transform_23(%arg0: i32) -> (i32, i32) {
    %c0_i32 = arith.constant 0 : i32
    %c0_i32_0 = arith.constant 0 : i32
    %c0_i32_1 = arith.constant 0 : i32
    return %c0_i32, %c0_i32_0 : i32, i32
  }
  func.func @transform_24(%arg0: i32) -> (i32, i32) {
    %c0_i32 = arith.constant 0 : i32
    %c0_i32_0 = arith.constant 0 : i32
    %c0_i32_1 = arith.constant 0 : i32
    return %c0_i32, %c0_i32_0 : i32, i32
  }
  func.func @transform_25(%arg0: i32) -> (i32, i32) {
    %c0_i32 = arith.constant 0 : i32
    %c0_i32_0 = arith.constant 0 : i32
    %c0_i32_1 = arith.constant 0 : i32
    return %c0_i32, %c0_i32_0 : i32, i32
  }
  func.func @transform_26(%arg0: i32) -> (i32, i32) {
    %c0_i32 = arith.constant 0 : i32
    %c0_i32_0 = arith.constant 0 : i32
    %c0_i32_1 = arith.constant 0 : i32
    return %c0_i32, %c0_i32_0 : i32, i32
  }
  func.func @transform_27(%arg0: i32) -> (i32, i32) {
    %c0_i32 = arith.constant 0 : i32
    %c0_i32_0 = arith.constant 0 : i32
    %c0_i32_1 = arith.constant 0 : i32
    return %c0_i32, %c0_i32_0 : i32, i32
  }
  func.func @transform_28(%arg0: i32) -> (i32, i32) {
    %c0_i32 = arith.constant 0 : i32
    %c0_i32_0 = arith.constant 0 : i32
    %c0_i32_1 = arith.constant 0 : i32
    return %c0_i32, %c0_i32_0 : i32, i32
  }
  func.func @transform_29(%arg0: i32) -> (i32, i32) {
    %c0_i32 = arith.constant 0 : i32
    %c0_i32_0 = arith.constant 0 : i32
    %c0_i32_1 = arith.constant 0 : i32
    return %c0_i32, %c0_i32_0 : i32, i32
  }
  func.func @transform_30(%arg0: i32) -> (i32, i32) {
    %c0_i32 = arith.constant 0 : i32
    %c0_i32_0 = arith.constant 0 : i32
    %c0_i32_1 = arith.constant 0 : i32
    return %c0_i32, %c0_i32_0 : i32, i32
  }
  func.func @transform_31(%arg0: i32) -> (i32, i32) {
    %c0_i32 = arith.constant 0 : i32
    %c0_i32_0 = arith.constant 0 : i32
    %c0_i32_1 = arith.constant 0 : i32
    return %c0_i32, %c0_i32_0 : i32, i32
  }
  func.func @transform_32(%arg0: i32) -> (i32, i32) {
    %c0_i32 = arith.constant 0 : i32
    %c0_i32_0 = arith.constant 0 : i32
    %c0_i32_1 = arith.constant 0 : i32
    return %c0_i32, %c0_i32_0 : i32, i32
  }
  func.func @transform_33(%arg0: i32) -> (i32, i32) {
    %c0_i32 = arith.constant 0 : i32
    %c0_i32_0 = arith.constant 0 : i32
    %c0_i32_1 = arith.constant 0 : i32
    return %c0_i32, %c0_i32_0 : i32, i32
  }
  func.func @transform_34(%arg0: i32) -> (i32, i32) {
    %c0_i32 = arith.constant 0 : i32
    %c0_i32_0 = arith.constant 0 : i32
    %c0_i32_1 = arith.constant 0 : i32
    return %c0_i32, %c0_i32_0 : i32, i32
  }
  func.func @transform_35(%arg0: i32) -> (i32, i32) {
    %c0_i32 = arith.constant 0 : i32
    %c0_i32_0 = arith.constant 0 : i32
    %c0_i32_1 = arith.constant 0 : i32
    return %c0_i32, %c0_i32_0 : i32, i32
  }
  func.func @transform_36(%arg0: i32) -> (i32, i32) {
    %c0_i32 = arith.constant 0 : i32
    %c0_i32_0 = arith.constant 0 : i32
    %c0_i32_1 = arith.constant 0 : i32
    return %c0_i32, %c0_i32_0 : i32, i32
  }
  func.func @transform_37(%arg0: i32) -> (i32, i32) {
    %c0_i32 = arith.constant 0 : i32
    %c0_i32_0 = arith.constant 0 : i32
    %c0_i32_1 = arith.constant 0 : i32
    return %c0_i32, %c0_i32_0 : i32, i32
  }
  func.func @transform_38(%arg0: i32) -> (i32, i32) {
    %c0_i32 = arith.constant 0 : i32
    %c0_i32_0 = arith.constant 0 : i32
    %c0_i32_1 = arith.constant 0 : i32
    return %c0_i32, %c0_i32_0 : i32, i32
  }
  func.func @transform_39(%arg0: i32) -> (i32, i32) {
    %c0_i32 = arith.constant 0 : i32
    %c0_i32_0 = arith.constant 0 : i32
    %c0_i32_1 = arith.constant 0 : i32
    return %c0_i32, %c0_i32_0 : i32, i32
  }
  func.func @transform_40(%arg0: i32) -> (i32, i32) {
    %c0_i32 = arith.constant 0 : i32
    %c0_i32_0 = arith.constant 0 : i32
    %c0_i32_1 = arith.constant 0 : i32
    return %c0_i32, %c0_i32_0 : i32, i32
  }
  func.func @transform_41(%arg0: i32) -> (i32, i32, i32) {
    %c0_i32 = arith.constant 0 : i32
    %c0_i32_0 = arith.constant 0 : i32
    %c0_i32_1 = arith.constant 0 : i32
    %c0_i32_2 = arith.constant 0 : i32
    return %c0_i32, %c0_i32_0, %c0_i32_1 : i32, i32, i32
  }
}

</mosaic_0001>

<bundles_post_ra>
// kernel: forward.1
= control target key start
LH: loop header
LB: loop body
LE: loop exit
PB: predicated region body
PF: predicated region fallthrough
CT: control target
= control target key end

     0   :  { %s5839_s6 = smov 1   ;;  %s5840_s10 = smov 2   ;;  %s7177_s0 = inlined_call_operand.smem [shape: u32[42], index: -1, kind: input, shape index: {}] }
   0x1   :  { %s5922_s5 = sld [smem:[%s7177_s0]]   ;;  %s5841_s14 = smov 3  }
   0x2   :  { %s5927_s9 = sld [smem:[%s7177_s0 + %s5839_s6]]   ;;  %s5842_s18 = smov 4  }
   0x3   :  { %s5932_s13 = sld [smem:[%s7177_s0 + %s5840_s10]]   ;;  %s5843_s22 = smov 5  }
   0x4   :  { %s5937_s17 = sld [smem:[%s7177_s0 + %s5841_s14]]   ;;  %s5844_s26 = smov 6  }
   0x5   :  { %s5942_s21 = sld [smem:[%s7177_s0 + %s5842_s18]]   ;;  %s5845_s30 = smov 7  }
   0x6   :  { %s5947_s25 = sld [smem:[%s7177_s0 + %s5843_s22]]   ;;  %s5846_s4 = smov 8  }
   0x7   :  { %7201 = sst [smem:[#allocation58_spill]] %s5922_s5  ;;  %s5847_s10 = smov 9  }
   0x8   :  { %s5952_s29 = sld [smem:[%s7177_s0 + %s5844_s26]]   ;;  %s5848_s15 = smov 10  }
   0x9   :  { %s5957_s3 = sld [smem:[%s7177_s0 + %s5845_s30]]   ;;  %s5849_s20 = smov 11  }
   0xa   :  { %7202 = sst [smem:[#allocation59_spill]] %s5937_s17  ;;  %s5850_s26 = smov 12  }
   0xb   :  { %7203 = sst [smem:[#allocation60_spill]] %s5942_s21  ;;  %s5851_s1 = smov 13  }
   0xc   :  { %s5962_s8 = sld [smem:[%s7177_s0 + %s5846_s4]]   ;;  %s5852_s7 = smov 14  }
   0xd   :  { %s5967_s14 = sld [smem:[%s7177_s0 + %s5847_s10]]   ;;  %s5854_s22 = smov 16  }
   0xe   :  { %7204 = sst [smem:[#allocation61_spill]] %s5952_s29  ;;  %s5855_s28 = smov 17  }
   0xf   :  { %s5972_s19 = sld [smem:[%s7177_s0 + %s5848_s15]]   ;;  %s5853_s15 = smov 15  }
  0x10   :  { %s5977_s24 = sld [smem:[%s7177_s0 + %s5849_s20]]  }
  0x11   :  { %s5982_s30 = sld [smem:[%s7177_s0 + %s5850_s26]]  }
  0x12   :  { %7205 = sst [smem:[#allocation62_spill]] %s5962_s8 }
  0x13   :  { %s5987_s6 = sld [smem:[%s7177_s0 + %s5851_s1]]  }
  0x14   :  { %s5992_s12 = sld [smem:[%s7177_s0 + %s5852_s7]]   ;;  %s5856_s7 = smov 18  }
  0x15   :  { %7206 = sst [smem:[#allocation63_spill]] %s5972_s19 }
  0x16   :  { %7207 = sst [smem:[#allocation64_spill]] %s5977_s24 }
  0x17   :  { %7208 = sst [smem:[#allocation65_spill]] %s5982_s30 }
  0x18   :  { %s5997_s20 = sld [smem:[%s7177_s0 + %s5853_s15]]   ;;  %s5857_s15 = smov 19  }
  0x19   :  { %7209 = sst [smem:[#allocation66_spill]] %s5987_s6 }
  0x1a   :  { %7210 = sst [smem:[#allocation67_spill]] %s5992_s12 }
  0x1b   :  { %s6002_s27 = sld [smem:[%s7177_s0 + %s5854_s22]]   ;;  %s5858_s22 = smov 20  }
  0x1c   :  { %s6007_s4 = sld [smem:[%s7177_s0 + %s5855_s28]]   ;;  %s5859_s28 = smov 21  }
  0x1d   :  { %s6012_s30 = sld [smem:[%s7177_s0 + %s5856_s7]]   ;;  %s5860_s7 = smov 22  }
  0x1e   :  { %7211 = sst [smem:[#allocation68_spill]] %s5997_s20 }
  0x1f   :  { %s6017_s20 = sld [smem:[%s7177_s0 + %s5857_s15]]   ;;  %s5861_s15 = smov 23  }
  0x20   :  { %s6022_s6 = sld [smem:[%s7177_s0 + %s5858_s22]]   ;;  %s5862_s22 = smov 24  }
  0x21   :  { %s6032_s24 = sld [smem:[%s7177_s0 + %s5860_s7]]   ;;  %s5864_s7 = smov 26  }
  0x22   :  { %7212 = sst [smem:[#allocation69_spill]] %s6007_s4 }
  0x23   :  { %7213 = sst [smem:[#allocation70_spill]] %s6012_s30 }
  0x24   :  { %s6027_s4 = sld [smem:[%s7177_s0 + %s5859_s28]]   ;;  %s5863_s28 = smov 25  }
  0x25   :  { %s6037_s19 = sld [smem:[%s7177_s0 + %s5861_s15]]   ;;  %s5865_s15 = smov 27  }
  0x26   :  { %7214 = sst [smem:[#allocation71_spill]] %s6022_s6 }
  0x27   :  { %7216 = sst [smem:[#allocation73_spill]] %s6032_s24 }
  0x28   :  { %s6042_s17 = sld [smem:[%s7177_s0 + %s5862_s22]]   ;;  %s5866_s22 = smov 28  }
  0x29   :  { %s6052_s24 = sld [smem:[%s7177_s0 + %s5864_s7]]   ;;  %s5868_s7 = smov 30  }
  0x2a   :  { %7215 = sst [smem:[#allocation72_spill]] %s6027_s4 }
  0x2b   :  { %s6047_s4 = sld [smem:[%s7177_s0 + %s5863_s28]]   ;;  %s5867_s28 = smov 29  }
  0x2c   :  { %s6057_s5 = sld [smem:[%s7177_s0 + %s5865_s15]]   ;;  %s5869_s15 = smov 31  }
  0x2d   :  { %s6067_s6 = sld [smem:[%s7177_s0 + %s5867_s28]]   ;;  %s5871_s28 = smov 33  }
  0x2e   :  { %7217 = sst [smem:[#allocation74_spill]] %s6042_s17 }
  0x2f   :  { %7218 = sst [smem:[#allocation75_spill]] %s6052_s24 }
  0x30   :  { %s6062_s17 = sld [smem:[%s7177_s0 + %s5866_s22]]   ;;  %s5870_s22 = smov 32  }
  0x31   :  { %s6072_s24 = sld [smem:[%s7177_s0 + %s5868_s7]]   ;;  %s5872_s7 = smov 34  }
  0x32   :  { %s6077_s30 = sld [smem:[%s7177_s0 + %s5869_s15]]   ;;  %s5873_s15 = smov 35  }
  0x33   :  { %7220 = sst [smem:[#allocation77_spill]] %s6067_s6 }
  0x34   :  { %s6087_s6 = sld [smem:[%s7177_s0 + %s5871_s28]]   ;;  %s5875_s28 = smov 37  }
  0x35   :  { %s6092_s12 = sld [smem:[%s7177_s0 + %s5872_s7]]   ;;  %s5876_s7 = smov 38  }
  0x36   :  { %7219 = sst [smem:[#allocation76_spill]] %s6062_s17 }
  0x37   :  { %s6082_s17 = sld [smem:[%s7177_s0 + %s5870_s22]]   ;;  %s5874_s22 = smov 36  }
  0x38   :  { %7221 = sst [smem:[#allocation78_spill]] %s6077_s30 }
  0x39   :  { %s6097_s30 = sld [smem:[%s7177_s0 + %s5873_s15]]   ;;  %s5877_s15 = smov 39  }
  0x3a   :  { %7222 = sst [smem:[#allocation79_spill]] %s6087_s6 }
  0x3b   :  { %s6102_s8 = sld [smem:[%s7177_s0 + %s5874_s22]]   ;;  %s5878_s22 = smov 40  }
  0x3c   :  { %s6107_s6 = sld [smem:[%s7177_s0 + %s5875_s28]]   ;;  %s5879_s28 = smov 41  }
  0x3d   :  { %s6112_s29 = sld [smem:[%s7177_s0 + %s5876_s7]]  }
  0x3e   :  { %s6127_s21 = sld [smem:[%s7177_s0 + %s5879_s28]]  }
  0x3f   :  { %7223 = sst [smem:[#allocation80_spill]] %s6097_s30 }
  0x40   :  { %s6117_s30 = sld [smem:[%s7177_s0 + %s5877_s15]]  }
  0x41   :  { %7224 = sst [smem:[#allocation81_spill]] %s6102_s8 }
  0x42   :  { %s6122_s8 = sld [smem:[%s7177_s0 + %s5878_s22]]  }
  0x43   :  { %89 = vsyncpa [#allocation4], 0 }
  0x44   :  { %90 = vsyncpa [#allocation6], 0 }
  0x45   :  { %91 = vsyncpa [#allocation9], 0 }
  0x46   :  { %92 = vsyncpa [#allocation12], 0 }
  0x47   :  { %93 = vsyncpa [#allocation15], 0 }
  0x48   :  { %94 = vsyncpa [#allocation18], 0 }
  0x49   :  { %95 = vsyncpa [#allocation21], 0 }
  0x4a   :  { %96 = vsyncpa [#allocation24], 0 }
  0x4b   :  { %97 = vsyncpa [#allocation27], 0 }
  0x4c   :  { %98 = vsyncpa [#allocation30], 0 }
  0x4d   :  { %99 = vsyncpa [#allocation33], 0 }
  0x4e   :  { %100 = vsyncpa [#allocation36], 0 }
  0x4f   :  { %101 = vsyncpa [#allocation39], 0  ;;  %s123_s7 = sshll.u32 %s5932_s13, 4  ;;  %s124_s7 = int_to_ptr.hbm [resolvable:$true] %s123_s7 }
  0x50   :  { %102 = vsyncpa [#allocation42], 0  ;;  %s5880_s0 = smov [#allocation5]   ;;  %s5163_s11 = sshra.s32 %s124_s7, 4  ;;  %s5164_s11 = int_to_ptr.hbm [resolvable:$true] %s5163_s11 }
  0x51   :  { %s125_s10 = sshll.u32 %s5880_s0, 4  ;;  %s5165_s15 = scalar_lea.hbm %s5164_s11, 1  ;;  %s126_s10 = int_to_ptr.vmem [resolvable:$true] %s125_s10 }
  0x52   :  { %p5166_p0 = scmp.ne.s32.totalorder %s5164_s11, %s5165_s15  ;;  %s5167_s16 = scalar_lea.hbm %s5932_s13, 1 }
  0x53   :  { %p5168_p1 = scmp.lt.s32.totalorder %s5164_s11, %s5932_s13  ;;  %p5169_p2 = scmp.lt.s32.totalorder %s5167_s16, %s5165_s15 }
  0x55   :  { %p5170_p3 = por %p5169_p2, %p5168_p1 }
  0x57   :  { %p5171_p4 = pnand %p5170_p3, %p5166_p0 }
  0x59   :  { %5174 = shalt.err (!%p5171_p4)
}
  0x5a   :  { %128 = dma.hbm_to_vmem [thread:$0]  %s124_s7, 16, %s126_s10, [#allocation6]  }
  0x5b   :  { %s146_s18 = sshll.u32 %s5947_s25, 4  ;;  %s5881_s22 = smov [#allocation8]   ;;  %s147_s18 = int_to_ptr.hbm [resolvable:$true] %s146_s18 }
  0x5c   :  { %s148_s23 = sshll.u32 %s5881_s22, 4  ;;  %s172_s26 = sshll.u32 %s5957_s3, 4  ;;  %s149_s23 = int_to_ptr.vmem [resolvable:$true] %s148_s23  ;;  %s6134_s26 = int_to_ptr.hbm [resolvable:$true] %s172_s26 }
  0x5d   :  { %s5187_s28 = sshra.s32 %s147_s18, 4  ;;  %s5191_s1 = scalar_lea.hbm %s5947_s25, 32  ;;  %s5188_s28 = int_to_ptr.hbm [resolvable:$true] %s5187_s28 }
  0x5e   :  { %s5189_s13 = scalar_lea.hbm %s5188_s28, 32  ;;  %p5192_p6 = scmp.lt.s32.totalorder %s5188_s28, %s5947_s25 }
  0x5f   :  { %p5190_p5 = scmp.ne.s32.totalorder %s5188_s28, %s5189_s13  ;;  %p5193_p7 = scmp.lt.s32.totalorder %s5191_s1, %s5189_s13 }
  0x61   :  { %p5194_p8 = por %p5193_p7, %p5192_p6 }
  0x63   :  { %p5195_p9 = pnand %p5194_p8, %p5190_p5 }
  0x65   :  { %5198 = shalt.err (!%p5195_p9)
}
  0x66   :  { %s5882_s2 = smov 64   ;;  %s5883_s7 = smov 4  }
  0x67   :  { %154 = dma.hbm_to_vmem [thread:$0]  %s147_s18, 512, %s149_s23, [#allocation9], %s5882_s2, %s5882_s2, %s5883_s7  }
  0x68   :  { %s5884_s0 = smov [#allocation11]   ;;  %s198_s11 = sshll.u32 %s5967_s14, 4  ;;  %s199_s11 = int_to_ptr.hbm [resolvable:$true] %s198_s11 }
  0x69   :  { %s174_s10 = sshll.u32 %s5884_s0, 4  ;;  %s5211_s15 = sshra.s32 %s6134_s26, 4  ;;  %s175_s10 = int_to_ptr.vmem [resolvable:$true] %s174_s10  ;;  %s5212_s15 = int_to_ptr.hbm [resolvable:$true] %s5211_s15 }
  0x6a   :  { %s5213_s25 = scalar_lea.hbm %s5212_s15, 2  ;;  %s5215_s16 = scalar_lea.hbm %s5957_s3, 2 }
  0x6b   :  { %p5214_p10 = scmp.ne.s32.totalorder %s5212_s15, %s5213_s25  ;;  %p5216_p11 = scmp.lt.s32.totalorder %s5212_s15, %s5957_s3 }
  0x6c   :  { %p5217_p12 = scmp.lt.s32.totalorder %s5215_s16, %s5213_s25 }
  0x6e   :  { %p5218_p13 = por %p5217_p12, %p5216_p11 }
  0x70   :  { %p5219_p0 = pnand %p5218_p13, %p5214_p10 }
  0x72   :  { %5222 = shalt.err (!%p5219_p0)
}
  0x73   :  { %s5885_s22 = smov 16   ;;  %s5886_s18 = smov 1  }
  0x74   :  { %180 = dma.hbm_to_vmem [thread:$0]  %s6134_s26, 32, %s175_s10, [#allocation12], %s5885_s22, %s5885_s22, %s5886_s18  }
  0x75   :  { %s5887_s23 = smov [#allocation14]   ;;  %s234_s13 = sshll.u32 %s6002_s27, 4  ;;  %s6150_s13 = int_to_ptr.hbm [resolvable:$true] %s234_s13 }
  0x76   :  { %s200_s28 = sshll.u32 %s5887_s23, 4  ;;  %s5235_s3 = sshra.s32 %s199_s11, 4  ;;  %s201_s28 = int_to_ptr.vmem [resolvable:$true] %s200_s28  ;;  %s5236_s3 = int_to_ptr.hbm [resolvable:$true] %s5235_s3 }
  0x77   :  { %s5237_s1 = scalar_lea.hbm %s5236_s3, 2  ;;  %s5239_s0 = scalar_lea.hbm %s5967_s14, 2 }
  0x78   :  { %p5238_p1 = scmp.ne.s32.totalorder %s5236_s3, %s5237_s1  ;;  %p5240_p2 = scmp.lt.s32.totalorder %s5236_s3, %s5967_s14 }
  0x79   :  { %p5241_p3 = scmp.lt.s32.totalorder %s5239_s0, %s5237_s1 }
  0x7b   :  { %p5242_p4 = por %p5241_p3, %p5240_p2 }
  0x7d   :  { %p5243_p5 = pnand %p5242_p4, %p5238_p1 }
  0x7f   :  { %5246 = shalt.err (!%p5243_p5)
}
  0x80   :  { %206 = dma.hbm_to_vmem [thread:$0]  %s199_s11, 32, %s201_s28, [#allocation15], %s5885_s22, %s5885_s22, %s5886_s18  }
  0x81   :  { %s262_s26 = sshll.u32 %s6017_s20, 4  ;;  %s5888_s10 = smov [#allocation17]   ;;  %s6158_s26 = int_to_ptr.hbm [resolvable:$true] %s262_s26 }
  0x82   :  { %s236_s15 = sshll.u32 %s5888_s10, 4  ;;  %s5259_s25 = sshra.s32 %s6150_s13, 4  ;;  %s237_s15 = int_to_ptr.vmem [resolvable:$true] %s236_s15  ;;  %s5260_s25 = int_to_ptr.hbm [resolvable:$true] %s5259_s25 }
  0x83   :  { %s5261_s14 = scalar_lea.hbm %s5260_s25, 5  ;;  %s5263_s16 = scalar_lea.hbm %s6002_s27, 5 }
  0x84   :  { %p5262_p6 = scmp.ne.s32.totalorder %s5260_s25, %s5261_s14  ;;  %p5264_p7 = scmp.lt.s32.totalorder %s5260_s25, %s6002_s27 }
  0x85   :  { %p5265_p8 = scmp.lt.s32.totalorder %s5263_s16, %s5261_s14 }
  0x87   :  { %p5266_p9 = por %p5265_p8, %p5264_p7 }
  0x89   :  { %p5267_p10 = pnand %p5266_p9, %p5262_p6 }
  0x8b   :  { %5270 = shalt.err (!%p5267_p10)
}
  0x8c   :  { %242 = dma.hbm_to_vmem [thread:$0]  %s6150_s13, 80, %s237_s15, [#allocation18], %s5885_s22, %s5885_s22, %s5886_s18  }
  0x8d   :  { %s5889_s11 = smov [#allocation20]   ;;  %s293_s28 = sshll.u32 %s6037_s19, 4  ;;  %s294_s28 = int_to_ptr.hbm [resolvable:$true] %s293_s28 }
  0x8e   :  { %s264_s23 = sshll.u32 %s5889_s11, 4  ;;  %s5283_s3 = sshra.s32 %s6158_s26, 4  ;;  %s265_s23 = int_to_ptr.vmem [resolvable:$true] %s264_s23  ;;  %s5284_s3 = int_to_ptr.hbm [resolvable:$true] %s5283_s3 }
  0x8f   :  { %s5285_s27 = scalar_lea.hbm %s5284_s3, 16  ;;  %s5287_s1 = scalar_lea.hbm %s6017_s20, 16 }
  0x90   :  { %p5286_p11 = scmp.ne.s32.totalorder %s5284_s3, %s5285_s27  ;;  %p5288_p12 = scmp.lt.s32.totalorder %s5284_s3, %s6017_s20 }
  0x91   :  { %p5289_p13 = scmp.lt.s32.totalorder %s5287_s1, %s5285_s27 }
  0x93   :  { %p5290_p0 = por %p5289_p13, %p5288_p12 }
  0x95   :  { %p5291_p1 = pnand %p5290_p0, %p5286_p11 }
  0x97   :  { %5294 = shalt.err (!%p5291_p1)
}
  0x98   :  { %270 = dma.hbm_to_vmem [thread:$0]  %s6158_s26, 256, %s265_s23, [#allocation21], %s5882_s2, %s5882_s2, %s5883_s7  }
  0x99   :  { %s317_s13 = sshll.u32 %s6047_s4, 4  ;;  %s5890_s0 = smov [#allocation23]   ;;  %s318_s13 = int_to_ptr.hbm [resolvable:$true] %s317_s13 }
  0x9a   :  { %s295_s10 = sshll.u32 %s5890_s0, 4  ;;  %s5307_s15 = sshra.s32 %s294_s28, 4  ;;  %s296_s10 = int_to_ptr.vmem [resolvable:$true] %s295_s10  ;;  %s5308_s15 = int_to_ptr.hbm [resolvable:$true] %s5307_s15 }
  0x9b   :  { %s5309_s20 = scalar_lea.hbm %s5308_s15, 1  ;;  %s5311_s25 = scalar_lea.hbm %s6037_s19, 1 }
  0x9c   :  { %p5310_p2 = scmp.ne.s32.totalorder %s5308_s15, %s5309_s20  ;;  %p5312_p3 = scmp.lt.s32.totalorder %s5308_s15, %s6037_s19 }
  0x9d   :  { %p5313_p4 = scmp.lt.s32.totalorder %s5311_s25, %s5309_s20 }
  0x9f   :  { %p5314_p5 = por %p5313_p4, %p5312_p3 }
  0xa1   :  { %p5315_p6 = pnand %p5314_p5, %p5310_p2 }
  0xa3   :  { %5318 = shalt.err (!%p5315_p6)
}
  0xa4   :  { %298 = dma.hbm_to_vmem [thread:$0]  %s294_s28, 16, %s296_s10, [#allocation24]  }
  0xa5   :  { %s5891_s26 = smov [#allocation26]   ;;  %s340_s16 = sshll.u32 %s6057_s5, 4  ;;  %s6179_s16 = int_to_ptr.hbm [resolvable:$true] %s340_s16 }
  0xa6   :  { %s319_s14 = sshll.u32 %s5891_s26, 4  ;;  %s5331_s11 = sshra.s32 %s318_s13, 4  ;;  %s320_s14 = int_to_ptr.vmem [resolvable:$true] %s319_s14  ;;  %s5332_s11 = int_to_ptr.hbm [resolvable:$true] %s5331_s11 }
  0xa7   :  { %s5333_s23 = scalar_lea.hbm %s5332_s11, 1  ;;  %s5335_s3 = scalar_lea.hbm %s6047_s4, 1 }
  0xa8   :  { %p5334_p7 = scmp.ne.s32.totalorder %s5332_s11, %s5333_s23  ;;  %p5336_p8 = scmp.lt.s32.totalorder %s5332_s11, %s6047_s4 }
  0xa9   :  { %p5337_p9 = scmp.lt.s32.totalorder %s5335_s3, %s5333_s23 }
  0xab   :  { %p5338_p10 = por %p5337_p9, %p5336_p8 }
  0xad   :  { %p5339_p11 = pnand %p5338_p10, %p5334_p7 }
  0xaf   :  { %5342 = shalt.err (!%p5339_p11)
}
  0xb0   :  { %322 = dma.hbm_to_vmem [thread:$0]  %s318_s13, 16, %s320_s14, [#allocation27]  }
  0xb1   :  { %s367_s19 = sshll.u32 %s6072_s24, 4  ;;  %s5892_s28 = smov [#allocation29]   ;;  %s368_s19 = int_to_ptr.hbm [resolvable:$true] %s367_s19 }
  0xb2   :  { %s342_s27 = sshll.u32 %s5892_s28, 4  ;;  %s5355_s1 = sshra.s32 %s6179_s16, 4  ;;  %s343_s27 = int_to_ptr.vmem [resolvable:$true] %s342_s27  ;;  %s5356_s1 = int_to_ptr.hbm [resolvable:$true] %s5355_s1 }
  0xb3   :  { %s5357_s0 = scalar_lea.hbm %s5356_s1, 16  ;;  %s5359_s10 = scalar_lea.hbm %s6057_s5, 16 }
  0xb4   :  { %p5358_p12 = scmp.ne.s32.totalorder %s5356_s1, %s5357_s0  ;;  %p5360_p13 = scmp.lt.s32.totalorder %s5356_s1, %s6057_s5 }
  0xb5   :  { %p5361_p0 = scmp.lt.s32.totalorder %s5359_s10, %s5357_s0 }
  0xb7   :  { %p5362_p1 = por %p5361_p0, %p5360_p13 }
  0xb9   :  { %p5363_p2 = pnand %p5362_p1, %p5358_p12 }
  0xbb   :  { %5366 = shalt.err (!%p5363_p2)
}
  0xbc   :  { %348 = dma.hbm_to_vmem [thread:$0]  %s6179_s16, 256, %s343_s27, [#allocation30], %s5882_s2, %s5882_s2, %s5883_s7  }
  0xbd   :  { %s5893_s4 = smov [#allocation32]   ;;  %s391_s15 = sshll.u32 %s6082_s17, 4  ;;  %s392_s15 = int_to_ptr.hbm [resolvable:$true] %s391_s15 }
  0xbe   :  { %s369_s13 = sshll.u32 %s5893_s4, 4  ;;  %s5379_s20 = sshra.s32 %s368_s19, 4  ;;  %s370_s13 = int_to_ptr.vmem [resolvable:$true] %s369_s13  ;;  %s5380_s20 = int_to_ptr.hbm [resolvable:$true] %s5379_s20 }
  0xbf   :  { %s5381_s5 = scalar_lea.hbm %s5380_s20, 1  ;;  %s5383_s25 = scalar_lea.hbm %s6072_s24, 1 }
  0xc0   :  { %p5382_p3 = scmp.ne.s32.totalorder %s5380_s20, %s5381_s5  ;;  %p5384_p4 = scmp.lt.s32.totalorder %s5380_s20, %s6072_s24 }
  0xc1   :  { %p5385_p5 = scmp.lt.s32.totalorder %s5383_s25, %s5381_s5 }
  0xc3   :  { %p5386_p6 = por %p5385_p5, %p5384_p4 }
  0xc5   :  { %p5387_p7 = pnand %p5386_p6, %p5382_p3 }
  0xc7   :  { %5390 = shalt.err (!%p5387_p7)
}
  0xc8   :  { %372 = dma.hbm_to_vmem [thread:$0]  %s368_s19, 16, %s370_s13, [#allocation33]  }
  0xc9   :  { %s414_s26 = sshll.u32 %s6092_s12, 4  ;;  %s5894_s14 = smov [#allocation35]   ;;  %s6195_s26 = int_to_ptr.hbm [resolvable:$true] %s414_s26 }
  0xca   :  { %s393_s16 = sshll.u32 %s5894_s14, 4  ;;  %s5403_s11 = sshra.s32 %s392_s15, 4  ;;  %s394_s16 = int_to_ptr.vmem [resolvable:$true] %s393_s16  ;;  %s5404_s11 = int_to_ptr.hbm [resolvable:$true] %s5403_s11 }
  0xcb   :  { %s5405_s23 = scalar_lea.hbm %s5404_s11, 1  ;;  %s5407_s3 = scalar_lea.hbm %s6082_s17, 1 }
  0xcc   :  { %p5406_p8 = scmp.ne.s32.totalorder %s5404_s11, %s5405_s23  ;;  %p5408_p9 = scmp.lt.s32.totalorder %s5404_s11, %s6082_s17 }
  0xcd   :  { %p5409_p10 = scmp.lt.s32.totalorder %s5407_s3, %s5405_s23 }
  0xcf   :  { %p5410_p11 = por %p5409_p10, %p5408_p9 }
  0xd1   :  { %p5411_p12 = pnand %p5410_p11, %p5406_p8 }
  0xd3   :  { %5414 = shalt.err (!%p5411_p12)
}
  0xd4   :  { %396 = dma.hbm_to_vmem [thread:$0]  %s392_s15, 16, %s394_s16, [#allocation36]  }
  0xd5   :  { %s5895_s24 = smov [#allocation38]   ;;  %s441_s28 = sshll.u32 %s6107_s6, 4  ;;  %s442_s28 = int_to_ptr.hbm [resolvable:$true] %s441_s28 }
  0xd6   :  { %s416_s19 = sshll.u32 %s5895_s24, 4  ;;  %s5427_s27 = sshra.s32 %s6195_s26, 4  ;;  %s417_s19 = int_to_ptr.vmem [resolvable:$true] %s416_s19  ;;  %s5428_s27 = int_to_ptr.hbm [resolvable:$true] %s5427_s27 }
  0xd7   :  { %s5429_s1 = scalar_lea.hbm %s5428_s27, 16  ;;  %s5431_s0 = scalar_lea.hbm %s6092_s12, 16 }
  0xd8   :  { %p5430_p13 = scmp.ne.s32.totalorder %s5428_s27, %s5429_s1  ;;  %p5432_p0 = scmp.lt.s32.totalorder %s5428_s27, %s6092_s12 }
  0xd9   :  { %p5433_p1 = scmp.lt.s32.totalorder %s5431_s0, %s5429_s1 }
  0xdb   :  { %p5434_p2 = por %p5433_p1, %p5432_p0 }
  0xdd   :  { %p5435_p3 = pnand %p5434_p2, %p5430_p13 }
  0xdf   :  { %5438 = shalt.err (!%p5435_p3)
}
  0xe0   :  { %422 = dma.hbm_to_vmem [thread:$0]  %s6195_s26, 256, %s417_s19, [#allocation39], %s5882_s2, %s5882_s2, %s5883_s7  }
  0xe1   :  { %s109_s17 = sshll.u32 %s5927_s9, 4  ;;  %s5896_s10 = smov [#allocation41]   ;;  %s6208_s17 = int_to_ptr.hbm [resolvable:$true] %s109_s17 }
  0xe2   :  { %s443_s4 = sshll.u32 %s5896_s10, 4  ;;  %s5451_s13 = sshra.s32 %s442_s28, 4  ;;  %s444_s4 = int_to_ptr.vmem [resolvable:$true] %s443_s4  ;;  %s5452_s13 = int_to_ptr.hbm [resolvable:$true] %s5451_s13 }
  0xe3   :  { %s5453_s12 = scalar_lea.hbm %s5452_s13, 1  ;;  %s5455_s15 = scalar_lea.hbm %s6107_s6, 1 }
  0xe4   :  { %p5454_p4 = scmp.ne.s32.totalorder %s5452_s13, %s5453_s12  ;;  %p5456_p5 = scmp.lt.s32.totalorder %s5452_s13, %s6107_s6 }
  0xe5   :  { %p5457_p6 = scmp.lt.s32.totalorder %s5455_s15, %s5453_s12 }
  0xe7   :  { %p5458_p7 = por %p5457_p6, %p5456_p5 }
  0xe9   :  { %p5459_p8 = pnand %p5458_p7, %p5454_p4 }
  0xeb   :  { %5462 = shalt.err (!%p5459_p8)
}
  0xec   :  { %446 = dma.hbm_to_vmem [thread:$0]  %s442_s28, 16, %s444_s4, [#allocation42]  }
  0xed   :  { %s7225_s20 = sld [smem:[#allocation60_spill]]  ;;  %s5897_s5 = smov [#allocation3]  }
  0xee   :  { %s111_s25 = sshll.u32 %s5897_s5, 4  ;;  %s5475_s14 = sshra.s32 %s6208_s17, 4  ;;  %s112_s25 = int_to_ptr.vmem [resolvable:$true] %s111_s25  ;;  %s5476_s14 = int_to_ptr.hbm [resolvable:$true] %s5475_s14 }
  0xef   :  { %s5477_s16 = scalar_lea.hbm %s5476_s14, 8  ;;  %s5479_s11 = scalar_lea.hbm %s5927_s9, 8 }
  0xf0   :  { %p5478_p9 = scmp.ne.s32.totalorder %s5476_s14, %s5477_s16  ;;  %p5480_p10 = scmp.lt.s32.totalorder %s5476_s14, %s5927_s9 }
  0xf1   :  { %p5481_p11 = scmp.lt.s32.totalorder %s5479_s11, %s5477_s16 }
  0xf3   :  { %s136_s26 = sshll.u32 %s7225_s20, 4  ;;  %p5482_p12 = por %p5481_p11, %p5480_p10  ;;  %s137_s26 = int_to_ptr.hbm [resolvable:$true] %s136_s26 }
  0xf5   :  { %p5483_p13 = pnand %p5482_p12, %p5478_p9 }
  0xf7   :  { %5486 = shalt.err (!%p5483_p13)
}
  0xf8   :  { %s7226_s6 = sld [smem:[#allocation61_spill]]  ;;  %s5898_s3 = smov [#allocation7]  }
  0xf9   :  { %117 = dma.hbm_to_vmem [thread:$0]  %s6208_s17, 128, %s112_s25, [#allocation4], %s5882_s2, %s5882_s2, %s5883_s7  }
  0xfa   :  { %s138_s24 = sshll.u32 %s5898_s3, 4  ;;  %s5499_s19 = sshra.s32 %s137_s26, 4  ;;  %s139_s24 = int_to_ptr.vmem [resolvable:$true] %s138_s24  ;;  %s5500_s19 = int_to_ptr.hbm [resolvable:$true] %s5499_s19 }
  0xfb   :  { %s5501_s9 = scalar_lea.hbm %s5500_s19, 1  ;;  %s5503_s28 = scalar_lea.hbm %s7225_s20, 1 }
  0xfc   :  { %p5502_p0 = scmp.ne.s32.totalorder %s5500_s19, %s5501_s9  ;;  %p5504_p1 = scmp.lt.s32.totalorder %s5500_s19, %s7225_s20 }
  0xfd   :  { %p5505_p2 = scmp.lt.s32.totalorder %s5503_s28, %s5501_s9 }
  0xfe   :  { %s159_s23 = sshll.u32 %s7226_s6, 4  ;;  %s6221_s23 = int_to_ptr.hbm [resolvable:$true] %s159_s23 }
  0xff   :  { %p5506_p3 = por %p5505_p2, %p5504_p1 }
 0x101   :  { %p5507_p4 = pnand %p5506_p3, %p5502_p0 }
 0x103   :  { %5510 = shalt.err (!%p5507_p4)
}
 0x104   :  { %141 = dma.hbm_to_vmem [thread:$0]  %s137_s26, 16, %s139_s24, [#allocation6]  }
 0x105   :  { %s7227_s27 = sld [smem:[#allocation62_spill]]  ;;  %s5899_s1 = smov [#allocation10]  }
 0x106   :  { %s161_s0 = sshll.u32 %s5899_s1, 4  ;;  %s5523_s10 = sshra.s32 %s6221_s23, 4  ;;  %s162_s0 = int_to_ptr.vmem [resolvable:$true] %s161_s0  ;;  %s5524_s10 = int_to_ptr.hbm [resolvable:$true] %s5523_s10 }
 0x107   :  { %s5525_s4 = scalar_lea.hbm %s5524_s10, 32  ;;  %s5527_s13 = scalar_lea.hbm %s7226_s6, 32 }
 0x108   :  { %p5526_p5 = scmp.ne.s32.totalorder %s5524_s10, %s5525_s4  ;;  %p5528_p6 = scmp.lt.s32.totalorder %s5524_s10, %s7226_s6 }
 0x109   :  { %p5529_p7 = scmp.lt.s32.totalorder %s5527_s13, %s5525_s4 }
 0x10b   :  { %s185_s17 = sshll.u32 %s7227_s27, 4  ;;  %p5530_p8 = por %p5529_p7, %p5528_p6  ;;  %s6226_s17 = int_to_ptr.hbm [resolvable:$true] %s185_s17 }
 0x10d   :  { %p5531_p9 = pnand %p5530_p8, %p5526_p5 }
 0x10f   :  { %5534 = shalt.err (!%p5531_p9)
}
 0x110   :  { %s7228_s12 = sld [smem:[#allocation67_spill]]  ;;  %s5900_s20 = smov [#allocation13]  }
 0x111   :  { %167 = dma.hbm_to_vmem [thread:$0]  %s6221_s23, 512, %s162_s0, [#allocation9], %s5882_s2, %s5882_s2, %s5883_s7  }
 0x112   :  { %s187_s5 = sshll.u32 %s5900_s20, 4  ;;  %s5547_s25 = sshra.s32 %s6226_s17, 4  ;;  %s188_s5 = int_to_ptr.vmem [resolvable:$true] %s187_s5  ;;  %s5548_s25 = int_to_ptr.hbm [resolvable:$true] %s5547_s25 }
 0x113   :  { %s5549_s26 = scalar_lea.hbm %s5548_s25, 32  ;;  %s5551_s14 = scalar_lea.hbm %s7227_s27, 32 }
 0x114   :  { %p5550_p10 = scmp.ne.s32.totalorder %s5548_s25, %s5549_s26  ;;  %p5552_p11 = scmp.lt.s32.totalorder %s5548_s25, %s7227_s27 }
 0x115   :  { %p5553_p12 = scmp.lt.s32.totalorder %s5551_s14, %s5549_s26 }
 0x116   :  { %s219_s15 = sshll.u32 %s7228_s12, 4  ;;  %s6236_s15 = int_to_ptr.hbm [resolvable:$true] %s219_s15 }
 0x117   :  { %p5554_p13 = por %p5553_p12, %p5552_p11 }
 0x119   :  { %p5555_p0 = pnand %p5554_p13, %p5550_p10 }
 0x11b   :  { %5558 = shalt.err (!%p5555_p0)
}
 0x11c   :  { %s7229_s16 = sld [smem:[#allocation70_spill]]  ;;  %s5901_s11 = smov [#allocation16]  }
 0x11d   :  { %193 = dma.hbm_to_vmem [thread:$0]  %s6226_s17, 512, %s188_s5, [#allocation12], %s5882_s2, %s5882_s2, %s5883_s7  }
 0x11e   :  { %s221_s6 = sshll.u32 %s5901_s11, 4  ;;  %s5571_s3 = sshra.s32 %s6236_s15, 4  ;;  %s222_s6 = int_to_ptr.vmem [resolvable:$true] %s221_s6  ;;  %s5572_s3 = int_to_ptr.hbm [resolvable:$true] %s5571_s3 }
 0x11f   :  { %s5573_s24 = scalar_lea.hbm %s5572_s3, 5  ;;  %s5575_s19 = scalar_lea.hbm %s7228_s12, 5 }
 0x120   :  { %p5574_p1 = scmp.ne.s32.totalorder %s5572_s3, %s5573_s24  ;;  %p5576_p2 = scmp.lt.s32.totalorder %s5572_s3, %s7228_s12 }
 0x121   :  { %p5577_p3 = scmp.lt.s32.totalorder %s5575_s19, %s5573_s24 }
 0x122   :  { %s249_s23 = sshll.u32 %s7229_s16, 4  ;;  %s6246_s23 = int_to_ptr.hbm [resolvable:$true] %s249_s23 }
 0x123   :  { %p5578_p4 = por %p5577_p3, %p5576_p2 }
 0x125   :  { %p5579_p5 = pnand %p5578_p4, %p5574_p1 }
 0x127   :  { %5582 = shalt.err (!%p5579_p5)
}
 0x128   :  { %s7230_s9 = sld [smem:[#allocation71_spill]]  ;;  %s5902_s27 = smov [#allocation19]  }
 0x129   :  { %227 = dma.hbm_to_vmem [thread:$0]  %s6236_s15, 80, %s222_s6, [#allocation15], %s5885_s22, %s5885_s22, %s5886_s18  }
 0x12a   :  { %s251_s1 = sshll.u32 %s5902_s27, 4  ;;  %s5595_s0 = sshra.s32 %s6246_s23, 4  ;;  %s252_s1 = int_to_ptr.vmem [resolvable:$true] %s251_s1  ;;  %s5596_s0 = int_to_ptr.hbm [resolvable:$true] %s5595_s0 }
 0x12b   :  { %s5597_s17 = scalar_lea.hbm %s5596_s0, 5  ;;  %s5599_s10 = scalar_lea.hbm %s7229_s16, 5 }
 0x12c   :  { %p5598_p6 = scmp.ne.s32.totalorder %s5596_s0, %s5597_s17  ;;  %p5600_p7 = scmp.lt.s32.totalorder %s5596_s0, %s7229_s16 }
 0x12d   :  { %p5601_p8 = scmp.lt.s32.totalorder %s5599_s10, %s5597_s17 }
 0x12e   :  { %s275_s28 = sshll.u32 %s7230_s9, 4  ;;  %s6256_s28 = int_to_ptr.hbm [resolvable:$true] %s275_s28 }
 0x12f   :  { %p5602_p9 = por %p5601_p8, %p5600_p7 }
 0x131   :  { %p5603_p10 = pnand %p5602_p9, %p5598_p6 }
 0x133   :  { %5606 = shalt.err (!%p5603_p10)
}
 0x134   :  { %s7231_s4 = sld [smem:[#allocation74_spill]]  ;;  %s5903_s13 = smov [#allocation22]  }
 0x135   :  { %257 = dma.hbm_to_vmem [thread:$0]  %s6246_s23, 80, %s252_s1, [#allocation18], %s5885_s22, %s5885_s22, %s5886_s18  }
 0x136   :  { %s277_s12 = sshll.u32 %s5903_s13, 4  ;;  %s5619_s20 = sshra.s32 %s6256_s28, 4  ;;  %s278_s12 = int_to_ptr.vmem [resolvable:$true] %s277_s12  ;;  %s5620_s20 = int_to_ptr.hbm [resolvable:$true] %s5619_s20 }
 0x137   :  { %s5621_s5 = scalar_lea.hbm %s5620_s20, 16  ;;  %s5623_s25 = scalar_lea.hbm %s7230_s9, 16 }
 0x138   :  { %p5622_p11 = scmp.ne.s32.totalorder %s5620_s20, %s5621_s5  ;;  %p5624_p12 = scmp.lt.s32.totalorder %s5620_s20, %s7230_s9 }
 0x139   :  { %p5625_p13 = scmp.lt.s32.totalorder %s5623_s25, %s5621_s5 }
 0x13a   :  { %s303_s15 = sshll.u32 %s7231_s4, 4  ;;  %s6266_s15 = int_to_ptr.hbm [resolvable:$true] %s303_s15 }
 0x13b   :  { %p5626_p0 = por %p5625_p13, %p5624_p12 }
 0x13d   :  { %p5627_p1 = pnand %p5626_p0, %p5622_p11 }
 0x13f   :  { %5630 = shalt.err (!%p5627_p1)
}
 0x140   :  { %s7232_s22 = sld [smem:[#allocation75_spill]]  ;;  %s5904_s26 = smov [#allocation25]  }
 0x141   :  { %283 = dma.hbm_to_vmem [thread:$0]  %s6256_s28, 256, %s278_s12, [#allocation21], %s5882_s2, %s5882_s2, %s5883_s7  }
 0x142   :  { %s305_s14 = sshll.u32 %s5904_s26, 4  ;;  %s5643_s16 = sshra.s32 %s6266_s15, 4  ;;  %s306_s14 = int_to_ptr.vmem [resolvable:$true] %s305_s14  ;;  %s5644_s16 = int_to_ptr.hbm [resolvable:$true] %s5643_s16 }
 0x143   :  { %s5645_s11 = scalar_lea.hbm %s5644_s16, 16  ;;  %s5647_s6 = scalar_lea.hbm %s7231_s4, 16 }
 0x144   :  { %p5646_p2 = scmp.ne.s32.totalorder %s5644_s16, %s5645_s11  ;;  %p5648_p3 = scmp.lt.s32.totalorder %s5644_s16, %s7231_s4 }
 0x145   :  { %p5649_p4 = scmp.lt.s32.totalorder %s5647_s6, %s5645_s11 }
 0x146   :  { %s327_s18 = sshll.u32 %s7232_s22, 4  ;;  %s6276_s18 = int_to_ptr.hbm [resolvable:$true] %s327_s18 }
 0x147   :  { %p5650_p5 = por %p5649_p4, %p5648_p3 }
 0x149   :  { %p5651_p6 = pnand %p5650_p5, %p5646_p2 }
 0x14b   :  { %5654 = shalt.err (!%p5651_p6)
}
 0x14c   :  { %s7233_s23 = sld [smem:[#allocation76_spill]]  ;;  %s5905_s3 = smov [#allocation28]  }
 0x14d   :  { %311 = dma.hbm_to_vmem [thread:$0]  %s6266_s15, 256, %s306_s14, [#allocation24], %s5882_s2, %s5882_s2, %s5883_s7  }
 0x14e   :  { %s329_s24 = sshll.u32 %s5905_s3, 4  ;;  %s5667_s9 = sshra.s32 %s6276_s18, 4  ;;  %s330_s24 = int_to_ptr.vmem [resolvable:$true] %s329_s24  ;;  %s5668_s9 = int_to_ptr.hbm [resolvable:$true] %s5667_s9 }
 0x14f   :  { %s5669_s28 = scalar_lea.hbm %s5668_s9, 16  ;;  %s5671_s27 = scalar_lea.hbm %s7232_s22, 16 }
 0x150   :  { %p5670_p7 = scmp.ne.s32.totalorder %s5668_s9, %s5669_s28  ;;  %p5672_p8 = scmp.lt.s32.totalorder %s5668_s9, %s7232_s22 }
 0x151   :  { %p5673_p9 = scmp.lt.s32.totalorder %s5671_s27, %s5669_s28 }
 0x152   :  { %s354_s19 = sshll.u32 %s7233_s23, 4  ;;  %s355_s19 = int_to_ptr.hbm [resolvable:$true] %s354_s19 }
 0x153   :  { %p5674_p10 = por %p5673_p9, %p5672_p8 }
 0x155   :  { %p5675_p11 = pnand %p5674_p10, %p5670_p7 }
 0x157   :  { %5678 = shalt.err (!%p5675_p11)
}
 0x158   :  { %s7234_s1 = sld [smem:[#allocation78_spill]]  ;;  %s5906_s17 = smov [#allocation31]  }
 0x159   :  { %335 = dma.hbm_to_vmem [thread:$0]  %s6276_s18, 256, %s330_s24, [#allocation27], %s5882_s2, %s5882_s2, %s5883_s7  }
 0x15a   :  { %s356_s10 = sshll.u32 %s5906_s17, 4  ;;  %s5691_s4 = sshra.s32 %s355_s19, 4  ;;  %s357_s10 = int_to_ptr.vmem [resolvable:$true] %s356_s10  ;;  %s5692_s4 = int_to_ptr.hbm [resolvable:$true] %s5691_s4 }
 0x15b   :  { %s5693_s13 = scalar_lea.hbm %s5692_s4, 1  ;;  %s5695_s12 = scalar_lea.hbm %s7233_s23, 1 }
 0x15c   :  { %p5694_p12 = scmp.ne.s32.totalorder %s5692_s4, %s5693_s13  ;;  %p5696_p13 = scmp.lt.s32.totalorder %s5692_s4, %s7233_s23 }
 0x15d   :  { %p5697_p0 = scmp.lt.s32.totalorder %s5695_s12, %s5693_s13 }
 0x15e   :  { %s377_s0 = sshll.u32 %s7234_s1, 4  ;;  %s6294_s0 = int_to_ptr.hbm [resolvable:$true] %s377_s0 }
 0x15f   :  { %p5698_p1 = por %p5697_p0, %p5696_p13 }
 0x161   :  { %p5699_p2 = pnand %p5698_p1, %p5694_p12 }
 0x163   :  { %5702 = shalt.err (!%p5699_p2)
}
 0x164   :  { %359 = dma.hbm_to_vmem [thread:$0]  %s355_s19, 16, %s357_s10, [#allocation30]  }
 0x165   :  { %s7235_s15 = sld [smem:[#allocation79_spill]]  ;;  %s5907_s20 = smov [#allocation34]  }
 0x166   :  { %s379_s5 = sshll.u32 %s5907_s20, 4  ;;  %s5715_s22 = sshra.s32 %s6294_s0, 4  ;;  %s380_s5 = int_to_ptr.vmem [resolvable:$true] %s379_s5  ;;  %s5716_s22 = int_to_ptr.hbm [resolvable:$true] %s5715_s22 }
 0x167   :  { %s5717_s18 = scalar_lea.hbm %s5716_s22, 16  ;;  %s5719_s26 = scalar_lea.hbm %s7234_s1, 16 }
 0x168   :  { %p5718_p3 = scmp.ne.s32.totalorder %s5716_s22, %s5717_s18  ;;  %p5720_p4 = scmp.lt.s32.totalorder %s5716_s22, %s7234_s1 }
 0x169   :  { %p5721_p5 = scmp.lt.s32.totalorder %s5719_s26, %s5717_s18 }
 0x16b   :  { %s401_s25 = sshll.u32 %s7235_s15, 4  ;;  %p5722_p6 = por %p5721_p5, %p5720_p4  ;;  %s6299_s25 = int_to_ptr.hbm [resolvable:$true] %s401_s25 }
 0x16d   :  { %p5723_p7 = pnand %p5722_p6, %p5718_p3 }
 0x16f   :  { %5726 = shalt.err (!%p5723_p7)
}
 0x170   :  { %s7236_s14 = sld [smem:[#allocation80_spill]]  ;;  %s5908_s11 = smov [#allocation37]  }
 0x171   :  { %385 = dma.hbm_to_vmem [thread:$0]  %s6294_s0, 256, %s380_s5, [#allocation33], %s5882_s2, %s5882_s2, %s5883_s7  }
 0x172   :  { %s403_s6 = sshll.u32 %s5908_s11, 4  ;;  %s5739_s23 = sshra.s32 %s6299_s25, 4  ;;  %s404_s6 = int_to_ptr.vmem [resolvable:$true] %s403_s6  ;;  %s5740_s23 = int_to_ptr.hbm [resolvable:$true] %s5739_s23 }
 0x173   :  { %s5741_s3 = scalar_lea.hbm %s5740_s23, 16  ;;  %s5743_s24 = scalar_lea.hbm %s7235_s15, 16 }
 0x174   :  { %p5742_p8 = scmp.ne.s32.totalorder %s5740_s23, %s5741_s3  ;;  %p5744_p9 = scmp.lt.s32.totalorder %s5740_s23, %s7235_s15 }
 0x175   :  { %p5745_p10 = scmp.lt.s32.totalorder %s5743_s24, %s5741_s3 }
 0x176   :  { %s428_s16 = sshll.u32 %s7236_s14, 4  ;;  %s429_s16 = int_to_ptr.hbm [resolvable:$true] %s428_s16 }
 0x177   :  { %p5746_p11 = por %p5745_p10, %p5744_p9 }
 0x179   :  { %p5747_p12 = pnand %p5746_p11, %p5742_p8 }
 0x17b   :  { %5750 = shalt.err (!%p5747_p12)
}
 0x17c   :  { %409 = dma.hbm_to_vmem [thread:$0]  %s6299_s25, 256, %s404_s6, [#allocation36], %s5882_s2, %s5882_s2, %s5883_s7  }
 0x17d   :  { %s5909_s19 = smov [#allocation40]   ;;  %s454_s28 = sshll.u32 %s6117_s30, 4  ;;  %s455_s28 = int_to_ptr.hbm [resolvable:$true] %s454_s28 }
 0x17e   :  { %s430_s9 = sshll.u32 %s5909_s19, 4  ;;  %s5763_s27 = sshra.s32 %s429_s16, 4  ;;  %s431_s9 = int_to_ptr.vmem [resolvable:$true] %s430_s9  ;;  %s5764_s27 = int_to_ptr.hbm [resolvable:$true] %s5763_s27 }
 0x17f   :  { %s5765_s1 = scalar_lea.hbm %s5764_s27, 1  ;;  %s5767_s0 = scalar_lea.hbm %s7236_s14, 1 }
 0x180   :  { %p5766_p13 = scmp.ne.s32.totalorder %s5764_s27, %s5765_s1  ;;  %p5768_p0 = scmp.lt.s32.totalorder %s5764_s27, %s7236_s14 }
 0x181   :  { %p5769_p1 = scmp.lt.s32.totalorder %s5767_s0, %s5765_s1 }
 0x183   :  { %p5770_p2 = por %p5769_p1, %p5768_p0 }
 0x185   :  { %p5771_p3 = pnand %p5770_p2, %p5766_p13 }
 0x187   :  { %5774 = shalt.err (!%p5771_p3)
}
 0x188   :  { %433 = dma.hbm_to_vmem [thread:$0]  %s429_s16, 16, %s431_s9, [#allocation39]  }
 0x189   :  { %s5910_s17 = smov [#allocation43]   ;;  %s5787_s10 = sshra.s32 %s455_s28, 4  ;;  %s5788_s10 = int_to_ptr.hbm [resolvable:$true] %s5787_s10 }
 0x18a   :  { %s456_s7 = sshll.u32 %s5910_s17, 4  ;;  %s5789_s4 = scalar_lea.hbm %s5788_s10, 1  ;;  %s457_s7 = int_to_ptr.vmem [resolvable:$true] %s456_s7 }
 0x18b   :  { %p5790_p4 = scmp.ne.s32.totalorder %s5788_s10, %s5789_s4  ;;  %s5791_s13 = scalar_lea.hbm %s6117_s30, 1 }
 0x18c   :  { %p5792_p5 = scmp.lt.s32.totalorder %s5788_s10, %s6117_s30  ;;  %p5793_p6 = scmp.lt.s32.totalorder %s5791_s13, %s5789_s4 }
 0x18e   :  { %p5794_p7 = por %p5793_p6, %p5792_p5 }
 0x190   :  { %p5795_p8 = pnand %p5794_p7, %p5790_p4 }
 0x192   :  { %5798 = shalt.err (!%p5795_p8)
}
 0x193   :  { %459 = dma.hbm_to_vmem [thread:$0]  %s455_s28, 16, %s457_s7, [#allocation42]  }
 0x194   :  { %5811 = dma.done.wait [#allocation4], 128  }
 0x195   :  { %5812 = vsyncadd [#allocation4], 4294967168 }
 0x196   :  { %5813 = dma.done.wait [#allocation6], 32  }
 0x197   :  { %5814 = vsyncadd [#allocation6], 4294967264 }
 0x198   :  { %5815 = dma.done.wait [#allocation9], 1024  }
 0x199   :  { %5816 = vsyncadd [#allocation9], 4294966272 }
 0x19a   :  { %5817 = dma.done.wait [#allocation12], 544  }
 0x19b   :  { %5818 = vsyncadd [#allocation12], 4294966752 }
 0x19c   :  { %5819 = dma.done.wait [#allocation15], 112  }
 0x19d   :  { %5820 = vsyncadd [#allocation15], 4294967184 }
 0x19e   :  { %5821 = dma.done.wait [#allocation18], 160  }
 0x19f   :  { %5822 = vsyncadd [#allocation18], 4294967136 }
 0x1a0   :  { %5823 = dma.done.wait [#allocation21], 512  }
 0x1a1   :  { %5824 = vsyncadd [#allocation21], 4294966784 }
 0x1a2   :  { %5825 = dma.done.wait [#allocation24], 272  }
 0x1a3   :  { %5826 = vsyncadd [#allocation24], 4294967024 }
 0x1a4   :  { %5827 = dma.done.wait [#allocation27], 272  }
 0x1a5   :  { %5828 = vsyncadd [#allocation27], 4294967024 }
 0x1a6   :  { %5829 = dma.done.wait [#allocation30], 272  }
 0x1a7   :  { %5830 = vsyncadd [#allocation30], 4294967024 }
 0x1a8   :  { %5831 = dma.done.wait [#allocation33], 272  }
 0x1a9   :  { %5832 = vsyncadd [#allocation33], 4294967024 }
 0x1aa   :  { %5833 = dma.done.wait [#allocation36], 272  }
 0x1ab   :  { %5834 = vsyncadd [#allocation36], 4294967024 }
 0x1ac   :  { %5835 = dma.done.wait [#allocation39], 272  }
 0x1ad   :  { %5836 = vsyncadd [#allocation39], 4294967024 }
 0x1ae   :  { %5837 = dma.done.wait [#allocation42], 32  }
 0x1af   :  { %5838 = vsyncadd [#allocation42], 4294967264  ;;  %s7237_s30 = sld [smem:[#allocation58_spill]]  ;;  %v4750_v0 = vld [vmem:[#allocation3] sm:$0xff]  ;;  %vm587_vm0 = vcmask 130048   ;;  %vm635_vm1 = vcmask 261120  }
 0x1b0   :  { %s7238_s12 = sld [smem:[#allocation59_spill]]  ;;  %601 = vmatpush.bf16.msra.mxu0 %v4750_v0  ;;  %v4922_v10 = vld [vmem:[#allocation5] ss:$0 sm:$0xff]  ;;  %v4756_v20 = vld [vmem:[#allocation8 + $0x8] sm:$0xff]  ;;  %v4755_v21 = vld [vmem:[#allocation8] sm:$0xff]  ;;  %s5911_s5 = smov 32  }
 0x1b1   :  { %699 = vmatpush.bf16.msra.mxu2 %v4756_v20  ;;  %4845 = vmatpush.bf16.msra.mxu3 %v4756_v20  ;;  %v4754_v22 = vld [vmem:[#allocation10 + $0x8] sm:$0xff]  ;;  %v4753_v23 = vld [vmem:[#allocation10] sm:$0xff]  ;;  %v4923_v25 = vld [vmem:[#allocation7] ss:$0 sm:$0xff]  ;;  %s7239_s15 = sld [smem:[#allocation63_spill]]  ;;  %s5912_s25 = smov 96  }
 0x1b2   :  { %s7240_s20 = sld [smem:[#allocation64_spill]]  ;;  %v6345_v37 = vld [vmem:[#allocation11] ss:$0 sm:$0xff] }
 0x1b3   :  { %s7242_s22 = sld [smem:[#allocation65_spill]] }
 0x1b4   :  { %875 = vmatpush.bf16.msrb.mxu0 %v4754_v22  ;;  %s7244_s18 = sld [smem:[#allocation69_spill]] }
 0x1b5   :  { %v569_v1 = vld [vmem:[%s7237_s30] sm:$0xff]  ;;  %v570_v2 = vld [vmem:[%s7237_s30 + $0x8] sm:$0xff]  ;;  %v571_v4 = vld [vmem:[%s7237_s30 + $0x10] sm:$0xff]  ;;  %700 = vmatpush.bf16.msra.mxu2 %v4755_v21  ;;  %4846 = vmatpush.bf16.msra.mxu3 %v4755_v21  ;;  %s7245_s26 = sld [smem:[#allocation73_spill]] }
 0x1b6   :  { %v575_v3 = vpack.c.bf16 %v570_v2, %v569_v1  ;;  %v572_v5 = vld [vmem:[%s7237_s30 + $0x18] sm:$0xff]  ;;  %v4752_v7 = vld [vmem:[%s7238_s12 + $0x8] sm:$0xff]  ;;  %v4751_v8 = vld [vmem:[%s7238_s12] sm:$0xff]  ;;  %s7246_s14 = sld [smem:[#allocation72_spill]] }
 0x1b7   :  { %v576_v6 = vpack.c.bf16 %v572_v5, %v571_v4  ;;  %648 = vmatpush.bf16.msra.mxu1 %v4752_v7  ;;  %v712_v35 = vld [vmem:[%s7239_s15] sm:$0xf]  ;;  %s7247_s16 = sld [smem:[#allocation77_spill]] }
 0x1b8   :  { %4163 = vmatmul.msk.bf16.vlgmr.msra.gmra.mxu0 %vm587_vm0, %v575_v3  ;;  %v714_v36 = vpack.c.bf16 %v712_v35, %v712_v35  ;;  %v713_v47 = vld [vmem:[%s7240_s20] sm:$0xf]  ;;  %s7248_s11 = sld [smem:[#allocation81_spill]] }
 0x1b9   :  { %736 = vmatpush.bf16.msrb.mxu3 %v4754_v22  ;;  %1011 = vmatpush.bf16.msrb.mxu2 %v4754_v22 }
 0x1ba   :  { %876 = vmatpush.bf16.msrb.mxu0 %v4753_v23 }
 0x1bb   :  { %649 = vmatpush.bf16.msra.mxu1 %v4751_v8 }
 0x1bd   :  { %737 = vmatpush.bf16.msrb.mxu3 %v4753_v23  ;;  %1012 = vmatpush.bf16.msrb.mxu2 %v4753_v23 }
 0x1be   :  { %1147 = vmatpush.bf16.msra.mxu0 %v4754_v22 }
 0x1bf   :  { %941 = vmatpush.bf16.msrb.mxu1 %v4754_v22 }
 0x1c2   :  { %1148 = vmatpush.bf16.msra.mxu0 %v4753_v23 }
 0x1c3   :  { %942 = vmatpush.bf16.msrb.mxu1 %v4753_v23 }
 0x1c8   :  { %4164 = vmatmul.msk.bf16.gmra.mxu0 %vm587_vm0, %v576_v6 }
 0x235   :  { %v603_v9 = vpop.f32.mrf.mxu0 }
 0x236   :  { %v604_v12 = vadd.f32 %v4922_v10, %v603_v9 }
 0x23d   :  { %v605_v11 = vpop.f32.mrf.mxu0 }
 0x23e   :  { %v606_v13 = vadd.f32 %v4922_v10, %v605_v11 }
 0x240   :  { %v617_v14 = vpack.c.bf16 %v606_v13, %v604_v12 }
 0x242   :  { %4173 = vmatmul.msk.bf16.vlgmr.msra.gmra.mxu1 %vm635_vm1, %v617_v14 }
 0x243   :  { %1213 = vmatpush.bf16.msra.mxu1 %v4754_v22 }
 0x245   :  { %v608_v15 = vpop.f32.mrf.mxu0 }
 0x246   :  { %v609_v17 = vadd.f32 %v4922_v10, %v608_v15 }
 0x247   :  { %1214 = vmatpush.bf16.msra.mxu1 %v4753_v23 }
 0x24d   :  { %v610_v16 = vpop.f32.mrf.mxu0 }
 0x24e   :  { %v611_v18 = vadd.f32 %v4922_v10, %v610_v16 }
 0x250   :  { %v618_v19 = vpack.c.bf16 %v611_v18, %v609_v17 }
 0x252   :  { %4174 = vmatmul.msk.bf16.gmra.mxu1 %vm635_vm1, %v618_v19 }
 0x2bf   :  { %v651_v24 = vpop.f32.mrf.mxu1 }
 0x2c0   :  { %v6329_v27 = vadd.f32 %v4923_v25, %v651_v24 }
 0x2c7   :  { %v653_v26 = vpop.f32.mrf.mxu1 }
 0x2c8   :  { %v6331_v28 = vadd.f32 %v4923_v25, %v653_v26 }
 0x2ca   :  { %v669_v29 = vpack.c.bf16 %v6331_v28, %v6329_v27 }
 0x2cc   :  { %4183 = vmatmul.msk.bf16.vlgmr.msra.gmra.mxu2 %vm635_vm1, %v669_v29 }
 0x2cf   :  { %v656_v30 = vpop.f32.mrf.mxu1 }
 0x2d0   :  { %v6336_v32 = vadd.f32 %v4923_v25, %v656_v30 }
 0x2d7   :  { %v658_v31 = vpop.f32.mrf.mxu1 }
 0x2d8   :  { %v6338_v33 = vadd.f32 %v4923_v25, %v658_v31 }
 0x2da   :  { %v670_v34 = vpack.c.bf16 %v6338_v33, %v6336_v32 }
 0x2dc   :  { %4184 = vmatmul.msk.bf16.vlgmr.msra.gmra.mxu3 %vm635_vm1, %v670_v34 }
 0x2dd   :  { %804 = vmatpush.bf16.msra.mxu3 %v4754_v22 }
 0x2e1   :  { %805 = vmatpush.bf16.msra.mxu3 %v4753_v23 }
 0x2ec   :  { %4193 = vmatmul.msk.bf16.vlgmr.msrb.gmra.mxu3 %vm635_vm1, %v714_v36 }
 0x2ed   :  { %1077 = vmatpush.bf16.msrb.mxu3 %v4754_v22 }
 0x2f1   :  { %1078 = vmatpush.bf16.msrb.mxu3 %v4753_v23 }
 0x34f   :  { %v702_v41 = vpop.f32.mrf.mxu2 }
 0x350   :  { %v703_v42 = vadd.f32 %v6345_v37, %v702_v41 }
 0x35f   :  { %v707_v38 = vpop.f32.mrf.mxu3 }
 0x360   :  { %v6348_v39 = vadd.f32 %v6345_v37, %v707_v38 }
 0x367   :  { %v6350_v40 = vpop.f32.mrf.mxu3 }
 0x36f   :  { %v739_v43 = vpop.f32.mrf.mxu3 }
 0x370   :  { %v743_v44 = vadd.f32 %v739_v43, %v703_v42 }
 0x372   :  { %4952 = vtanh.f32 %v743_v44  ;;  %v4194_v48 = vmul.f32 -1.442695, %v743_v44 }
 0x374   :  { %4954 = vpow2.f32 %v4194_v48 }
 0x377   :  { %v741_v45 = vpop.f32.mrf.mxu3 }
 0x378   :  { %v4953_v46 = vpop.eup %4952  ;;  %v704_v45 = vpop.f32.mrf.mxu2 }
 0x379   :  { %770 = vrot.lane.b32.xlu0 %v4953_v46, %s5882_s2  ;;  %v705_v46 = vadd.f32 %v6345_v37, %v704_v45 }
 0x37a   :  { %v4955_v49 = vpop.eup %4954 }
 0x37b   :  { %v747_v50 = vadd.f32 1.0, %v4955_v49 }
 0x37d   :  { %4956 = vrcp.f32 %v747_v50  ;;  %v759_v56 = vand.u32 2147483648, %v747_v50  ;;  %vm753_vm3 = vweird.f32 %v747_v50  ;;  %v757_v57 = vand.u32 2147483647, %v747_v50 }
 0x37f   :  { %v760_v59 = vor.u32 1.1754944e-38, %v759_v56  ;;  %vm758_vm5 = vcmp.eq.f32.partialorder %v757_v57, 8.507059e+37 }
 0x381   :  { %765 = vrot.lane.b32.xlu0 %v713_v47, %s5911_s5 }
 0x383   :  { %v4957_v51 = vpop.eup %4956 }
 0x384   :  { %v749_v52 = vmul.f32 %v4957_v51, %v747_v50  ;;  %vm754_vm2 = vweird.f32 %v4957_v51 }
 0x385   :  { %vm755_vm4 = vmor %vm753_vm3, %vm754_vm2 }
 0x386   :  { %v750_v53 = vsub.f32 1.0, %v749_v52 }
 0x388   :  { %v751_v54 = vmul.f32 %v4957_v51, %v750_v53 }
 0x38a   :  { %v752_v55 = vadd.f32 %v4957_v51, %v751_v54 }
 0x38c   :  { %v756_v58 = vsel %vm755_vm4, %v4957_v51, %v752_v55 }
 0x38d   :  { %v761_v61 = vsel %vm758_vm5, %v760_v59, %v756_v58 }
 0x3eb   :  { %v771_v60 = vpop.permute.xlu0 %770 }
 0x3ec   :  { %v773_v62 = vmul.f32 %v771_v60, %v761_v61 }
 0x3ee   :  { %775 = vrot.lane.b32.xlu1 %v773_v62, %s5911_s5 }
 0x3f3   :  { %v766_v63 = vpop.permute.xlu0 %765 }
 0x3f4   :  { %v768_v0 = vmul.f32 %v766_v63, %v761_v61 }
 0x460   :  { %v776_v1 = vpop.permute.xlu1 %775 }
 0x461   :  { %v778_v2 = vadd.f32 %v776_v1, %v768_v0 }
 0x463   :  { %4958 = vtanh.f32 %v778_v2  ;;  %v836_v30 = vrot.slane %v778_v2, 4 }
 0x469   :  { %v4959_v3 = vpop.eup %4958 }
 0x46a   :  { %781 = vrot.lane.b32.xlu1 %v4959_v3, %s5882_s2 }
 0x4dc   :  { %v782_v4 = vpop.permute.xlu1 %781 }
 0x4dd   :  { %v6358_v5 = vmul.f32 %v782_v4, %v761_v61 }
 0x4df   :  { %v791_v6 = vpack.c.bf16 %v6358_v5, %v6358_v5 }
 0x4e1   :  { %793 = vrot.lane.b32.xlu2 %v791_v6, %s5911_s5 }
 0x53b   :  { %v794_v7 = vpop.permute.xlu2 %793 }
 0x53c   :  { %4195 = vmatmul.msk.bf16.vlgmr.msra.gmra.mxu3 %vm635_vm1, %v794_v7 }
 0x5bf   :  { %v807_v8 = vpop.f32.mrf.mxu3 }
 0x5c0   :  { %v812_v9 = vrot.slane %v807_v8, 4 }
 0x5c2   :  { %v814_v10 = vadd.f32 %v812_v9, %v703_v42 }
 0x5c4   :  { %4960 = vtanh.f32 %v814_v10  ;;  %v4196_v13 = vmul.f32 -1.442695, %v814_v10 }
 0x5c6   :  { %4962 = vpow2.f32 %v4196_v13 }
 0x5c7   :  { %v809_v11 = vpop.f32.mrf.mxu3 }
 0x5ca   :  { %v4961_v12 = vpop.eup %4960 }
 0x5cb   :  { %840 = vrot.lane.b32.xlu2 %v4961_v12, %s5882_s2 }
 0x5cc   :  { %v4963_v14 = vpop.eup %4962 }
 0x5cd   :  { %v818_v15 = vadd.f32 1.0, %v4963_v14 }
 0x5cf   :  { %4964 = vrcp.f32 %v818_v15  ;;  %v830_v21 = vand.u32 2147483648, %v818_v15  ;;  %vm824_vm7 = vweird.f32 %v818_v15  ;;  %v828_v22 = vand.u32 2147483647, %v818_v15 }
 0x5d1   :  { %v831_v24 = vor.u32 1.1754944e-38, %v830_v21  ;;  %vm829_vm9 = vcmp.eq.f32.partialorder %v828_v22, 8.507059e+37 }
 0x5d5   :  { %v4965_v16 = vpop.eup %4964 }
 0x5d6   :  { %v820_v17 = vmul.f32 %v4965_v16, %v818_v15  ;;  %vm825_vm6 = vweird.f32 %v4965_v16 }
 0x5d7   :  { %vm826_vm8 = vmor %vm824_vm7, %vm825_vm6  ;;  %vm789_vm7 = vcmask 257024  }
 0x5d8   :  { %v821_v18 = vsub.f32 1.0, %v820_v17 }
 0x5da   :  { %v822_v19 = vmul.f32 %v4965_v16, %v821_v18 }
 0x5dc   :  { %v823_v20 = vadd.f32 %v4965_v16, %v822_v19 }
 0x5de   :  { %v827_v23 = vsel %vm826_vm8, %v4965_v16, %v823_v20  ;;  %vm859_vm8 = vcmask 261124  }
 0x5df   :  { %v832_v26 = vsel %vm829_vm9, %v831_v24, %v827_v23 }
 0x5e0   :  { %v838_v31 = vmul.f32 %v836_v30, %v832_v26 }
 0x625   :  { %v841_v25 = vpop.permute.xlu2 %840 }
 0x626   :  { %v843_v29 = vmul.f32 %v841_v25, %v832_v26 }
 0x628   :  { %845 = vrot.lane.b32.xlu0 %v843_v29, %s5911_s5 }
 0x69a   :  { %v846_v34 = vpop.permute.xlu0 %845 }
 0x69b   :  { %v848_v35 = vadd.f32 %v846_v34, %v838_v31 }
 0x69d   :  { %4966 = vtanh.f32 %v848_v35  ;;  %v904_v2 = vrot.slane %v848_v35, 4 }
 0x6a3   :  { %v4967_v36 = vpop.eup %4966 }
 0x6a4   :  { %851 = vrot.lane.b32.xlu1 %v4967_v36, %s5882_s2 }
 0x716   :  { %v852_v38 = vpop.permute.xlu1 %851 }
 0x717   :  { %v6367_v41 = vmul.f32 %v852_v38, %v832_v26 }
 0x719   :  { %v861_v42 = vpack.c.bf16 %v6367_v41, %v6367_v41 }
 0x71b   :  { %v863_v43 = vrot.slane %v861_v42, 2 }
 0x71d   :  { %864 = vrot.lane.b32.xlu2 %v863_v43, %s5911_s5 }
 0x777   :  { %v865_v44 = vpop.permute.xlu2 %864 }
 0x778   :  { %4197 = vmatmul.msk.bf16.vlgmr.msrb.gmra.mxu0 %vm635_vm1, %v865_v44 }
 0x7f5   :  { %v878_v47 = vpop.f32.mrf.mxu0 }
 0x7f6   :  { %v882_v48 = vadd.f32 %v878_v47, %v705_v46 }
 0x7f8   :  { %4968 = vtanh.f32 %v882_v48  ;;  %v4198_v51 = vmul.f32 -1.442695, %v882_v48 }
 0x7fa   :  { %4970 = vpow2.f32 %v4198_v51 }
 0x7fd   :  { %v880_v49 = vpop.f32.mrf.mxu0 }
 0x7fe   :  { %v4969_v50 = vpop.eup %4968 }
 0x7ff   :  { %908 = vrot.lane.b32.xlu0 %v4969_v50, %s5882_s2 }
 0x800   :  { %v4971_v52 = vpop.eup %4970 }
 0x801   :  { %v886_v53 = vadd.f32 1.0, %v4971_v52 }
 0x803   :  { %4972 = vrcp.f32 %v886_v53  ;;  %v898_v59 = vand.u32 2147483648, %v886_v53  ;;  %vm892_vm11 = vweird.f32 %v886_v53  ;;  %v896_v60 = vand.u32 2147483647, %v886_v53 }
 0x805   :  { %v899_v62 = vor.u32 1.1754944e-38, %v898_v59  ;;  %vm897_vm13 = vcmp.eq.f32.partialorder %v896_v60, 8.507059e+37 }
 0x809   :  { %v4973_v54 = vpop.eup %4972 }
 0x80a   :  { %v888_v55 = vmul.f32 %v4973_v54, %v886_v53  ;;  %vm893_vm10 = vweird.f32 %v4973_v54 }
 0x80b   :  { %vm894_vm12 = vmor %vm892_vm11, %vm893_vm10 }
 0x80c   :  { %v889_v56 = vsub.f32 1.0, %v888_v55 }
 0x80e   :  { %v890_v57 = vmul.f32 %v4973_v54, %v889_v56 }
 0x810   :  { %v891_v58 = vadd.f32 %v4973_v54, %v890_v57 }
 0x812   :  { %v895_v61 = vsel %vm894_vm12, %v4973_v54, %v891_v58 }
 0x813   :  { %v900_v0 = vsel %vm897_vm13, %v899_v62, %v895_v61 }
 0x814   :  { %v906_v3 = vmul.f32 %v904_v2, %v900_v0 }
 0x871   :  { %v909_v63 = vpop.permute.xlu0 %908 }
 0x872   :  { %v911_v1 = vmul.f32 %v909_v63, %v900_v0 }
 0x874   :  { %913 = vrot.lane.b32.xlu1 %v911_v1, %s5911_s5 }
 0x8e6   :  { %v914_v4 = vpop.permute.xlu1 %913 }
 0x8e7   :  { %v916_v6 = vadd.f32 %v914_v4, %v906_v3 }
 0x8e9   :  { %4974 = vtanh.f32 %v916_v6  ;;  %v973_v36 = vrot.slane %v916_v6, 4 }
 0x8ef   :  { %v4975_v7 = vpop.eup %4974 }
 0x8f0   :  { %919 = vrot.lane.b32.xlu2 %v4975_v7, %s5882_s2 }
 0x94a   :  { %v920_v8 = vpop.permute.xlu2 %919 }
 0x94b   :  { %v6377_v9 = vmul.f32 %v920_v8, %v900_v0 }
 0x94d   :  { %v928_v10 = vpack.c.bf16 %v6377_v9, %v6377_v9 }
 0x94f   :  { %930 = vrot.lane.b32.xlu0 %v928_v10, %s5911_s5 }
 0x9c1   :  { %v931_v11 = vpop.permute.xlu0 %930 }
 0x9c2   :  { %4199 = vmatmul.msk.bf16.vlgmr.msrb.gmra.mxu1 %vm635_vm1, %v931_v11 }
 0xa3f   :  { %v944_v12 = vpop.f32.mrf.mxu1 }
 0xa40   :  { %v949_v13 = vrot.slane %v944_v12, 4 }
 0xa42   :  { %v951_v14 = vadd.f32 %v949_v13, %v705_v46 }
 0xa44   :  { %4976 = vtanh.f32 %v951_v14  ;;  %v4200_v17 = vmul.f32 -1.442695, %v951_v14 }
 0xa46   :  { %4978 = vpow2.f32 %v4200_v17  ;;  %v4758_v17 = vld [vmem:[#allocation13 + $0x8] sm:$0xff] }
 0xa47   :  { %v946_v15 = vpop.f32.mrf.mxu1  ;;  %1310 = vmatpush.bf16.msra.mxu2 %v4758_v17 }
 0xa4a   :  { %v4977_v16 = vpop.eup %4976 }
 0xa4b   :  { %977 = vrot.lane.b32.xlu1 %v4977_v16, %s5882_s2 }
 0xa4c   :  { %v4979_v18 = vpop.eup %4978 }
 0xa4d   :  { %v955_v19 = vadd.f32 1.0, %v4979_v18  ;;  %v4757_v18 = vld [vmem:[#allocation13] sm:$0xff] }
 0xa4e   :  { %1311 = vmatpush.bf16.msra.mxu2 %v4757_v18 }
 0xa4f   :  { %4980 = vrcp.f32 %v955_v19  ;;  %v967_v25 = vand.u32 2147483648, %v955_v19  ;;  %vm961_vm15 = vweird.f32 %v955_v19  ;;  %v965_v26 = vand.u32 2147483647, %v955_v19 }
 0xa51   :  { %v968_v30 = vor.u32 1.1754944e-38, %v967_v25  ;;  %vm966_vm2 = vcmp.eq.f32.partialorder %v965_v26, 8.507059e+37 }
 0xa55   :  { %v4981_v20 = vpop.eup %4980 }
 0xa56   :  { %v957_v21 = vmul.f32 %v4981_v20, %v955_v19  ;;  %vm962_vm14 = vweird.f32 %v4981_v20 }
 0xa57   :  { %vm963_vm0 = vmor %vm961_vm15, %vm962_vm14 }
 0xa58   :  { %v958_v22 = vsub.f32 1.0, %v957_v21 }
 0xa5a   :  { %v959_v23 = vmul.f32 %v4981_v20, %v958_v22 }
 0xa5c   :  { %v960_v24 = vadd.f32 %v4981_v20, %v959_v23  ;;  %v4762_v23 = vld [vmem:[#allocation8 + $0x18] sm:$0xff] }
 0xa5d   :  { %1380 = vmatpush.bf16.msra.mxu3 %v4762_v23 }
 0xa5e   :  { %v964_v29 = vsel %vm963_vm0, %v4981_v20, %v960_v24  ;;  %v4761_v24 = vld [vmem:[#allocation8 + $0x10] sm:$0xff] }
 0xa5f   :  { %v969_v34 = vsel %vm966_vm2, %v968_v30, %v964_v29 }
 0xa60   :  { %v975_v38 = vmul.f32 %v973_v36, %v969_v34 }
 0xa61   :  { %1381 = vmatpush.bf16.msra.mxu3 %v4761_v24 }
 0xabd   :  { %v978_v31 = vpop.permute.xlu1 %977 }
 0xabe   :  { %v980_v35 = vmul.f32 %v978_v31, %v969_v34 }
 0xac0   :  { %982 = vrot.lane.b32.xlu2 %v980_v35, %s5911_s5  ;;  %v6416_v35 = vld [vmem:[#allocation14] ss:$0 sm:$0xff] }
 0xb1a   :  { %v983_v42 = vpop.permute.xlu2 %982 }
 0xb1b   :  { %v985_v43 = vadd.f32 %v983_v42, %v975_v38 }
 0xb1d   :  { %4982 = vtanh.f32 %v985_v43  ;;  %v1040_v6 = vrot.slane %v985_v43, 4 }
 0xb23   :  { %v4983_v44 = vpop.eup %4982 }
 0xb24   :  { %988 = vrot.lane.b32.xlu0 %v4983_v44, %s5882_s2 }
 0xb96   :  { %v989_v45 = vpop.permute.xlu0 %988 }
 0xb97   :  { %v991_v46 = vmul.f32 %v989_v45, %v969_v34 }
 0xb99   :  { %v997_v47 = vpack.c.bf16 %v991_v46, %v991_v46 }
 0xb9b   :  { %v999_v48 = vrot.slane %v997_v47, 2 }
 0xb9d   :  { %1000 = vrot.lane.b32.xlu1 %v999_v48, %s5911_s5 }
 0xc0f   :  { %v1001_v49 = vpop.permute.xlu1 %1000 }
 0xc10   :  { %4201 = vmatmul.msk.bf16.vlgmr.msrb.gmra.mxu2 %vm635_vm1, %v1001_v49 }
 0xc93   :  { %v1014_v50 = vpop.f32.mrf.mxu2 }
 0xc94   :  { %v1018_v51 = vadd.f32 %v1014_v50, %v6348_v39 }
 0xc96   :  { %4984 = vtanh.f32 %v1018_v51  ;;  %v4202_v54 = vmul.f32 -1.442695, %v1018_v51 }
 0xc98   :  { %4986 = vpow2.f32 %v4202_v54 }
 0xc9b   :  { %v1016_v52 = vpop.f32.mrf.mxu2 }
 0xc9c   :  { %v4985_v53 = vpop.eup %4984 }
 0xc9d   :  { %1044 = vrot.lane.b32.xlu2 %v4985_v53, %s5882_s2 }
 0xc9e   :  { %v4987_v55 = vpop.eup %4986 }
 0xc9f   :  { %v1022_v56 = vadd.f32 1.0, %v4987_v55 }
 0xca1   :  { %4988 = vrcp.f32 %v1022_v56  ;;  %v1034_v62 = vand.u32 2147483648, %v1022_v56  ;;  %vm1028_vm4 = vweird.f32 %v1022_v56  ;;  %v1032_v63 = vand.u32 2147483647, %v1022_v56 }
 0xca3   :  { %v1035_v1 = vor.u32 1.1754944e-38, %v1034_v62  ;;  %vm1033_vm6 = vcmp.eq.f32.partialorder %v1032_v63, 8.507059e+37 }
 0xca7   :  { %v4989_v57 = vpop.eup %4988 }
 0xca8   :  { %v1024_v58 = vmul.f32 %v4989_v57, %v1022_v56  ;;  %vm1029_vm3 = vweird.f32 %v4989_v57 }
 0xca9   :  { %vm1030_vm5 = vmor %vm1028_vm4, %vm1029_vm3 }
 0xcaa   :  { %v1025_v59 = vsub.f32 1.0, %v1024_v58 }
 0xcac   :  { %v1026_v60 = vmul.f32 %v4989_v57, %v1025_v59 }
 0xcae   :  { %v1027_v61 = vadd.f32 %v4989_v57, %v1026_v60 }
 0xcb0   :  { %v1031_v0 = vsel %vm1030_vm5, %v4989_v57, %v1027_v61 }
 0xcb1   :  { %v1036_v3 = vsel %vm1033_vm6, %v1035_v1, %v1031_v0 }
 0xcb2   :  { %v1042_v7 = vmul.f32 %v1040_v6, %v1036_v3  ;;  %v6446_v6 = vld [vmem:[#allocation10 + $0x10] sm:$0xff] }
 0xcf7   :  { %v1045_v2 = vpop.permute.xlu2 %1044 }
 0xcf8   :  { %v1047_v4 = vmul.f32 %v1045_v2, %v1036_v3 }
 0xcfa   :  { %1049 = vrot.lane.b32.xlu0 %v1047_v4, %s5911_s5  ;;  %v6443_v4 = vld [vmem:[#allocation10 + $0x18] sm:$0xff] }
 0xcfb   :  { %1419 = vmatpush.bf16.msrb.mxu0 %v6443_v4  ;;  %1486 = vmatpush.bf16.msrb.mxu1 %v6443_v4 }
 0xcfc   :  { %1692 = vmatpush.bf16.msrb.mxu2 %v6443_v4 }
 0xcff   :  { %1420 = vmatpush.bf16.msrb.mxu0 %v6446_v6  ;;  %1487 = vmatpush.bf16.msrb.mxu1 %v6446_v6 }
 0xd00   :  { %1693 = vmatpush.bf16.msrb.mxu2 %v6446_v6 }
 0xd02   :  { %786 = vrot.lane.b32.xlu0 %v6358_v5, %s5911_s5 }
 0xd0a   :  { %993 = vrot.lane.b32.xlu0 %v991_v46, %s5911_s5 }
 0xd6c   :  { %v1050_v8 = vpop.permute.xlu0 %1049 }
 0xd6d   :  { %v6394_v10 = vadd.f32 %v1050_v8, %v1042_v7  ;;  %v4230_v8 = vld [vmem:[%s7239_s15 + $0x4] sm:$0xf] }
 0xd6f   :  { %4990 = vtanh.f32 %v6394_v10  ;;  %v1109_v59 = vrot.slane %v6394_v10, 4  ;;  %v1397_v10 = vpack.c.bf16 %v4230_v8, %v4230_v8 }
 0xd74   :  { %v787_v11 = vpop.permute.xlu0 %786 }
 0xd75   :  { %v4991_v12 = vpop.eup %4990  ;;  %790 = vst.msk [vmem:[#allocation2] sm:$0xf] %vm789_vm7, %v787_v11  ;;  %v6464_v11 = vadd.f32 %v6345_v37, %v6350_v40 }
 0xd76   :  { %1055 = vrot.lane.b32.xlu1 %v4991_v12, %s5882_s2 }
 0xd7c   :  { %v994_v13 = vpop.permute.xlu0 %993 }
 0xd7d   :  { %996 = vst.msk [vmem:[#allocation2 + $0x8] sm:$0xf0] %vm859_vm8, %v994_v13 }
 0xd7e   :  { %856 = vrot.lane.b32.xlu1 %v6367_v41, %s5911_s5 }
 0xde8   :  { %v1056_v5 = vpop.permute.xlu1 %1055 }
 0xde9   :  { %v6402_v14 = vmul.f32 %v1056_v5, %v1036_v3 }
 0xdeb   :  { %v1064_v15 = vpack.c.bf16 %v6402_v14, %v6402_v14 }
 0xded   :  { %1066 = vrot.lane.b32.xlu2 %v1064_v15, %s5911_s5 }
 0xdf0   :  { %v857_v16 = vpop.permute.xlu1 %856 }
 0xdf1   :  { %860 = vst.msk [vmem:[#allocation2] sm:$0xf0] %vm859_vm8, %v857_v16  ;;  %v6468_v16 = vld [vmem:[#allocation11 + $0x1] ss:$0 sm:$0xff] }
 0xdf5   :  { %924 = vrot.lane.b32.xlu2 %v6377_v9, %s5911_s5 }
 0xdf8   :  { %v1276_v20 = vld [vmem:[#allocation2] sm:$0xff] }
 0xe47   :  { %v1067_v19 = vpop.permute.xlu2 %1066 }
 0xe48   :  { %4203 = vmatmul.msk.bf16.vlgmr.msrb.gmra.mxu3 %vm635_vm1, %v1067_v19  ;;  %v4231_v19 = vld [vmem:[%s7240_s20 + $0x4] sm:$0xf] }
 0xe49   :  { %1758 = vmatpush.bf16.msrb.mxu3 %v6443_v4 }
 0xe4d   :  { %1759 = vmatpush.bf16.msrb.mxu3 %v6446_v6 }
 0xe4f   :  { %v925_v41 = vpop.permute.xlu2 %924 }
 0xe50   :  { %927 = vst.msk [vmem:[#allocation2 + $0x8] sm:$0xf] %vm789_vm7, %v925_v41 }
 0xe57   :  { %v1277_v21 = vld [vmem:[#allocation2 + $0x8] sm:$0xff] }
 0xe58   :  { %v1284_v22 = vpack.c.bf16 %v1277_v21, %v1276_v20 }
 0xe5a   :  { %4218 = vmatmul.msk.bf16.vlgmr.msra.gmra.mxu2 %vm635_vm1, %v1284_v22 }
 0xecb   :  { %v1080_v25 = vpop.f32.mrf.mxu3 }
 0xecc   :  { %v1085_v9 = vrot.slane %v1080_v25, 4 }
 0xece   :  { %v1087_v26 = vadd.f32 %v1085_v9, %v6348_v39 }
 0xed0   :  { %4992 = vtanh.f32 %v1087_v26  ;;  %v4204_v45 = vmul.f32 -1.442695, %v1087_v26 }
 0xed2   :  { %4994 = vpow2.f32 %v4204_v45 }
 0xed3   :  { %v1082_v29 = vpop.f32.mrf.mxu3 }
 0xed6   :  { %v4993_v30 = vpop.eup %4992 }
 0xed7   :  { %1113 = vrot.lane.b32.xlu1 %v4993_v30, %s5882_s2 }
 0xed8   :  { %v4995_v46 = vpop.eup %4994 }
 0xed9   :  { %v1091_v47 = vadd.f32 1.0, %v4995_v46 }
 0xedb   :  { %4996 = vrcp.f32 %v1091_v47  ;;  %v1103_v52 = vand.u32 2147483648, %v1091_v47  ;;  %vm1097_vm10 = vweird.f32 %v1091_v47  ;;  %v1101_v53 = vand.u32 2147483647, %v1091_v47 }
 0xedd   :  { %v1313_v31 = vpop.f32.mrf.mxu2  ;;  %v1104_v55 = vor.u32 1.1754944e-38, %v1103_v52  ;;  %vm1102_vm12 = vcmp.eq.f32.partialorder %v1101_v53, 8.507059e+37 }
 0xede   :  { %v1323_v34 = vadd.f32 %v1313_v31, %v6329_v27 }
 0xee0   :  { %v6419_v38 = vadd.f32 %v6416_v35, %v1323_v34 }
 0xee2   :  { %v1335_v39 = vmax.f32 %v6419_v38, 0.0  ;;  %v4775_v38 = vld [vmem:[%s7242_s22 + $0x10] sm:$0xff] }
 0xee5   :  { %v1315_v36 = vpop.f32.mrf.mxu2 }
 0xee6   :  { %v1324_v42 = vadd.f32 %v1315_v36, %v6331_v28  ;;  %v4997_v28 = vpop.eup %4996 }
 0xee7   :  { %v1093_v48 = vmul.f32 %v4997_v28, %v1091_v47  ;;  %vm1098_vm9 = vweird.f32 %v4997_v28 }
 0xee8   :  { %v6423_v43 = vadd.f32 %v6416_v35, %v1324_v42  ;;  %vm1099_vm11 = vmor %vm1097_vm10, %vm1098_vm9 }
 0xee9   :  { %v1094_v49 = vsub.f32 1.0, %v1093_v48 }
 0xeea   :  { %v1336_v44 = vmax.f32 %v6423_v43, 0.0 }
 0xeeb   :  { %v1095_v50 = vmul.f32 %v4997_v28, %v1094_v49 }
 0xeec   :  { %v1349_v27 = vpack.c.bf16 %v1336_v44, %v1335_v39 }
 0xeed   :  { %v1096_v51 = vadd.f32 %v4997_v28, %v1095_v50 }
 0xeee   :  { %4228 = vmatmul.msk.bf16.vlgmr.msra.gmra.mxu3 %vm635_vm1, %v1349_v27 }
 0xeef   :  { %v1100_v54 = vsel %vm1099_vm11, %v4997_v28, %v1096_v51 }
 0xef0   :  { %v1105_v57 = vsel %vm1102_vm12, %v1104_v55, %v1100_v54 }
 0xef1   :  { %v1111_v60 = vmul.f32 %v1109_v59, %v1105_v57 }
 0xf49   :  { %v1114_v56 = vpop.permute.xlu1 %1113 }
 0xf4a   :  { %v1116_v58 = vmul.f32 %v1114_v56, %v1105_v57 }
 0xf4c   :  { %1118 = vrot.lane.b32.xlu2 %v1116_v58, %s5911_s5 }
 0xf71   :  { %v1383_v17 = vpop.f32.mrf.mxu3 }
 0xf72   :  { %v6471_v18 = vadd.f32 %v6468_v16, %v1383_v17 }
 0xfa6   :  { %v1119_v61 = vpop.permute.xlu2 %1118 }
 0xfa7   :  { %v6434_v62 = vadd.f32 %v1119_v61, %v1111_v60 }
 0xfa9   :  { %4998 = vtanh.f32 %v6434_v62  ;;  %v1176_v60 = vrot.slane %v6434_v62, 4 }
 0xfaf   :  { %v4999_v63 = vpop.eup %4998 }
 0xfb0   :  { %1124 = vrot.lane.b32.xlu0 %v4999_v63, %s5882_s2 }
0x1022   :  { %v1125_v0 = vpop.permute.xlu0 %1124 }
0x1023   :  { %v6438_v1 = vmul.f32 %v1125_v0, %v1105_v57 }
0x1025   :  { %v1133_v2 = vpack.c.bf16 %v6438_v1, %v6438_v1 }
0x1027   :  { %v1135_v3 = vrot.slane %v1133_v2, 2 }
0x1029   :  { %1136 = vrot.lane.b32.xlu1 %v1135_v3, %s5911_s5 }
0x109b   :  { %v1137_v7 = vpop.permute.xlu1 %1136 }
0x109c   :  { %4205 = vmatmul.msk.bf16.vlgmr.msra.gmra.mxu0 %vm635_vm1, %v1137_v7 }
0x109d   :  { %1556 = vmatpush.bf16.msra.mxu0 %v6443_v4 }
0x10a1   :  { %1557 = vmatpush.bf16.msra.mxu0 %v6446_v6 }
0x10ac   :  { %4240 = vmatmul.msk.bf16.vlgmr.msrb.gmra.mxu0 %vm635_vm1, %v1397_v10 }
0x10ad   :  { %1828 = vmatpush.bf16.msrb.mxu0 %v6443_v4 }
0x10b1   :  { %1829 = vmatpush.bf16.msrb.mxu0 %v6446_v6 }
0x1119   :  { %v1150_v12 = vpop.f32.mrf.mxu0 }
0x111a   :  { %v1154_v13 = vadd.f32 %v1150_v12, %v6464_v11 }
0x111c   :  { %5000 = vtanh.f32 %v1154_v13  ;;  %v4206_v21 = vmul.f32 -1.442695, %v1154_v13 }
0x1121   :  { %v1152_v5 = vpop.f32.mrf.mxu0 }
0x1122   :  { %v5001_v15 = vpop.eup %5000 }
0x1123   :  { %1180 = vrot.lane.b32.xlu2 %v5001_v15, %s5882_s2 }
0x1129   :  { %v1422_v41 = vpop.f32.mrf.mxu0 }
0x112a   :  { %v1426_v20 = vadd.f32 %v1422_v41, %v6471_v18 }
0x112b   :  { %1448 = vrot.lane.b32.xlu2 %v4231_v19, %s5911_s5 }
0x112c   :  { %5002 = vtanh.f32 %v1426_v20  ;;  %v4241_v31 = vmul.f32 -1.442695, %v1426_v20 }
0x112d   :  { %5004 = vpow2.f32 %v4206_v21 }
0x1131   :  { %v1424_v37 = vpop.f32.mrf.mxu0 }
0x1132   :  { %v5003_v40 = vpop.eup %5002 }
0x1133   :  { %1453 = vrot.lane.b32.xlu0 %v5003_v40, %s5882_s2  ;;  %v5005_v22 = vpop.eup %5004 }
0x1134   :  { %v1158_v23 = vadd.f32 1.0, %v5005_v22 }
0x1136   :  { %5006 = vrcp.f32 %v1158_v23  ;;  %v1170_v30 = vand.u32 2147483648, %v1158_v23  ;;  %vm1164_vm14 = vweird.f32 %v1158_v23  ;;  %v1168_v34 = vand.u32 2147483647, %v1158_v23 }
0x1137   :  { %5008 = vpow2.f32 %v4241_v31 }
0x1138   :  { %v1171_v42 = vor.u32 1.1754944e-38, %v1170_v30  ;;  %vm1169_vm0 = vcmp.eq.f32.partialorder %v1168_v34, 8.507059e+37 }
0x113c   :  { %v5007_v24 = vpop.eup %5006 }
0x113d   :  { %v1160_v25 = vmul.f32 %v5007_v24, %v1158_v23  ;;  %vm1165_vm13 = vweird.f32 %v5007_v24  ;;  %v5009_v47 = vpop.eup %5008 }
0x113e   :  { %vm1166_vm15 = vmor %vm1164_vm14, %vm1165_vm13  ;;  %v1430_v28 = vadd.f32 1.0, %v5009_v47 }
0x113f   :  { %v1161_v9 = vsub.f32 1.0, %v1160_v25 }
0x1140   :  { %5010 = vrcp.f32 %v1430_v28  ;;  %v1442_v53 = vand.u32 2147483648, %v1430_v28  ;;  %vm1436_vm3 = vweird.f32 %v1430_v28  ;;  %v1440_v54 = vand.u32 2147483647, %v1430_v28 }
0x1141   :  { %v1162_v26 = vmul.f32 %v5007_v24, %v1161_v9 }
0x1142   :  { %v1443_v56 = vor.u32 1.1754944e-38, %v1442_v53  ;;  %vm1441_vm5 = vcmp.eq.f32.partialorder %v1440_v54, 8.507059e+37 }
0x1143   :  { %v1163_v29 = vadd.f32 %v5007_v24, %v1162_v26 }
0x1145   :  { %v1167_v36 = vsel %vm1166_vm15, %v5007_v24, %v1163_v29 }
0x1146   :  { %v1172_v45 = vsel %vm1169_vm0, %v1171_v42, %v1167_v36  ;;  %v5011_v48 = vpop.eup %5010 }
0x1147   :  { %v1432_v49 = vmul.f32 %v5011_v48, %v1430_v28  ;;  %vm1437_vm2 = vweird.f32 %v5011_v48  ;;  %v1178_v61 = vmul.f32 %v1176_v60, %v1172_v45 }
0x1148   :  { %vm1438_vm4 = vmor %vm1436_vm3, %vm1437_vm2 }
0x1149   :  { %v1433_v50 = vsub.f32 1.0, %v1432_v49 }
0x114b   :  { %v1434_v51 = vmul.f32 %v5011_v48, %v1433_v50 }
0x114d   :  { %v1435_v52 = vadd.f32 %v5011_v48, %v1434_v51 }
0x114f   :  { %v1439_v55 = vsel %vm1438_vm4, %v5011_v48, %v1435_v52 }
0x1150   :  { %v1444_v57 = vsel %vm1441_vm5, %v1443_v56, %v1439_v55 }
0x117d   :  { %v1181_v27 = vpop.permute.xlu2 %1180 }
0x117e   :  { %v1183_v46 = vmul.f32 %v1181_v27, %v1172_v45 }
0x1180   :  { %1185 = vrot.lane.b32.xlu1 %v1183_v46, %s5911_s5 }
0x1185   :  { %v1449_v3 = vpop.permute.xlu2 %1448 }
0x1186   :  { %v1451_v7 = vmul.f32 %v1449_v3, %v1444_v57 }
0x11a5   :  { %v1454_v58 = vpop.permute.xlu0 %1453 }
0x11a6   :  { %v1456_v59 = vmul.f32 %v1454_v58, %v1444_v57 }
0x11a8   :  { %1458 = vrot.lane.b32.xlu0 %v1456_v59, %s5911_s5 }
0x11f2   :  { %v1186_v63 = vpop.permute.xlu1 %1185 }
0x11f3   :  { %v6480_v0 = vadd.f32 %v1186_v63, %v1178_v61 }
0x11f5   :  { %5012 = vtanh.f32 %v6480_v0 }
0x11fb   :  { %v5013_v2 = vpop.eup %5012 }
0x11fc   :  { %1191 = vrot.lane.b32.xlu1 %v5013_v2, %s5882_s2 }
0x121a   :  { %v1459_v8 = vpop.permute.xlu0 %1458 }
0x121b   :  { %v1461_v10 = vadd.f32 %v1459_v8, %v1451_v7 }
0x121d   :  { %5014 = vtanh.f32 %v1461_v10  ;;  %v1518_v28 = vrot.slane %v1461_v10, 4 }
0x1223   :  { %v5015_v12 = vpop.eup %5014 }
0x1224   :  { %1464 = vrot.lane.b32.xlu2 %v5015_v12, %s5882_s2 }
0x126e   :  { %v1192_v13 = vpop.permute.xlu1 %1191 }
0x126f   :  { %v6485_v5 = vmul.f32 %v1192_v13, %v1172_v45 }
0x1271   :  { %v1200_v62 = vpack.c.bf16 %v6485_v5, %v6485_v5 }
0x1273   :  { %1202 = vrot.lane.b32.xlu0 %v1200_v62, %s5911_s5 }
0x127e   :  { %v1465_v15 = vpop.permute.xlu2 %1464 }
0x127f   :  { %v6490_v17 = vmul.f32 %v1465_v15, %v1444_v57  ;;  %v1385_v57 = vpop.f32.mrf.mxu3 }
0x1280   :  { %v6514_v58 = vadd.f32 %v6468_v16, %v1385_v57 }
0x1281   :  { %v1473_v19 = vpack.c.bf16 %v6490_v17, %v6490_v17 }
0x1283   :  { %1475 = vrot.lane.b32.xlu1 %v1473_v19, %s5911_s5 }
0x12e5   :  { %v1203_v41 = vpop.permute.xlu0 %1202 }
0x12e6   :  { %4207 = vmatmul.msk.bf16.vlgmr.msra.gmra.mxu1 %vm635_vm1, %v1203_v41 }
0x12e7   :  { %1622 = vmatpush.bf16.msra.mxu1 %v6443_v4 }
0x12eb   :  { %1623 = vmatpush.bf16.msra.mxu1 %v6446_v6 }
0x12f5   :  { %v1476_v20 = vpop.permute.xlu1 %1475 }
0x12f6   :  { %4242 = vmatmul.msk.bf16.vlgmr.msrb.gmra.mxu1 %vm635_vm1, %v1476_v20 }
0x12f7   :  { %1894 = vmatpush.bf16.msrb.mxu1 %v6443_v4 }
0x12fb   :  { %1895 = vmatpush.bf16.msrb.mxu1 %v6446_v6 }
0x1363   :  { %v6501_v37 = vpop.f32.mrf.mxu1 }
0x1364   :  { %v1221_v41 = vrot.slane %v6501_v37, 4 }
0x136b   :  { %v1218_v40 = vpop.f32.mrf.mxu1 }
0x1373   :  { %v1489_v21 = vpop.f32.mrf.mxu1 }
0x1374   :  { %v1494_v22 = vrot.slane %v1489_v21, 4  ;;  %v1223_v21 = vadd.f32 %v1221_v41, %v6464_v11 }
0x1376   :  { %v1496_v23 = vadd.f32 %v1494_v22, %v6471_v18 }
0x1378   :  { %5016 = vtanh.f32 %v1496_v23  ;;  %v4243_v9 = vmul.f32 -1.442695, %v1496_v23 }
0x137a   :  { %5018 = vpow2.f32 %v4243_v9  ;;  %v4208_v9 = vmul.f32 -1.442695, %v1223_v21 }
0x137b   :  { %v1491_v24 = vpop.f32.mrf.mxu1 }
0x137e   :  { %v5017_v25 = vpop.eup %5016 }
0x137f   :  { %1522 = vrot.lane.b32.xlu2 %v5017_v25, %s5882_s2 }
0x1380   :  { %v5019_v26 = vpop.eup %5018 }
0x1381   :  { %v1500_v29 = vadd.f32 1.0, %v5019_v26 }
0x1383   :  { %5020 = vrcp.f32 %v1500_v29  ;;  %v1512_v36 = vand.u32 2147483648, %v1500_v29  ;;  %vm1506_vm9 = vweird.f32 %v1500_v29  ;;  %v1510_v42 = vand.u32 2147483647, %v1500_v29 }
0x1385   :  { %v1513_v27 = vor.u32 1.1754944e-38, %v1512_v36  ;;  %vm1511_vm11 = vcmp.eq.f32.partialorder %v1510_v42, 8.507059e+37 }
0x1389   :  { %v5021_v4 = vpop.eup %5020 }
0x138a   :  { %v1502_v30 = vmul.f32 %v5021_v4, %v1500_v29  ;;  %vm1507_vm6 = vweird.f32 %v5021_v4 }
0x138b   :  { %vm1508_vm10 = vmor %vm1506_vm9, %vm1507_vm6 }
0x138c   :  { %v1503_v6 = vsub.f32 1.0, %v1502_v30 }
0x138e   :  { %v1504_v31 = vmul.f32 %v5021_v4, %v1503_v6 }
0x1390   :  { %v1505_v34 = vadd.f32 %v5021_v4, %v1504_v31 }
0x1392   :  { %v1509_v18 = vsel %vm1508_vm10, %v5021_v4, %v1505_v34 }
0x1393   :  { %v1514_v46 = vsel %vm1511_vm11, %v1513_v27, %v1509_v18 }
0x1394   :  { %v1520_v48 = vmul.f32 %v1518_v28, %v1514_v46 }
0x13d9   :  { %v1523_v45 = vpop.permute.xlu2 %1522 }
0x13da   :  { %v1525_v47 = vmul.f32 %v1523_v45, %v1514_v46 }
0x13dc   :  { %1527 = vrot.lane.b32.xlu0 %v1525_v47, %s5911_s5 }
0x144e   :  { %v1528_v49 = vpop.permute.xlu0 %1527 }
0x144f   :  { %v1530_v50 = vadd.f32 %v1528_v49, %v1520_v48 }
0x1451   :  { %5022 = vtanh.f32 %v1530_v50  ;;  %v1585_v11 = vrot.slane %v1530_v50, 4 }
0x1457   :  { %v5023_v51 = vpop.eup %5022 }
0x1458   :  { %1533 = vrot.lane.b32.xlu1 %v5023_v51, %s5882_s2 }
0x14ca   :  { %v1534_v52 = vpop.permute.xlu1 %1533 }
0x14cb   :  { %v6507_v53 = vmul.f32 %v1534_v52, %v1514_v46 }
0x14cd   :  { %v1542_v54 = vpack.c.bf16 %v6507_v53, %v6507_v53 }
0x14cf   :  { %v1544_v55 = vrot.slane %v1542_v54, 2  ;;  %v1245_v54 = vrot.slane %v6480_v0, 4 }
0x14d1   :  { %1545 = vrot.lane.b32.xlu2 %v1544_v55, %s5911_s5 }
0x152b   :  { %v1546_v56 = vpop.permute.xlu2 %1545 }
0x152c   :  { %4244 = vmatmul.msk.bf16.vlgmr.msra.gmra.mxu0 %vm635_vm1, %v1546_v56 }
0x15a9   :  { %v1559_v59 = vpop.f32.mrf.mxu0 }
0x15aa   :  { %v1563_v60 = vadd.f32 %v1559_v59, %v6514_v58 }
0x15ac   :  { %5024 = vtanh.f32 %v1563_v60  ;;  %v4245_v2 = vmul.f32 -1.442695, %v1563_v60 }
0x15ae   :  { %5026 = vpow2.f32 %v4245_v2 }
0x15b1   :  { %v1561_v61 = vpop.f32.mrf.mxu0 }
0x15b2   :  { %v5025_v63 = vpop.eup %5024 }
0x15b3   :  { %1589 = vrot.lane.b32.xlu0 %v5025_v63, %s5882_s2 }
0x15b4   :  { %v5027_v3 = vpop.eup %5026 }
0x15b5   :  { %v1567_v7 = vadd.f32 1.0, %v5027_v3 }
0x15b7   :  { %5028 = vrcp.f32 %v1567_v7  ;;  %v1579_v15 = vand.u32 2147483648, %v1567_v7  ;;  %vm1573_vm13 = vweird.f32 %v1567_v7  ;;  %v1577_v19 = vand.u32 2147483647, %v1567_v7 }
0x15b8   :  { %5030 = vtanh.f32 %v1223_v21 }
0x15b9   :  { %v1580_v40 = vor.u32 1.1754944e-38, %v1579_v15  ;;  %vm1578_vm15 = vcmp.eq.f32.partialorder %v1577_v19, 8.507059e+37  ;;  %5032 = vpow2.f32 %v4208_v9 }
0x15bd   :  { %v5029_v8 = vpop.eup %5028 }
0x15be   :  { %v1569_v10 = vmul.f32 %v5029_v8, %v1567_v7  ;;  %vm1574_vm12 = vweird.f32 %v5029_v8  ;;  %v5031_v25 = vpop.eup %5030 }
0x15bf   :  { %vm1575_vm14 = vmor %vm1573_vm13, %vm1574_vm12  ;;  %v5033_v37 = vpop.eup %5032 }
0x15c0   :  { %v1570_v12 = vsub.f32 1.0, %v1569_v10  ;;  %v1227_v26 = vadd.f32 1.0, %v5033_v37 }
0x15c2   :  { %v1571_v13 = vmul.f32 %v5029_v8, %v1570_v12  ;;  %5034 = vrcp.f32 %v1227_v26  ;;  %v1239_v27 = vand.u32 2147483648, %v1227_v26  ;;  %vm1233_vm2 = vweird.f32 %v1227_v26 }
0x15c3   :  { %v1237_v45 = vand.u32 2147483647, %v1227_v26 }
0x15c4   :  { %v1572_v62 = vadd.f32 %v5029_v8, %v1571_v13  ;;  %v1240_v47 = vor.u32 1.1754944e-38, %v1239_v27 }
0x15c5   :  { %vm1238_vm4 = vcmp.eq.f32.partialorder %v1237_v45, 8.507059e+37 }
0x15c6   :  { %v1576_v20 = vsel %vm1575_vm14, %v5029_v8, %v1572_v62 }
0x15c7   :  { %v1581_v23 = vsel %vm1578_vm15, %v1580_v40, %v1576_v20 }
0x15c8   :  { %v5035_v29 = vpop.eup %5034  ;;  %v1587_v30 = vmul.f32 %v1585_v11, %v1581_v23 }
0x15c9   :  { %v1229_v4 = vmul.f32 %v5035_v29, %v1227_v26  ;;  %vm1234_vm0 = vweird.f32 %v5035_v29 }
0x15ca   :  { %vm1235_vm3 = vmor %vm1233_vm2, %vm1234_vm0 }
0x15cb   :  { %v1230_v31 = vsub.f32 1.0, %v1229_v4 }
0x15cd   :  { %v1231_v36 = vmul.f32 %v5035_v29, %v1230_v31 }
0x15cf   :  { %v1232_v42 = vadd.f32 %v5035_v29, %v1231_v36 }
0x15d1   :  { %v1236_v46 = vsel %vm1235_vm3, %v5035_v29, %v1232_v42 }
0x15d2   :  { %v1241_v28 = vsel %vm1238_vm4, %v1240_v47, %v1236_v46 }
0x15d3   :  { %v1247_v55 = vmul.f32 %v1245_v54, %v1241_v28 }
0x1625   :  { %v1590_v22 = vpop.permute.xlu0 %1589 }
0x1626   :  { %v1592_v24 = vmul.f32 %v1590_v22, %v1581_v23 }
0x1628   :  { %1594 = vrot.lane.b32.xlu1 %v1592_v24, %s5911_s5 }
0x1630   :  { %1249 = vrot.lane.b32.xlu1 %v5031_v25, %s5882_s2 }
0x1638   :  { %1060 = vrot.lane.b32.xlu1 %v6402_v14, %s5911_s5 }
0x169a   :  { %v1595_v6 = vpop.permute.xlu1 %1594 }
0x169b   :  { %v6524_v34 = vadd.f32 %v1595_v6, %v1587_v30 }
0x169d   :  { %5036 = vtanh.f32 %v6524_v34 }
0x16a2   :  { %v1250_v18 = vpop.permute.xlu1 %1249 }
0x16a3   :  { %v5037_v14 = vpop.eup %5036  ;;  %v1252_v48 = vmul.f32 %v1250_v18, %v1241_v28 }
0x16a4   :  { %1600 = vrot.lane.b32.xlu2 %v5037_v14, %s5882_s2 }
0x16aa   :  { %v1061_v49 = vpop.permute.xlu1 %1060 }
0x16ab   :  { %1063 = vst.msk [vmem:[#allocation2 + $0x10] sm:$0xf] %vm789_vm7, %v1061_v49 }
0x16ac   :  { %1254 = vrot.lane.b32.xlu2 %v1252_v48, %s5911_s5 }
0x16b4   :  { %1129 = vrot.lane.b32.xlu2 %v6438_v1, %s5911_s5 }
0x16fe   :  { %v1601_v50 = vpop.permute.xlu2 %1600 }
0x16ff   :  { %v6532_v51 = vmul.f32 %v1601_v50, %v1581_v23 }
0x1701   :  { %v1609_v52 = vpack.c.bf16 %v6532_v51, %v6532_v51 }
0x1703   :  { %1611 = vrot.lane.b32.xlu0 %v1609_v52, %s5911_s5 }
0x1706   :  { %v1255_v56 = vpop.permute.xlu2 %1254 }
0x1707   :  { %v6538_v57 = vadd.f32 %v1255_v56, %v1247_v55 }
0x1709   :  { %5038 = vtanh.f32 %v6538_v57 }
0x170e   :  { %v1130_v59 = vpop.permute.xlu2 %1129 }
0x170f   :  { %v5039_v60 = vpop.eup %5038  ;;  %1132 = vst.msk [vmem:[#allocation2 + $0x10] sm:$0xf0] %vm859_vm8, %v1130_v59 }
0x1710   :  { %1260 = vrot.lane.b32.xlu0 %v5039_v60, %s5882_s2 }
0x1716   :  { %v1278_v12 = vld [vmem:[#allocation2 + $0x10] sm:$0xff] }
0x1718   :  { %1196 = vrot.lane.b32.xlu0 %v6485_v5, %s5911_s5 }
0x1775   :  { %v1612_v1 = vpop.permute.xlu0 %1611 }
0x1776   :  { %4246 = vmatmul.msk.bf16.vlgmr.msra.gmra.mxu1 %vm635_vm1, %v1612_v1 }
0x1782   :  { %v1261_v0 = vpop.permute.xlu0 %1260 }
0x1783   :  { %v1263_v61 = vmul.f32 %v1261_v0, %v1241_v28 }
0x1785   :  { %1265 = vrot.lane.b32.xlu1 %v1263_v61, %s5911_s5 }
0x178a   :  { %v1197_v63 = vpop.permute.xlu0 %1196 }
0x178b   :  { %1199 = vst.msk [vmem:[#allocation2 + $0x18] sm:$0xf] %vm789_vm7, %v1197_v63 }
0x17f3   :  { %v1625_v2 = vpop.f32.mrf.mxu1 }
0x17f4   :  { %v1630_v3 = vrot.slane %v1625_v2, 4 }
0x17f6   :  { %v1632_v7 = vadd.f32 %v1630_v3, %v6514_v58 }
0x17f7   :  { %v1266_v8 = vpop.permute.xlu1 %1265 }
0x17f8   :  { %5040 = vtanh.f32 %v1632_v7  ;;  %1268 = vst.msk [vmem:[#allocation2 + $0x18] sm:$0xf0] %vm859_vm8, %v1266_v8  ;;  %v4247_v15 = vmul.f32 -1.442695, %v1632_v7 }
0x17f9   :  { %1269 = vst.msk [vmem:[%s6127_s21 - $0x4] sm:$0xf0] %vm859_vm8, %v1266_v8 }
0x17fa   :  { %5042 = vpow2.f32 %v4247_v15 }
0x17fb   :  { %v1627_v5 = vpop.f32.mrf.mxu1 }
0x17fe   :  { %v5041_v10 = vpop.eup %5040 }
0x17ff   :  { %1658 = vrot.lane.b32.xlu2 %v5041_v10, %s5882_s2  ;;  %v1279_v13 = vld [vmem:[#allocation2 + $0x18] sm:$0xff] }
0x1800   :  { %v1285_v62 = vpack.c.bf16 %v1279_v13, %v1278_v12  ;;  %v5043_v19 = vpop.eup %5042 }
0x1801   :  { %v1636_v41 = vadd.f32 1.0, %v5043_v19 }
0x1802   :  { %4219 = vmatmul.msk.bf16.gmra.mxu2 %vm635_vm1, %v1285_v62 }
0x1803   :  { %5044 = vrcp.f32 %v1636_v41  ;;  %v1648_v23 = vand.u32 2147483648, %v1636_v41  ;;  %vm1642_vm6 = vweird.f32 %v1636_v41  ;;  %v1646_v24 = vand.u32 2147483647, %v1636_v41 }
0x1805   :  { %v1649_v9 = vor.u32 1.1754944e-38, %v1648_v23  ;;  %vm1647_vm10 = vcmp.eq.f32.partialorder %v1646_v24, 8.507059e+37 }
0x1809   :  { %v5045_v58 = vpop.eup %5044 }
0x180a   :  { %v1638_v20 = vmul.f32 %v5045_v58, %v1636_v41  ;;  %vm1643_vm5 = vweird.f32 %v5045_v58 }
0x180b   :  { %vm1644_vm9 = vmor %vm1642_vm6, %vm1643_vm5 }
0x180c   :  { %v1639_v40 = vsub.f32 1.0, %v1638_v20 }
0x180e   :  { %v1640_v21 = vmul.f32 %v5045_v58, %v1639_v40 }
0x1810   :  { %v1641_v22 = vadd.f32 %v5045_v58, %v1640_v21 }
0x1812   :  { %v1645_v25 = vsel %vm1644_vm9, %v5045_v58, %v1641_v22 }
0x1813   :  { %v1650_v26 = vsel %vm1647_vm10, %v1649_v9, %v1645_v25 }
0x1859   :  { %v1659_v37 = vpop.permute.xlu2 %1658 }
0x185a   :  { %v1661_v29 = vmul.f32 %v1659_v37, %v1650_v26 }
0x185c   :  { %1663 = vrot.lane.b32.xlu0 %v1661_v29, %s5911_s5 }
0x1885   :  { %v1318_v4 = vpop.f32.mrf.mxu2 }
0x1886   :  { %v1325_v11 = vadd.f32 %v1318_v4, %v6336_v32  ;;  %v1654_v32 = vrot.slane %v6524_v34, 4 }
0x1888   :  { %v6557_v6 = vadd.f32 %v6416_v35, %v1325_v11  ;;  %v1656_v27 = vmul.f32 %v1654_v32, %v1650_v26 }
0x188a   :  { %v1337_v42 = vmax.f32 %v6557_v6, 0.0  ;;  %v4786_v6 = vld [vmem:[%s7242_s22 + $0x28] sm:$0xff] }
0x188d   :  { %v1320_v30 = vpop.f32.mrf.mxu2 }
0x188e   :  { %v1326_v31 = vadd.f32 %v1320_v30, %v6338_v33 }
0x1890   :  { %v6561_v36 = vadd.f32 %v6416_v35, %v1326_v31 }
0x1892   :  { %v1338_v18 = vmax.f32 %v6561_v36, 0.0 }
0x1894   :  { %v1350_v14 = vpack.c.bf16 %v1338_v18, %v1337_v42 }
0x1896   :  { %4229 = vmatmul.msk.bf16.gmra.mxu3 %vm635_vm1, %v1350_v14 }
0x18ce   :  { %v1664_v45 = vpop.permute.xlu0 %1663 }
0x18cf   :  { %v1666_v46 = vadd.f32 %v1664_v45, %v1656_v27 }
0x18d1   :  { %5046 = vtanh.f32 %v1666_v46  ;;  %v1721_v15 = vrot.slane %v1666_v46, 4 }
0x18d7   :  { %v5047_v33 = vpop.eup %5046 }
0x18d8   :  { %1669 = vrot.lane.b32.xlu1 %v5047_v33, %s5882_s2 }
0x1919   :  { %v1388_v34 = vpop.f32.mrf.mxu3 }
0x191a   :  { %v1389_v50 = vadd.f32 %v6468_v16, %v1388_v34 }
0x1921   :  { %v1390_v24 = vpop.f32.mrf.mxu3 }
0x194a   :  { %v1670_v35 = vpop.permute.xlu1 %1669 }
0x194b   :  { %v6572_v47 = vmul.f32 %v1670_v35, %v1650_v26 }
0x194d   :  { %v1678_v28 = vpack.c.bf16 %v6572_v47, %v6572_v47 }
0x194f   :  { %v1680_v48 = vrot.slane %v1678_v28, 2 }
0x1951   :  { %1681 = vrot.lane.b32.xlu2 %v1680_v48, %s5911_s5 }
0x19ab   :  { %v1682_v49 = vpop.permute.xlu2 %1681 }
0x19ac   :  { %4248 = vmatmul.msk.bf16.vlgmr.msrb.gmra.mxu2 %vm635_vm1, %v1682_v49 }
0x1a2f   :  { %v1695_v52 = vpop.f32.mrf.mxu2 }
0x1a30   :  { %v1699_v54 = vadd.f32 %v1695_v52, %v1389_v50 }
0x1a32   :  { %5048 = vtanh.f32 %v1699_v54  ;;  %v4249_v59 = vmul.f32 -1.442695, %v1699_v54 }
0x1a34   :  { %5050 = vpow2.f32 %v4249_v59 }
0x1a37   :  { %v1697_v55 = vpop.f32.mrf.mxu2 }
0x1a38   :  { %v5049_v56 = vpop.eup %5048 }
0x1a39   :  { %1725 = vrot.lane.b32.xlu0 %v5049_v56, %s5882_s2 }
0x1a3a   :  { %v5051_v60 = vpop.eup %5050 }
0x1a3b   :  { %v1703_v1 = vadd.f32 1.0, %v5051_v60 }
0x1a3d   :  { %5052 = vrcp.f32 %v1703_v1  ;;  %v1715_v7 = vand.u32 2147483648, %v1703_v1  ;;  %vm1709_vm12 = vweird.f32 %v1703_v1  ;;  %v1713_v8 = vand.u32 2147483647, %v1703_v1 }
0x1a3f   :  { %v1716_v10 = vor.u32 1.1754944e-38, %v1715_v7  ;;  %vm1714_vm14 = vcmp.eq.f32.partialorder %v1713_v8, 8.507059e+37 }
0x1a43   :  { %v5053_v0 = vpop.eup %5052 }
0x1a44   :  { %v1705_v61 = vmul.f32 %v5053_v0, %v1703_v1  ;;  %vm1710_vm11 = vweird.f32 %v5053_v0 }
0x1a45   :  { %vm1711_vm13 = vmor %vm1709_vm12, %vm1710_vm11 }
0x1a46   :  { %v1706_v63 = vsub.f32 1.0, %v1705_v61 }
0x1a48   :  { %v1707_v2 = vmul.f32 %v5053_v0, %v1706_v63  ;;  %v1391_v63 = vadd.f32 %v6468_v16, %v1390_v24 }
0x1a4a   :  { %v1708_v3 = vadd.f32 %v5053_v0, %v1707_v2 }
0x1a4c   :  { %v1712_v5 = vsel %vm1711_vm13, %v5053_v0, %v1708_v3 }
0x1a4d   :  { %v1717_v13 = vsel %vm1714_vm14, %v1716_v10, %v1712_v5 }
0x1a4e   :  { %v1723_v19 = vmul.f32 %v1721_v15, %v1717_v13 }
0x1aab   :  { %v1726_v12 = vpop.permute.xlu0 %1725 }
0x1aac   :  { %v1728_v62 = vmul.f32 %v1726_v12, %v1717_v13 }
0x1aae   :  { %1730 = vrot.lane.b32.xlu1 %v1728_v62, %s5911_s5 }
0x1b20   :  { %v1731_v41 = vpop.permute.xlu1 %1730 }
0x1b21   :  { %v1733_v58 = vadd.f32 %v1731_v41, %v1723_v19 }
0x1b23   :  { %5054 = vtanh.f32 %v1733_v58 }
0x1b29   :  { %v5055_v20 = vpop.eup %5054 }
0x1b2a   :  { %1736 = vrot.lane.b32.xlu2 %v5055_v20, %s5882_s2 }
0x1b84   :  { %v1737_v40 = vpop.permute.xlu2 %1736 }
0x1b85   :  { %v6582_v21 = vmul.f32 %v1737_v40, %v1717_v13 }
0x1b87   :  { %v1745_v22 = vpack.c.bf16 %v6582_v21, %v6582_v21 }
0x1b89   :  { %1747 = vrot.lane.b32.xlu0 %v1745_v22, %s5911_s5 }
0x1bfb   :  { %v1748_v23 = vpop.permute.xlu0 %1747 }
0x1bfc   :  { %4250 = vmatmul.msk.bf16.vlgmr.msrb.gmra.mxu3 %vm635_vm1, %v1748_v23 }
0x1c7f   :  { %v1761_v25 = vpop.f32.mrf.mxu3 }
0x1c80   :  { %v1766_v9 = vrot.slane %v1761_v25, 4 }
0x1c82   :  { %v1768_v37 = vadd.f32 %v1766_v9, %v1389_v50  ;;  %v1790_v50 = vrot.slane %v1733_v58, 4 }
0x1c84   :  { %5056 = vtanh.f32 %v1768_v37  ;;  %v4251_v4 = vmul.f32 -1.442695, %v1768_v37 }
0x1c86   :  { %5058 = vpow2.f32 %v4251_v4 }
0x1c87   :  { %v1763_v26 = vpop.f32.mrf.mxu3 }
0x1c8a   :  { %v5057_v29 = vpop.eup %5056 }
0x1c8b   :  { %1794 = vrot.lane.b32.xlu1 %v5057_v29, %s5882_s2 }
0x1c8c   :  { %v5059_v11 = vpop.eup %5058 }
0x1c8d   :  { %v1772_v30 = vadd.f32 1.0, %v5059_v11 }
0x1c8f   :  { %5060 = vrcp.f32 %v1772_v30  ;;  %v1784_v46 = vand.u32 2147483648, %v1772_v30  ;;  %vm1778_vm0 = vweird.f32 %v1772_v30  ;;  %v1782_v33 = vand.u32 2147483647, %v1772_v30 }
0x1c91   :  { %v1785_v28 = vor.u32 1.1754944e-38, %v1784_v46  ;;  %vm1783_vm3 = vcmp.eq.f32.partialorder %v1782_v33, 8.507059e+37 }
0x1c95   :  { %v5061_v31 = vpop.eup %5060 }
0x1c96   :  { %v1774_v14 = vmul.f32 %v5061_v31, %v1772_v30  ;;  %vm1779_vm15 = vweird.f32 %v5061_v31 }
0x1c97   :  { %vm1780_vm2 = vmor %vm1778_vm0, %vm1779_vm15 }
0x1c98   :  { %v1775_v32 = vsub.f32 1.0, %v1774_v14 }
0x1c9a   :  { %v1776_v27 = vmul.f32 %v5061_v31, %v1775_v32 }
0x1c9c   :  { %v1777_v45 = vadd.f32 %v5061_v31, %v1776_v27 }
0x1c9e   :  { %v1781_v35 = vsel %vm1780_vm2, %v5061_v31, %v1777_v45 }
0x1c9f   :  { %v1786_v49 = vsel %vm1783_vm3, %v1785_v28, %v1781_v35 }
0x1ca0   :  { %v1792_v52 = vmul.f32 %v1790_v50, %v1786_v49 }
0x1cfd   :  { %v1795_v48 = vpop.permute.xlu1 %1794 }
0x1cfe   :  { %v1797_v34 = vmul.f32 %v1795_v48, %v1786_v49 }
0x1d00   :  { %1799 = vrot.lane.b32.xlu2 %v1797_v34, %s5911_s5 }
0x1d5a   :  { %v1800_v54 = vpop.permute.xlu2 %1799 }
0x1d5b   :  { %v1802_v55 = vadd.f32 %v1800_v54, %v1792_v52 }
0x1d5d   :  { %5062 = vtanh.f32 %v1802_v55  ;;  %v1857_v25 = vrot.slane %v1802_v55, 4 }
0x1d63   :  { %v5063_v56 = vpop.eup %5062 }
0x1d64   :  { %1805 = vrot.lane.b32.xlu0 %v5063_v56, %s5882_s2 }
0x1dd6   :  { %v1806_v59 = vpop.permute.xlu0 %1805 }
0x1dd7   :  { %v6591_v60 = vmul.f32 %v1806_v59, %v1786_v49 }
0x1dd9   :  { %v1814_v1 = vpack.c.bf16 %v6591_v60, %v6591_v60 }
0x1ddb   :  { %v1816_v0 = vrot.slane %v1814_v1, 2 }
0x1ddd   :  { %1817 = vrot.lane.b32.xlu1 %v1816_v0, %s5911_s5 }
0x1e4f   :  { %v1818_v61 = vpop.permute.xlu1 %1817 }
0x1e50   :  { %4252 = vmatmul.msk.bf16.vlgmr.msrb.gmra.mxu0 %vm635_vm1, %v1818_v61 }
0x1ecd   :  { %v1831_v2 = vpop.f32.mrf.mxu0 }
0x1ece   :  { %v1835_v3 = vadd.f32 %v1831_v2, %v1391_v63 }
0x1ed0   :  { %5064 = vtanh.f32 %v1835_v3  ;;  %v4253_v5 = vmul.f32 -1.442695, %v1835_v3 }
0x1ed2   :  { %5066 = vpow2.f32 %v4253_v5 }
0x1ed5   :  { %v1833_v7 = vpop.f32.mrf.mxu0 }
0x1ed6   :  { %v5065_v8 = vpop.eup %5064 }
0x1ed7   :  { %1861 = vrot.lane.b32.xlu2 %v5065_v8, %s5882_s2 }
0x1ed8   :  { %v5067_v10 = vpop.eup %5066 }
0x1ed9   :  { %v1839_v12 = vadd.f32 1.0, %v5067_v10 }
0x1edb   :  { %5068 = vrcp.f32 %v1839_v12  ;;  %v1851_v58 = vand.u32 2147483648, %v1839_v12  ;;  %vm1845_vm5 = vweird.f32 %v1839_v12  ;;  %v1849_v16 = vand.u32 2147483647, %v1839_v12 }
0x1edd   :  { %v1852_v40 = vor.u32 1.1754944e-38, %v1851_v58  ;;  %vm1850_vm9 = vcmp.eq.f32.partialorder %v1849_v16, 8.507059e+37 }
0x1ee1   :  { %v5069_v13 = vpop.eup %5068 }
0x1ee2   :  { %v1841_v62 = vmul.f32 %v5069_v13, %v1839_v12  ;;  %vm1846_vm4 = vweird.f32 %v5069_v13  ;;  %v4763_v12 = vld [vmem:[#allocation13 + $0x10] sm:$0xff] }
0x1ee3   :  { %vm1847_vm6 = vmor %vm1845_vm5, %vm1846_vm4 }
0x1ee4   :  { %v1842_v15 = vsub.f32 1.0, %v1841_v62 }
0x1ee6   :  { %v1843_v19 = vmul.f32 %v5069_v13, %v1842_v15 }
0x1ee8   :  { %v1844_v41 = vadd.f32 %v5069_v13, %v1843_v19 }
0x1eea   :  { %v1848_v20 = vsel %vm1847_vm6, %v5069_v13, %v1844_v41 }
0x1eeb   :  { %v1853_v23 = vsel %vm1850_vm9, %v1852_v40, %v1848_v20 }
0x1eec   :  { %v1859_v9 = vmul.f32 %v1857_v25, %v1853_v23  ;;  %v4766_v25 = vld [vmem:[%s7242_s22 + $0x8] sm:$0xff] }
0x1eed   :  { %2103 = vmatpush.bf16.msra.mxu0 %v4766_v25  ;;  %v4825_v25 = vld [vmem:[#allocation28] sm:$0xff] }
0x1f31   :  { %v1862_v22 = vpop.permute.xlu2 %1861 }
0x1f32   :  { %v1864_v24 = vmul.f32 %v1862_v22, %v1853_v23 }
0x1f34   :  { %1866 = vrot.lane.b32.xlu0 %v1864_v24, %s5911_s5 }
0x1fa6   :  { %v1867_v37 = vpop.permute.xlu0 %1866 }
0x1fa7   :  { %v1869_v26 = vadd.f32 %v1867_v37, %v1859_v9  ;;  %v5913_v9 = vmov 0   ;;  %v4765_v37 = vld [vmem:[%s7242_s22] sm:$0xff] }
0x1fa8   :  { %2104 = vmatpush.bf16.msra.mxu0 %v4765_v37  ;;  %v4929_v37 = vld [vmem:[#allocation17] ss:$0 sm:$0xff] }
0x1fa9   :  { %5070 = vtanh.f32 %v1869_v26  ;;  %v1926_v2 = vrot.slane %v1869_v26, 4 }
0x1faf   :  { %v5071_v29 = vpop.eup %5070 }
0x1fb0   :  { %1872 = vrot.lane.b32.xlu1 %v5071_v29, %s5882_s2 }
0x2022   :  { %v1873_v4 = vpop.permute.xlu1 %1872 }
0x2023   :  { %v1875_v11 = vmul.f32 %v1873_v4, %v1853_v23  ;;  %v4927_v4 = vld [vmem:[#allocation14 + $0x1] ss:$0 sm:$0xff] }
0x2025   :  { %v1881_v30 = vpack.c.bf16 %v1875_v11, %v1875_v11 }
0x2027   :  { %1883 = vrot.lane.b32.xlu2 %v1881_v30, %s5911_s5 }
0x2081   :  { %v1884_v31 = vpop.permute.xlu2 %1883 }
0x2082   :  { %4254 = vmatmul.msk.bf16.vlgmr.msrb.gmra.mxu1 %vm635_vm1, %v1884_v31 }
0x20ff   :  { %v1897_v14 = vpop.f32.mrf.mxu1 }
0x2100   :  { %v1902_v32 = vrot.slane %v1897_v14, 4 }
0x2102   :  { %v1904_v27 = vadd.f32 %v1902_v32, %v1391_v63 }
0x2104   :  { %5072 = vtanh.f32 %v1904_v27  ;;  %v4255_v33 = vmul.f32 -1.442695, %v1904_v27 }
0x2106   :  { %5074 = vpow2.f32 %v4255_v33 }
0x2107   :  { %v1899_v45 = vpop.f32.mrf.mxu1 }
0x210a   :  { %v5073_v46 = vpop.eup %5072 }
0x210b   :  { %1930 = vrot.lane.b32.xlu0 %v5073_v46, %s5882_s2  ;;  %v4776_v46 = vld [vmem:[%s7242_s22 + $0x18] sm:$0xff] }
0x210c   :  { %v5075_v35 = vpop.eup %5074  ;;  %2392 = vmatpush.bf16.msrb.mxu0 %v4776_v46 }
0x210d   :  { %v1908_v28 = vadd.f32 1.0, %v5075_v35 }
0x210f   :  { %5076 = vrcp.f32 %v1908_v28  ;;  %v1920_v54 = vand.u32 2147483648, %v1908_v28  ;;  %vm1914_vm11 = vweird.f32 %v1908_v28  ;;  %v1918_v55 = vand.u32 2147483647, %v1908_v28 }
0x2110   :  { %2393 = vmatpush.bf16.msrb.mxu0 %v4775_v38 }
0x2111   :  { %v1921_v56 = vor.u32 1.1754944e-38, %v1920_v54  ;;  %vm1919_vm13 = vcmp.eq.f32.partialorder %v1918_v55, 8.507059e+37 }
0x2113   :  { %1469 = vrot.lane.b32.xlu0 %v6490_v17, %s5911_s5 }
0x2115   :  { %v5077_v48 = vpop.eup %5076 }
0x2116   :  { %v1910_v49 = vmul.f32 %v5077_v48, %v1908_v28  ;;  %vm1915_vm10 = vweird.f32 %v5077_v48 }
0x2117   :  { %vm1916_vm12 = vmor %vm1914_vm11, %vm1915_vm10 }
0x2118   :  { %v1911_v34 = vsub.f32 1.0, %v1910_v49 }
0x211a   :  { %v1912_v50 = vmul.f32 %v5077_v48, %v1911_v34 }
0x211b   :  { %1674 = vrot.lane.b32.xlu0 %v6572_v47, %s5911_s5 }
0x211c   :  { %v1913_v52 = vadd.f32 %v5077_v48, %v1912_v50 }
0x211e   :  { %v1917_v17 = vsel %vm1916_vm12, %v5077_v48, %v1913_v52 }
0x211f   :  { %v1922_v59 = vsel %vm1919_vm13, %v1921_v56, %v1917_v17  ;;  %v4928_v56 = vld [vmem:[#allocation16] ss:$0 sm:$0xff] }
0x2120   :  { %v1928_v3 = vmul.f32 %v1926_v2, %v1922_v59 }
0x2123   :  { %1877 = vrot.lane.b32.xlu0 %v1875_v11, %s5911_s5 }
0x217d   :  { %v1931_v47 = vpop.permute.xlu0 %1930 }
0x217e   :  { %v1933_v1 = vmul.f32 %v1931_v47, %v1922_v59 }
0x2180   :  { %1935 = vrot.lane.b32.xlu1 %v1933_v1, %s5911_s5 }
0x2185   :  { %v1470_v0 = vpop.permute.xlu0 %1469 }
0x2186   :  { %1472 = vst.msk [vmem:[#allocation2] sm:$0xf] %vm789_vm7, %v1470_v0 }
0x2188   :  { %1538 = vrot.lane.b32.xlu1 %v6507_v53, %s5911_s5 }
0x218d   :  { %v1675_v61 = vpop.permute.xlu0 %1674 }
0x218e   :  { %1677 = vst.msk [vmem:[#allocation2 + $0x8] sm:$0xf0] %vm859_vm8, %v1675_v61 }
0x2190   :  { %1741 = vrot.lane.b32.xlu1 %v6582_v21, %s5911_s5  ;;  %v4764_v21 = vld [vmem:[#allocation13 + $0x18] sm:$0xff] }
0x2191   :  { %1993 = vmatpush.bf16.msra.mxu2 %v4764_v21  ;;  %v4815_v21 = vld [vmem:[#allocation20] sm:$0xff] }
0x2195   :  { %v1878_v63 = vpop.permute.xlu0 %1877  ;;  %1994 = vmatpush.bf16.msra.mxu2 %v4763_v12 }
0x2196   :  { %1880 = vst.msk [vmem:[#allocation2 + $0x18] sm:$0xf] %vm789_vm7, %v1878_v63 }
0x21f2   :  { %v1936_v7 = vpop.permute.xlu1 %1935 }
0x21f3   :  { %v1938_v8 = vadd.f32 %v1936_v7, %v1928_v3  ;;  %v4796_v7 = vld [vmem:[%s7242_s22 + $0x38] sm:$0xff] }
0x21f5   :  { %5078 = vtanh.f32 %v1938_v8  ;;  %1953 = vrot.lane.b32.xlu0 %v1938_v8, %s5912_s25  ;;  %v4795_v8 = vld [vmem:[%s7242_s22 + $0x30] sm:$0xff] }
0x21fa   :  { %v1539_v5 = vpop.permute.xlu1 %1538 }
0x21fb   :  { %v5079_v10 = vpop.eup %5078  ;;  %1541 = vst.msk [vmem:[#allocation2] sm:$0xf0] %vm859_vm8, %v1539_v5  ;;  %v4806_v5 = vld [vmem:[%s7242_s22 + $0x48] sm:$0xff] }
0x21fc   :  { %1941 = vrot.lane.b32.xlu2 %v5079_v10, %s5882_s2  ;;  %s7241_s2 = sld [smem:[#allocation66_spill]]  ;;  %v4805_v10 = vld [vmem:[%s7242_s22 + $0x40] sm:$0xff] }
0x2202   :  { %v1742_v53 = vpop.permute.xlu1 %1741  ;;  %v1958_v19 = vld [vmem:[#allocation2] sm:$0xff]  ;;  %v4768_v20 = vld [vmem:[%s7241_s2 + $0x8] sm:$0xff] }
0x2203   :  { %1744 = vst.msk [vmem:[#allocation2 + $0x10] sm:$0xf] %vm789_vm7, %v1742_v53  ;;  %2066 = vmatpush.bf16.msra.mxu3 %v4768_v20  ;;  %v4767_v23 = vld [vmem:[%s7241_s2] sm:$0xff]  ;;  %v4816_v53 = vld [vmem:[#allocation20 + $0x8] sm:$0xff] }
0x2204   :  { %1605 = vrot.lane.b32.xlu2 %v6532_v51, %s5911_s5  ;;  %v4773_v20 = vld [vmem:[%s7244_s18] sm:$0xff] }
0x2207   :  { %2067 = vmatpush.bf16.msra.mxu3 %v4767_v23 }
0x220a   :  { %2068 = vmatmul.bf16.vlgmr.msra.gmra.mxu3 %v5913_v9 }
0x220c   :  { %1810 = vrot.lane.b32.xlu2 %v6591_v60, %s5911_s5 }
0x2214   :  { %1271 = vrot.lane.b32.xlu2 %v6538_v57, %s5912_s25 }
0x221a   :  { %2073 = vmatmul.bf16.gmra.mxu3 %v5913_v9 }
0x2256   :  { %v1942_v13 = vpop.permute.xlu2 %1941 }
0x2257   :  { %v1944_v62 = vmul.f32 %v1942_v13, %v1922_v59 }
0x2259   :  { %1946 = vrot.lane.b32.xlu1 %v1944_v62, %s5911_s5 }
0x225e   :  { %v1606_v15 = vpop.permute.xlu2 %1605 }
0x225f   :  { %1608 = vst.msk [vmem:[#allocation2 + $0x8] sm:$0xf] %vm789_vm7, %v1606_v15  ;;  %vm2156_vm7 = vcmask 523264  }
0x2266   :  { %v1811_v51 = vpop.permute.xlu2 %1810  ;;  %v1959_v60 = vld [vmem:[#allocation2 + $0x8] sm:$0xff] }
0x2267   :  { %1813 = vst.msk [vmem:[#allocation2 + $0x10] sm:$0xf0] %vm859_vm8, %v1811_v51  ;;  %v1954_v57 = vpop.permute.xlu0 %1953  ;;  %v1967_v41 = vpack.c.bf16 %v1959_v60, %v1958_v19  ;;  %v4774_v19 = vld [vmem:[%s7244_s18 + $0x8] sm:$0xff]  ;;  %v4778_v60 = vld [vmem:[%s7241_s2 + $0x18] sm:$0xff] }
0x2268   :  { %4257 = vst.msk [vmem:[%s6127_s21 + $0x8] sm:$0xf0] %vm859_vm8, %v1954_v57  ;;  %2220 = vmatpush.bf16.msrb.mxu2 %v4774_v19  ;;  %2361 = vmatpush.bf16.msrb.mxu3 %v4778_v60 }
0x2269   :  { %4266 = vmatmul.msk.bf16.vlgmr.msra.gmra.mxu2 %vm635_vm1, %v1967_v41 }
0x226c   :  { %2221 = vmatpush.bf16.msrb.mxu2 %v4773_v20 }
0x226e   :  { %v1272_v58 = vpop.permute.xlu2 %1271  ;;  %v1960_v40 = vld [vmem:[#allocation2 + $0x10] sm:$0xff] }
0x226f   :  { %4209 = vst.msk [vmem:[%s6127_s21] sm:$0xf0] %vm859_vm8, %v1272_v58 }
0x228d   :  { %v2069_v17 = vpop.f32.mrf.mxu3 }
0x2295   :  { %v2071_v47 = vpop.f32.mrf.mxu3 }
0x229d   :  { %v2074_v12 = vpop.f32.mrf.mxu3 }
0x22a5   :  { %v2076_v15 = vpop.f32.mrf.mxu3 }
0x22cb   :  { %v1947_v16 = vpop.permute.xlu1 %1946 }
0x22cc   :  { %1949 = vst.msk [vmem:[#allocation2 + $0x18] sm:$0xf0] %vm859_vm8, %v1947_v16 }
0x22cd   :  { %4256 = vst.msk [vmem:[%s6127_s21 + $0x4] sm:$0xf0] %vm859_vm8, %v1947_v16  ;;  %s7243_s21 = sld [smem:[#allocation68_spill]]  ;;  %v4826_v16 = vld [vmem:[#allocation28 + $0x8] sm:$0xff] }
0x22d3   :  { %v1961_v22 = vld [vmem:[#allocation2 + $0x18] sm:$0xff]  ;;  %v4770_v49 = vld [vmem:[%s7243_s21 + $0x8] sm:$0xff]  ;;  %v4769_v54 = vld [vmem:[%s7243_s21] sm:$0xff] }
0x22d4   :  { %v1968_v24 = vpack.c.bf16 %v1961_v22, %v1960_v40  ;;  %v4772_v33 = vld [vmem:[%s7243_s21 + $0x18] sm:$0xff]  ;;  %v4777_v40 = vld [vmem:[%s7241_s2 + $0x10] sm:$0xff] }
0x22d5   :  { %2167 = vmatpush.bf16.msra.mxu1 %v4772_v33  ;;  %2362 = vmatpush.bf16.msrb.mxu3 %v4777_v40  ;;  %v4792_v20 = vld [vmem:[%s7243_s21 + $0x58] sm:$0xff] }
0x22d6   :  { %4267 = vmatmul.msk.bf16.gmra.mxu2 %vm635_vm1, %v1968_v24 }
0x22ec   :  { %v1996_v26 = vpop.f32.mrf.mxu2 }
0x22ed   :  { %v2006_v29 = vadd.f32 %v1996_v26, %v1335_v39 }
0x22ef   :  { %v2015_v30 = vadd.f32 %v4927_v4, %v2006_v29  ;;  %v4836_v29 = vld [vmem:[#allocation37 + $0x8] sm:$0xff] }
0x22f1   :  { %v2019_v32 = vmax.f32 %v2015_v30, 0.0 }
0x22f4   :  { %v1998_v11 = vpop.f32.mrf.mxu2 }
0x22f5   :  { %v2007_v31 = vadd.f32 %v1998_v11, %v1336_v44  ;;  %v4771_v44 = vld [vmem:[%s7243_s21 + $0x10] sm:$0xff] }
0x22f6   :  { %2168 = vmatpush.bf16.msra.mxu1 %v4771_v44 }
0x22f7   :  { %v2016_v14 = vadd.f32 %v4927_v4, %v2007_v31 }
0x22f9   :  { %v2020_v27 = vmax.f32 %v2016_v14, 0.0 }
0x22fa   :  { %2169 = vmatpush.bf16.msra.mxu1 %v4770_v49 }
0x22fb   :  { %v6645_v45 = vpack.c.bf16 %v2020_v27, %v2019_v32  ;;  %v4835_v32 = vld [vmem:[#allocation37] sm:$0xff] }
0x22fd   :  { %4284 = vmatmul.msk.bf16.vlgmr.msra.gmra.mxu0 %vm635_vm1, %v6645_v45 }
0x22fe   :  { %2170 = vmatpush.bf16.msra.mxu1 %v4769_v54  ;;  %2682 = vmatpush.bf16.msra.mxu0 %v4786_v6  ;;  %v4931_v6 = vld [vmem:[#allocation16 + $0x1] ss:$0 sm:$0xff] }
0x2359   :  { %v2001_v39 = vpop.f32.mrf.mxu2 }
0x235a   :  { %v2008_v43 = vadd.f32 %v2001_v39, %v1337_v42  ;;  %v4785_v42 = vld [vmem:[%s7242_s22 + $0x20] sm:$0xff] }
0x235b   :  { %2683 = vmatpush.bf16.msra.mxu0 %v4785_v42 }
0x235c   :  { %v2017_v28 = vadd.f32 %v4927_v4, %v2008_v43  ;;  %v4782_v43 = vld [vmem:[%s7243_s21 + $0x38] sm:$0xff] }
0x235d   :  { %2455 = vmatpush.bf16.msrb.mxu1 %v4782_v43 }
0x235e   :  { %v2021_v50 = vmax.f32 %v2017_v28, 0.0 }
0x2361   :  { %v2003_v35 = vpop.f32.mrf.mxu2 }
0x2362   :  { %v2009_v48 = vadd.f32 %v2003_v35, %v1338_v18 }
0x2364   :  { %v2018_v34 = vadd.f32 %v4927_v4, %v2009_v48  ;;  %v4781_v48 = vld [vmem:[%s7243_s21 + $0x30] sm:$0xff] }
0x2365   :  { %2456 = vmatpush.bf16.msrb.mxu1 %v4781_v48  ;;  %v6737_v48 = vld [vmem:[#allocation16 + $0x2] ss:$0 sm:$0xff] }
0x2366   :  { %v2022_v52 = vmax.f32 %v2018_v34, 0.0 }
0x2368   :  { %v6659_v55 = vpack.c.bf16 %v2022_v52, %v2021_v50  ;;  %v4780_v52 = vld [vmem:[%s7243_s21 + $0x28] sm:$0xff] }
0x2369   :  { %2457 = vmatpush.bf16.msrb.mxu1 %v4780_v52 }
0x236a   :  { %4285 = vmatmul.msk.bf16.gmra.mxu0 %vm635_vm1, %v6659_v55 }
0x237a   :  { %v2106_v36 = vpop.f32.mrf.mxu0  ;;  %4352 = vmatmul.msk.bf16.vlgmr.msrb.gmra.mxu0 %vm635_vm1, %v6645_v45 }
0x237b   :  { %v2107_v18 = vadd.f32 %v2106_v36, %v2069_v17  ;;  %2972 = vmatpush.bf16.msrb.mxu0 %v4796_v7 }
0x237d   :  { %v2119_v1 = vadd.f32 %v4928_v56, %v2107_v18 }
0x237f   :  { %v2123_v63 = vmax.f32 %v2119_v1, 0.0  ;;  %2973 = vmatpush.bf16.msrb.mxu0 %v4795_v8 }
0x2382   :  { %v2108_v59 = vpop.f32.mrf.mxu0 }
0x2383   :  { %v2109_v0 = vadd.f32 %v2108_v59, %v2071_v47 }
0x2385   :  { %v2120_v61 = vadd.f32 %v4928_v56, %v2109_v0 }
0x2387   :  { %v2124_v2 = vmax.f32 %v2120_v61, 0.0 }
0x2389   :  { %v2127_v3 = vpack.c.bf16 %v2124_v2, %v2123_v63  ;;  %v4784_v63 = vld [vmem:[%s7244_s18 + $0x18] sm:$0xff]  ;;  %v4788_v2 = vld [vmem:[%s7241_s2 + $0x28] sm:$0xff] }
0x238a   :  { %4353 = vmatmul.msk.bf16.gmra.mxu0 %vm635_vm1, %v6659_v55  ;;  %2510 = vmatpush.bf16.msra.mxu2 %v4784_v63 }
0x238b   :  { %4302 = vmatmul.msk.bf16.vlgmr.msra.gmra.mxu1 %vm2156_vm7, %v2127_v3  ;;  %2651 = vmatpush.bf16.msra.mxu3 %v4788_v2 }
0x239a   :  { %4424 = vmatmul.msk.bf16.vlgmr.msra.gmra.mxu0 %vm635_vm1, %v6645_v45 }
0x239b   :  { %3262 = vmatpush.bf16.msra.mxu0 %v4806_v5  ;;  %v4783_v5 = vld [vmem:[%s7244_s18 + $0x10] sm:$0xff] }
0x239c   :  { %2511 = vmatpush.bf16.msra.mxu2 %v4783_v5 }
0x239f   :  { %3263 = vmatpush.bf16.msra.mxu0 %v4805_v10  ;;  %v4787_v10 = vld [vmem:[%s7241_s2 + $0x20] sm:$0xff] }
0x23a0   :  { %2652 = vmatpush.bf16.msra.mxu3 %v4787_v10 }
0x23aa   :  { %4425 = vmatmul.msk.bf16.gmra.mxu0 %vm635_vm1, %v6659_v55 }
0x23ba   :  { %4496 = vmatmul.msk.bf16.vlgmr.msrb.gmra.mxu0 %vm635_vm1, %v6645_v45 }
0x23bb   :  { %3547 = vmatpush.bf16.msrb.mxu0 %v4816_v53 }
0x23bf   :  { %3548 = vmatpush.bf16.msrb.mxu0 %v4815_v21 }
0x23ca   :  { %4497 = vmatmul.msk.bf16.gmra.mxu0 %vm635_vm1, %v6659_v55 }
0x23da   :  { %4568 = vmatmul.msk.bf16.vlgmr.msra.gmra.mxu0 %vm635_vm1, %v6645_v45 }
0x23db   :  { %3751 = vmatpush.bf16.msra.mxu0 %v4826_v16 }
0x23df   :  { %3752 = vmatpush.bf16.msra.mxu0 %v4825_v25 }
0x23e7   :  { %v2111_v13 = vpop.f32.mrf.mxu0 }
0x23e8   :  { %v2112_v62 = vadd.f32 %v2111_v13, %v2074_v12 }
0x23ea   :  { %4569 = vmatmul.msk.bf16.gmra.mxu0 %vm635_vm1, %v6659_v55  ;;  %v2121_v57 = vadd.f32 %v4928_v56, %v2112_v62  ;;  %v4932_v62 = vld [vmem:[#allocation17 + $0x1] ss:$0 sm:$0xff] }
0x23ec   :  { %v2125_v22 = vmax.f32 %v2121_v57, 0.0 }
0x23ef   :  { %v2113_v51 = vpop.f32.mrf.mxu0 }
0x23f0   :  { %v2114_v41 = vadd.f32 %v2113_v51, %v2076_v15 }
0x23f2   :  { %v2122_v58 = vadd.f32 %v4928_v56, %v2114_v41 }
0x23f4   :  { %v2126_v23 = vmax.f32 %v2122_v58, 0.0 }
0x23f6   :  { %v2128_v24 = vpack.c.bf16 %v2126_v23, %v2125_v22 }
0x23f7   :  { %v2395_v27 = vpop.f32.mrf.mxu0 }
0x23f8   :  { %4303 = vmatmul.msk.bf16.gmra.mxu1 %vm2156_vm7, %v2128_v24  ;;  %v4791_v24 = vld [vmem:[%s7243_s21 + $0x50] sm:$0xff] }
0x23fa   :  { %4624 = vmatmul.msk.bf16.vlgmr.msrb.gmra.mxu0 %vm635_vm1, %v6645_v45 }
0x23fb   :  { %3955 = vmatpush.bf16.msrb.mxu0 %v4836_v29 }
0x23ff   :  { %3956 = vmatpush.bf16.msrb.mxu0 %v4835_v32  ;;  %v2397_v46 = vpop.f32.mrf.mxu0 }
0x2407   :  { %v2400_v38 = vpop.f32.mrf.mxu0 }
0x2408   :  { %v2172_v9 = vpop.f32.mrf.mxu1 }
0x2409   :  { %v2173_v26 = vadd.f32 %v4929_v37, %v2172_v9 }
0x240a   :  { %4625 = vmatmul.msk.bf16.gmra.mxu0 %vm635_vm1, %v6659_v55 }
0x240b   :  { %v2182_v30 = vmax.f32 %v2173_v26, 0.0  ;;  %v6723_v26 = vld [vmem:[#allocation19] ss:$0 sm:$0xff] }
0x240f   :  { %v2402_v39 = vpop.f32.mrf.mxu0 }
0x2410   :  { %v2174_v4 = vpop.f32.mrf.mxu1 }
0x2411   :  { %v2175_v11 = vadd.f32 %v4929_v37, %v2174_v4  ;;  %v4790_v4 = vld [vmem:[%s7243_s21 + $0x48] sm:$0xff] }
0x2413   :  { %v2183_v31 = vmax.f32 %v2175_v11, 0.0 }
0x2415   :  { %v2190_v14 = vpack.c.bf16 %v2183_v31, %v2182_v30  ;;  %v4789_v30 = vld [vmem:[%s7243_s21 + $0x40] sm:$0xff] }
0x2417   :  { %4312 = vmatmul.msk.bf16.vlgmr.msrb.gmra.mxu2 %vm635_vm1, %v2190_v14  ;;  %4342 = vmatmul.msk.bf16.vlgmr.msrb.gmra.mxu3 %vm635_vm1, %v2190_v14 }
0x241a   :  { %4672 = vmatmul.msk.bf16.vlgmr.msra.gmra.mxu0 %vm635_vm1, %v6645_v45 }
0x242a   :  { %4673 = vmatmul.msk.bf16.gmra.mxu0 %vm635_vm1, %v6659_v55 }
0x243a   :  { %4720 = vmatmul.msk.bf16.vlgmr.msrb.gmra.mxu0 %vm635_vm1, %v6645_v45  ;;  %v4779_v45 = vld [vmem:[%s7243_s21 + $0x20] sm:$0xff] }
0x243b   :  { %2458 = vmatpush.bf16.msrb.mxu1 %v4779_v45 }
0x243f   :  { %2745 = vmatpush.bf16.msra.mxu1 %v4792_v20 }
0x2443   :  { %2746 = vmatpush.bf16.msra.mxu1 %v4791_v24 }
0x2447   :  { %2747 = vmatpush.bf16.msra.mxu1 %v4790_v4 }
0x244a   :  { %4721 = vmatmul.msk.bf16.gmra.mxu0 %vm635_vm1, %v6659_v55 }
0x244b   :  { %2748 = vmatpush.bf16.msra.mxu1 %v4789_v30  ;;  %v4794_v30 = vld [vmem:[%s7244_s18 + $0x28] sm:$0xff] }
0x244c   :  { %2800 = vmatpush.bf16.msrb.mxu2 %v4794_v30 }
0x2475   :  { %v2177_v33 = vpop.f32.mrf.mxu1 }
0x2476   :  { %v2178_v44 = vadd.f32 %v4929_v37, %v2177_v33 }
0x2478   :  { %v2184_v49 = vmax.f32 %v2178_v44, 0.0 }
0x247d   :  { %v2179_v35 = vpop.f32.mrf.mxu1 }
0x247e   :  { %v2180_v28 = vadd.f32 %v4929_v37, %v2179_v35 }
0x2480   :  { %v2185_v34 = vmax.f32 %v2180_v28, 0.0 }
0x2482   :  { %v2191_v50 = vpack.c.bf16 %v2185_v34, %v2184_v49 }
0x2484   :  { %4313 = vmatmul.msk.bf16.gmra.mxu2 %vm635_vm1, %v2191_v50  ;;  %4343 = vmatmul.msk.bf16.gmra.mxu3 %vm635_vm1, %v2191_v50 }
0x249a   :  { %v2364_v54 = vpop.f32.mrf.mxu3  ;;  %v2223_v16 = vpop.f32.mrf.mxu2 }
0x249b   :  { %v2396_v55 = vadd.f32 %v2395_v27, %v2364_v54  ;;  %v2224_v11 = vadd.f32 %v6723_v26, %v2223_v16 }
0x249d   :  { %v2408_v17 = vadd.f32 %v4931_v6, %v2396_v55  ;;  %v4314_v14 = vmul.f32 -1.442695, %v2224_v11 }
0x249f   :  { %v2412_v56 = vmax.f32 %v2408_v17, 0.0  ;;  %5080 = vpow2.f32 %v4314_v14 }
0x24a2   :  { %v2366_v42 = vpop.f32.mrf.mxu3  ;;  %v6721_v25 = vpop.f32.mrf.mxu2 }
0x24a3   :  { %v2398_v36 = vadd.f32 %v2397_v46, %v2366_v42 }
0x24a5   :  { %v2409_v18 = vadd.f32 %v4931_v6, %v2398_v36  ;;  %v5081_v27 = vpop.eup %5080 }
0x24a6   :  { %v2246_v46 = vadd.f32 1.0, %v5081_v27 }
0x24a7   :  { %v2413_v47 = vmax.f32 %v2409_v18, 0.0 }
0x24a8   :  { %5082 = vrcp.f32 %v2246_v46  ;;  %v2261_v63 = vand.u32 2147483648, %v2246_v46  ;;  %vm2255_vm14 = vweird.f32 %v2246_v46 }
0x24a9   :  { %v2416_v59 = vpack.c.bf16 %v2413_v47, %v2412_v56 }
0x24ab   :  { %4370 = vmatmul.msk.bf16.vlgmr.msrb.gmra.mxu1 %vm2156_vm7, %v2416_v59 }
0x24ae   :  { %v5083_v49 = vpop.eup %5082 }
0x24af   :  { %v2251_v52 = vmul.f32 %v5083_v49, %v2246_v46  ;;  %vm2256_vm8 = vweird.f32 %v5083_v49 }
0x24b0   :  { %vm2257_vm15 = vmor %vm2255_vm14, %vm2256_vm8 }
0x24b1   :  { %v2252_v17 = vsub.f32 1.0, %v2251_v52 }
0x24b3   :  { %v2253_v47 = vmul.f32 %v5083_v49, %v2252_v17 }
0x2507   :  { %v2369_v1 = vpop.f32.mrf.mxu3  ;;  %v6730_v31 = vpop.f32.mrf.mxu2 }
0x2508   :  { %v2401_v0 = vadd.f32 %v2400_v38, %v2369_v1  ;;  %v6734_v38 = vld [vmem:[#allocation19 + $0x1] ss:$0 sm:$0xff]  ;;  %v2023_v1 = vlaneseq }
0x250a   :  { %v2410_v3 = vadd.f32 %v4931_v6, %v2401_v0 }
0x250c   :  { %v2414_v53 = vmax.f32 %v2410_v3, 0.0  ;;  %v2259_v3 = vand.u32 2147483647, %v2246_v46 }
0x250e   :  { %vm2260_vm3 = vcmp.eq.f32.partialorder %v2259_v3, 8.507059e+37 }
0x250f   :  { %v2371_v61 = vpop.f32.mrf.mxu3  ;;  %v6732_v32 = vpop.f32.mrf.mxu2 }
0x2510   :  { %v2403_v7 = vadd.f32 %v2402_v39, %v2371_v61  ;;  %v2685_v39 = vpop.f32.mrf.mxu0  ;;  %v2254_v61 = vadd.f32 %v5083_v49, %v2253_v47 }
0x2512   :  { %v2411_v8 = vadd.f32 %v4931_v6, %v2403_v7  ;;  %v6742_v7 = vand.u32 127, %v2023_v1  ;;  %v2258_v10 = vsel %vm2257_vm15, %v5083_v49, %v2254_v61 }
0x2514   :  { %v2415_v21 = vmax.f32 %v2411_v8, 0.0  ;;  %vm2233_vm4 = vcmp.eq.s32.totalorder %v6742_v7, 0  ;;  %vm2523_vm5 = vcmp.eq.s32.totalorder %v6742_v7, 1 }
0x2516   :  { %v2417_v12 = vpack.c.bf16 %v2415_v21, %v2414_v53  ;;  %v2262_v21 = vor.u32 1.1754944e-38, %v2261_v63 }
0x2518   :  { %4371 = vmatmul.msk.bf16.gmra.mxu1 %vm2156_vm7, %v2417_v12  ;;  %v2687_v34 = vpop.f32.mrf.mxu0 }
0x2528   :  { %v2460_v13 = vpop.f32.mrf.mxu1 }
0x2529   :  { %v2461_v15 = vadd.f32 %v4932_v62, %v2460_v13  ;;  %v2263_v13 = vsel %vm2260_vm3, %v2262_v21, %v2258_v10 }
0x252b   :  { %v2470_v60 = vmax.f32 %v2461_v15, 0.0 }
0x2530   :  { %v2462_v51 = vpop.f32.mrf.mxu1 }
0x2531   :  { %v2463_v19 = vadd.f32 %v4932_v62, %v2462_v51 }
0x2533   :  { %v2471_v57 = vmax.f32 %v2463_v19, 0.0  ;;  %v2312_v19 = vsel %vm2233_vm4, %v2263_v13, 0.0 }
0x2535   :  { %v2479_v41 = vpack.c.bf16 %v2471_v57, %v2470_v60 }
0x2537   :  { %4384 = vmatmul.msk.bf16.vlgmr.msra.gmra.mxu2 %vm635_vm1, %v2479_v41  ;;  %4414 = vmatmul.msk.bf16.vlgmr.msra.gmra.mxu3 %vm635_vm1, %v2479_v41  ;;  %v2229_v41 = vadd.f32 %v6723_v26, %v6730_v31  ;;  %v4798_v31 = vld [vmem:[%s7241_s2 + $0x38] sm:$0xff] }
0x2538   :  { %2941 = vmatpush.bf16.msrb.mxu3 %v4798_v31 }
0x2595   :  { %v2465_v58 = vpop.f32.mrf.mxu1 }
0x2596   :  { %v2466_v40 = vadd.f32 %v4932_v62, %v2465_v58  ;;  %v4316_v58 = vmul.f32 -1.442695, %v2229_v41 }
0x2598   :  { %v2472_v9 = vmax.f32 %v2466_v40, 0.0 }
0x259d   :  { %v2467_v22 = vpop.f32.mrf.mxu1 }
0x259e   :  { %v2468_v23 = vadd.f32 %v4932_v62, %v2467_v22  ;;  %v2690_v22 = vpop.f32.mrf.mxu0 }
0x25a0   :  { %v2473_v37 = vmax.f32 %v2468_v23, 0.0 }
0x25a2   :  { %v2480_v29 = vpack.c.bf16 %v2473_v37, %v2472_v9 }
0x25a4   :  { %4385 = vmatmul.msk.bf16.gmra.mxu2 %vm635_vm1, %v2480_v29  ;;  %4415 = vmatmul.msk.bf16.gmra.mxu3 %vm635_vm1, %v2480_v29 }
0x25a6   :  { %v2692_v4 = vpop.f32.mrf.mxu0 }
0x25ba   :  { %v2513_v33 = vpop.f32.mrf.mxu2  ;;  %v2654_v43 = vpop.f32.mrf.mxu3 }
0x25bb   :  { %v2514_v44 = vadd.f32 %v6734_v38, %v2513_v33  ;;  %v2686_v28 = vadd.f32 %v2685_v39, %v2654_v43  ;;  %v4793_v43 = vld [vmem:[%s7244_s18 + $0x20] sm:$0xff] }
0x25bc   :  { %2801 = vmatpush.bf16.msrb.mxu2 %v4793_v43 }
0x25bd   :  { %v4386_v35 = vmul.f32 -1.442695, %v2514_v44  ;;  %v2698_v45 = vadd.f32 %v6737_v48, %v2686_v28  ;;  %v4797_v44 = vld [vmem:[%s7241_s2 + $0x30] sm:$0xff] }
0x25be   :  { %2942 = vmatpush.bf16.msrb.mxu3 %v4797_v44 }
0x25bf   :  { %5084 = vpow2.f32 %v4386_v35  ;;  %v2702_v36 = vmax.f32 %v2698_v45, 0.0 }
0x25c2   :  { %v2656_v50 = vpop.f32.mrf.mxu3  ;;  %v6754_v16 = vpop.f32.mrf.mxu2 }
0x25c3   :  { %v2688_v54 = vadd.f32 %v2687_v34, %v2656_v50 }
0x25c5   :  { %v5085_v55 = vpop.eup %5084  ;;  %v2699_v6 = vadd.f32 %v6737_v48, %v2688_v54 }
0x25c6   :  { %v2536_v42 = vadd.f32 1.0, %v5085_v55 }
0x25c7   :  { %v2703_v18 = vmax.f32 %v2699_v6, 0.0 }
0x25c8   :  { %5086 = vrcp.f32 %v2536_v42  ;;  %v2551_v8 = vand.u32 2147483648, %v2536_v42  ;;  %v2549_v53 = vand.u32 2147483647, %v2536_v42  ;;  %vm2545_vm2 = vweird.f32 %v2536_v42 }
0x25c9   :  { %v2706_v56 = vpack.c.bf16 %v2703_v18, %v2702_v36  ;;  %5088 = vpow2.f32 %v4316_v58  ;;  %v4801_v58 = vld [vmem:[%s7243_s21 + $0x70] sm:$0xff] }
0x25ca   :  { %v2552_v62 = vor.u32 1.1754944e-38, %v2551_v8  ;;  %vm2550_vm9 = vcmp.eq.f32.partialorder %v2549_v53, 8.507059e+37 }
0x25cb   :  { %4442 = vmatmul.msk.bf16.vlgmr.msra.gmra.mxu1 %vm2156_vm7, %v2706_v56 }
0x25ce   :  { %v5087_v59 = vpop.eup %5086 }
0x25cf   :  { %v2541_v0 = vmul.f32 %v5087_v59, %v2536_v42  ;;  %vm2546_vm0 = vweird.f32 %v5087_v59  ;;  %v5089_v20 = vpop.eup %5088 }
0x25d0   :  { %vm2547_vm6 = vmor %vm2545_vm2, %vm2546_vm0  ;;  %v2248_v40 = vadd.f32 1.0, %v5089_v20 }
0x25d1   :  { %v2542_v2 = vsub.f32 1.0, %v2541_v0 }
0x25d2   :  { %5090 = vrcp.f32 %v2248_v40  ;;  %v2291_v55 = vand.u32 2147483648, %v2248_v40  ;;  %vm2285_vm11 = vweird.f32 %v2248_v40  ;;  %v2289_v6 = vand.u32 2147483647, %v2248_v40 }
0x25d3   :  { %v2543_v5 = vmul.f32 %v5087_v59, %v2542_v2 }
0x25d4   :  { %v2292_v56 = vor.u32 1.1754944e-38, %v2291_v55  ;;  %vm2290_vm14 = vcmp.eq.f32.partialorder %v2289_v6, 8.507059e+37 }
0x25d5   :  { %v2544_v12 = vadd.f32 %v5087_v59, %v2543_v5  ;;  %v4935_v5 = vld [vmem:[#allocation17 + $0x2] ss:$0 sm:$0xff] }
0x25d7   :  { %v2548_v15 = vsel %vm2547_vm6, %v5087_v59, %v2544_v12  ;;  %vm2813_vm6 = vcmp.eq.s32.totalorder %v6742_v7, 2 }
0x25d8   :  { %v2553_v51 = vsel %vm2550_vm9, %v2552_v62, %v2548_v15  ;;  %v5091_v26 = vpop.eup %5090 }
0x25d9   :  { %v2602_v60 = vsel %vm2523_vm5, %v2553_v51, 0.0  ;;  %v2281_v14 = vmul.f32 %v5091_v26, %v2248_v40  ;;  %vm2286_vm10 = vweird.f32 %v5091_v26  ;;  %v4802_v51 = vld [vmem:[%s7243_s21 + $0x78] sm:$0xff] }
0x25da   :  { %v6750_v57 = vadd.f32 %v2602_v60, %v2312_v19  ;;  %vm2287_vm12 = vmor %vm2285_vm11, %vm2286_vm10  ;;  %3035 = vmatpush.bf16.msrb.mxu1 %v4802_v51 }
0x25db   :  { %v2282_v35 = vsub.f32 1.0, %v2281_v14  ;;  %v4937_v14 = vld [vmem:[#allocation16 + $0x3] ss:$0 sm:$0xff] }
0x25dd   :  { %v2283_v50 = vmul.f32 %v5091_v26, %v2282_v35 }
0x25de   :  { %3036 = vmatpush.bf16.msrb.mxu1 %v4801_v58 }
0x25df   :  { %v2284_v54 = vadd.f32 %v5091_v26, %v2283_v50 }
0x25e1   :  { %v2288_v36 = vsel %vm2287_vm12, %v5091_v26, %v2284_v54 }
0x25e2   :  { %v2293_v59 = vsel %vm2290_vm14, %v2292_v56, %v2288_v36 }
0x25e3   :  { %v2314_v63 = vsel %vm2233_vm4, %v2293_v59, 0.0 }
0x2627   :  { %v2518_v23 = vpop.f32.mrf.mxu2  ;;  %v2659_v24 = vpop.f32.mrf.mxu3 }
0x2628   :  { %v2519_v9 = vadd.f32 %v6734_v38, %v2518_v23  ;;  %v2691_v29 = vadd.f32 %v2690_v22, %v2659_v24  ;;  %v4800_v23 = vld [vmem:[%s7243_s21 + $0x68] sm:$0xff]  ;;  %v4799_v24 = vld [vmem:[%s7243_s21 + $0x60] sm:$0xff] }
0x2629   :  { %3037 = vmatpush.bf16.msrb.mxu1 %v4800_v23 }
0x262a   :  { %v4388_v37 = vmul.f32 -1.442695, %v2519_v9  ;;  %v2700_v27 = vadd.f32 %v6737_v48, %v2691_v29  ;;  %v2975_v29 = vpop.f32.mrf.mxu0 }
0x262c   :  { %5092 = vpow2.f32 %v4388_v37  ;;  %v2704_v28 = vmax.f32 %v2700_v27, 0.0  ;;  %v6780_v37 = vld [vmem:[#allocation19 + $0x2] ss:$0 sm:$0xff] }
0x262d   :  { %3038 = vmatpush.bf16.msrb.mxu1 %v4799_v24 }
0x262f   :  { %v2661_v11 = vpop.f32.mrf.mxu3  ;;  %v6778_v9 = vpop.f32.mrf.mxu2 }
0x2630   :  { %v2693_v46 = vadd.f32 %v2692_v4, %v2661_v11 }
0x2632   :  { %v5093_v39 = vpop.eup %5092  ;;  %v2701_v33 = vadd.f32 %v6737_v48, %v2693_v46  ;;  %v2977_v27 = vpop.f32.mrf.mxu0 }
0x2633   :  { %v2538_v38 = vadd.f32 1.0, %v5093_v39 }
0x2634   :  { %v2705_v49 = vmax.f32 %v2701_v33, 0.0 }
0x2635   :  { %5094 = vrcp.f32 %v2538_v38  ;;  %v2581_v42 = vand.u32 2147483648, %v2538_v38  ;;  %v2579_v18 = vand.u32 2147483647, %v2538_v38  ;;  %vm2575_vm8 = vweird.f32 %v2538_v38 }
0x2636   :  { %v2707_v34 = vpack.c.bf16 %v2705_v49, %v2704_v28 }
0x2637   :  { %v2582_v1 = vor.u32 1.1754944e-38, %v2581_v42  ;;  %vm2580_vm0 = vcmp.eq.f32.partialorder %v2579_v18, 8.507059e+37 }
0x2638   :  { %4443 = vmatmul.msk.bf16.gmra.mxu1 %vm2156_vm7, %v2707_v34 }
0x263b   :  { %v5095_v52 = vpop.eup %5094 }
0x263c   :  { %v2571_v45 = vmul.f32 %v5095_v52, %v2538_v38  ;;  %vm2576_vm13 = vweird.f32 %v5095_v52 }
0x263d   :  { %vm2577_vm15 = vmor %vm2575_vm8, %vm2576_vm13 }
0x263e   :  { %v2572_v48 = vsub.f32 1.0, %v2571_v45 }
0x2640   :  { %v2573_v17 = vmul.f32 %v5095_v52, %v2572_v48 }
0x2642   :  { %v2574_v47 = vadd.f32 %v5095_v52, %v2573_v17 }
0x2644   :  { %v2578_v0 = vsel %vm2577_vm15, %v5095_v52, %v2574_v47  ;;  %v2980_v47 = vpop.f32.mrf.mxu0 }
0x2645   :  { %v2583_v61 = vsel %vm2580_vm0, %v2582_v1, %v2578_v0  ;;  %vm3103_vm0 = vcmp.eq.s32.totalorder %v6742_v7, 3 }
0x2646   :  { %v2604_v2 = vsel %vm2523_vm5, %v2583_v61, 0.0 }
0x2647   :  { %v6768_v3 = vadd.f32 %v2604_v2, %v2314_v63 }
0x2648   :  { %v2750_v8 = vpop.f32.mrf.mxu1 }
0x2649   :  { %v2751_v10 = vadd.f32 %v4935_v5, %v2750_v8 }
0x264b   :  { %v2760_v12 = vmax.f32 %v2751_v10, 0.0  ;;  %v4808_v10 = vld [vmem:[%s7241_s2 + $0x48] sm:$0xff] }
0x264c   :  { %v2982_v2 = vpop.f32.mrf.mxu0  ;;  %3231 = vmatpush.bf16.msra.mxu3 %v4808_v10 }
0x2650   :  { %v2752_v53 = vpop.f32.mrf.mxu1 }
0x2651   :  { %v2753_v21 = vadd.f32 %v4935_v5, %v2752_v53 }
0x2653   :  { %v2761_v13 = vmax.f32 %v2753_v21, 0.0 }
0x2655   :  { %v2769_v62 = vpack.c.bf16 %v2761_v13, %v2760_v12 }
0x2657   :  { %4456 = vmatmul.msk.bf16.vlgmr.msrb.gmra.mxu2 %vm635_vm1, %v2769_v62  ;;  %4486 = vmatmul.msk.bf16.vlgmr.msrb.gmra.mxu3 %vm635_vm1, %v2769_v62  ;;  %v4803_v62 = vld [vmem:[%s7244_s18 + $0x30] sm:$0xff] }
0x26b5   :  { %v2755_v15 = vpop.f32.mrf.mxu1 }
0x26b6   :  { %v2756_v19 = vadd.f32 %v4935_v5, %v2755_v15  ;;  %v4807_v15 = vld [vmem:[%s7241_s2 + $0x40] sm:$0xff] }
0x26b7   :  { %3232 = vmatpush.bf16.msra.mxu3 %v4807_v15 }
0x26b8   :  { %v2762_v20 = vmax.f32 %v2756_v19, 0.0 }
0x26bd   :  { %v2757_v60 = vpop.f32.mrf.mxu1 }
0x26be   :  { %v2758_v41 = vadd.f32 %v4935_v5, %v2757_v60  ;;  %v4804_v5 = vld [vmem:[%s7244_s18 + $0x38] sm:$0xff] }
0x26bf   :  { %3090 = vmatpush.bf16.msra.mxu2 %v4804_v5 }
0x26c0   :  { %v2763_v40 = vmax.f32 %v2758_v41, 0.0 }
0x26c2   :  { %v2770_v22 = vpack.c.bf16 %v2763_v40, %v2762_v20 }
0x26c3   :  { %3091 = vmatpush.bf16.msra.mxu2 %v4803_v62 }
0x26c4   :  { %4457 = vmatmul.msk.bf16.gmra.mxu2 %vm635_vm1, %v2770_v22  ;;  %4487 = vmatmul.msk.bf16.gmra.mxu3 %vm635_vm1, %v2770_v22 }
0x26da   :  { %v2803_v26 = vpop.f32.mrf.mxu2  ;;  %v2944_v4 = vpop.f32.mrf.mxu3 }
0x26db   :  { %v2804_v11 = vadd.f32 %v6780_v37, %v2803_v26  ;;  %v2976_v31 = vadd.f32 %v2975_v29, %v2944_v4 }
0x26dd   :  { %v4458_v30 = vmul.f32 -1.442695, %v2804_v11  ;;  %v2988_v39 = vadd.f32 %v4937_v14, %v2976_v31 }
0x26df   :  { %5096 = vpow2.f32 %v4458_v30  ;;  %v2992_v35 = vmax.f32 %v2988_v39, 0.0 }
0x26e2   :  { %v2946_v46 = vpop.f32.mrf.mxu3  ;;  %v6790_v56 = vpop.f32.mrf.mxu2 }
0x26e3   :  { %v2978_v33 = vadd.f32 %v2977_v27, %v2946_v46 }
0x26e5   :  { %v5097_v38 = vpop.eup %5096  ;;  %v2989_v43 = vadd.f32 %v4937_v14, %v2978_v33 }
0x26e6   :  { %v2826_v44 = vadd.f32 1.0, %v5097_v38 }
0x26e7   :  { %v2993_v28 = vmax.f32 %v2989_v43, 0.0 }
0x26e8   :  { %5098 = vrcp.f32 %v2826_v44  ;;  %v2841_v45 = vand.u32 2147483648, %v2826_v44  ;;  %v2839_v55 = vand.u32 2147483647, %v2826_v44  ;;  %vm2835_vm3 = vweird.f32 %v2826_v44 }
0x26e9   :  { %v2996_v49 = vpack.c.bf16 %v2993_v28, %v2992_v35  ;;  %v4812_v35 = vld [vmem:[%s7243_s21 + $0x98] sm:$0xff] }
0x26ea   :  { %v2842_v6 = vor.u32 1.1754944e-38, %v2841_v45  ;;  %vm2840_vm10 = vcmp.eq.f32.partialorder %v2839_v55, 8.507059e+37  ;;  %3325 = vmatpush.bf16.msra.mxu1 %v4812_v35  ;;  %v4809_v55 = vld [vmem:[%s7243_s21 + $0x80] sm:$0xff] }
0x26eb   :  { %4514 = vmatmul.msk.bf16.vlgmr.msrb.gmra.mxu1 %vm2156_vm7, %v2996_v49 }
0x26ee   :  { %v5099_v34 = vpop.eup %5098 }
0x26ef   :  { %v2831_v50 = vmul.f32 %v5099_v34, %v2826_v44  ;;  %vm2836_vm2 = vweird.f32 %v5099_v34 }
0x26f0   :  { %vm2837_vm9 = vmor %vm2835_vm3, %vm2836_vm2 }
0x26f1   :  { %v2832_v52 = vsub.f32 1.0, %v2831_v50 }
0x26f3   :  { %v2833_v54 = vmul.f32 %v5099_v34, %v2832_v52 }
0x26f5   :  { %v2834_v48 = vadd.f32 %v5099_v34, %v2833_v54  ;;  %v4810_v54 = vld [vmem:[%s7243_s21 + $0x88] sm:$0xff] }
0x26f7   :  { %v2838_v42 = vsel %vm2837_vm9, %v5099_v34, %v2834_v48  ;;  %v4811_v34 = vld [vmem:[%s7243_s21 + $0x90] sm:$0xff] }
0x26f8   :  { %v2843_v17 = vsel %vm2840_vm10, %v2842_v6, %v2838_v42  ;;  %3326 = vmatpush.bf16.msra.mxu1 %v4811_v34  ;;  %v6813_v6 = vld [vmem:[#allocation19 + $0x3] ss:$0 sm:$0xff]  ;;  %v3265_v42 = vpop.f32.mrf.mxu0 }
0x26f9   :  { %v2892_v36 = vsel %vm2813_vm6, %v2843_v17, 0.0 }
0x26fa   :  { %v6788_v18 = vadd.f32 %v2892_v36, %v6750_v57 }
0x26fc   :  { %3327 = vmatpush.bf16.msra.mxu1 %v4810_v54 }
0x2700   :  { %3328 = vmatpush.bf16.msra.mxu1 %v4809_v55 }
0x2747   :  { %v2808_v59 = vpop.f32.mrf.mxu2  ;;  %v2949_v1 = vpop.f32.mrf.mxu3 }
0x2748   :  { %v2809_v0 = vadd.f32 %v6780_v37, %v2808_v59  ;;  %v2981_v63 = vadd.f32 %v2980_v47, %v2949_v1 }
0x274a   :  { %v4460_v61 = vmul.f32 -1.442695, %v2809_v0  ;;  %v2990_v53 = vadd.f32 %v4937_v14, %v2981_v63  ;;  %v4940_v0 = vld [vmem:[#allocation16 + $0x4] ss:$0 sm:$0xff] }
0x274c   :  { %5100 = vpow2.f32 %v4460_v61  ;;  %v2994_v51 = vmax.f32 %v2990_v53, 0.0  ;;  %v3267_v61 = vpop.f32.mrf.mxu0 }
0x274f   :  { %v2951_v8 = vpop.f32.mrf.mxu3  ;;  %v6811_v48 = vpop.f32.mrf.mxu2 }
0x2750   :  { %v2983_v21 = vadd.f32 %v2982_v2, %v2951_v8 }
0x2752   :  { %v5101_v57 = vpop.eup %5100  ;;  %v2991_v12 = vadd.f32 %v4937_v14, %v2983_v21  ;;  %v4938_v14 = vld [vmem:[#allocation17 + $0x3] ss:$0 sm:$0xff] }
0x2753   :  { %v2828_v13 = vadd.f32 1.0, %v5101_v57 }
0x2754   :  { %v2995_v19 = vmax.f32 %v2991_v12, 0.0 }
0x2755   :  { %5102 = vrcp.f32 %v2828_v13  ;;  %v2871_v40 = vand.u32 2147483648, %v2828_v13  ;;  %v2869_v23 = vand.u32 2147483647, %v2828_v13  ;;  %vm2865_vm12 = vweird.f32 %v2828_v13 }
0x2756   :  { %v2997_v60 = vpack.c.bf16 %v2995_v19, %v2994_v51 }
0x2757   :  { %v2872_v29 = vor.u32 1.1754944e-38, %v2871_v40  ;;  %vm2870_vm8 = vcmp.eq.f32.partialorder %v2869_v23, 8.507059e+37 }
0x2758   :  { %4515 = vmatmul.msk.bf16.gmra.mxu1 %vm2156_vm7, %v2997_v60 }
0x275b   :  { %v5103_v41 = vpop.eup %5102 }
0x275c   :  { %v2861_v58 = vmul.f32 %v5103_v41, %v2828_v13  ;;  %vm2866_vm11 = vweird.f32 %v5103_v41 }
0x275d   :  { %vm2867_vm13 = vmor %vm2865_vm12, %vm2866_vm11 }
0x275e   :  { %v2862_v20 = vsub.f32 1.0, %v2861_v58 }
0x2760   :  { %v2863_v22 = vmul.f32 %v5103_v41, %v2862_v20 }
0x2762   :  { %v2864_v24 = vadd.f32 %v5103_v41, %v2863_v22 }
0x2764   :  { %v2868_v26 = vsel %vm2867_vm13, %v5103_v41, %v2864_v24 }
0x2765   :  { %v2873_v4 = vsel %vm2870_vm8, %v2872_v29, %v2868_v26  ;;  %v3270_v29 = vpop.f32.mrf.mxu0 }
0x2766   :  { %v2894_v11 = vsel %vm2813_vm6, %v2873_v4, 0.0 }
0x2767   :  { %v6801_v30 = vadd.f32 %v2894_v11, %v6768_v3 }
0x2768   :  { %v3040_v31 = vpop.f32.mrf.mxu1 }
0x2769   :  { %v3041_v27 = vadd.f32 %v4938_v14, %v3040_v31 }
0x276b   :  { %v3050_v33 = vmax.f32 %v3041_v27, 0.0 }
0x276d   :  { %v3272_v27 = vpop.f32.mrf.mxu0 }
0x2770   :  { %v3042_v46 = vpop.f32.mrf.mxu1 }
0x2771   :  { %v3043_v39 = vadd.f32 %v4938_v14, %v3042_v46 }
0x2773   :  { %v3051_v38 = vmax.f32 %v3043_v39, 0.0  ;;  %v4814_v39 = vld [vmem:[%s7244_s18 + $0x48] sm:$0xff] }
0x2774   :  { %3380 = vmatpush.bf16.msrb.mxu2 %v4814_v39 }
0x2775   :  { %v3059_v43 = vpack.c.bf16 %v3051_v38, %v3050_v33  ;;  %v4818_v33 = vld [vmem:[#allocation22 + $0x8] sm:$0xff] }
0x2776   :  { %3516 = vmatpush.bf16.msrb.mxu3 %v4818_v33 }
0x2777   :  { %4528 = vmatmul.msk.bf16.vlgmr.msra.gmra.mxu2 %vm635_vm1, %v3059_v43  ;;  %4558 = vmatmul.msk.bf16.vlgmr.msra.gmra.mxu3 %vm635_vm1, %v3059_v43 }
0x27d5   :  { %v3045_v44 = vpop.f32.mrf.mxu1 }
0x27d6   :  { %v3046_v28 = vadd.f32 %v4938_v14, %v3045_v44 }
0x27d8   :  { %v3052_v50 = vmax.f32 %v3046_v28, 0.0  ;;  %v4813_v28 = vld [vmem:[%s7244_s18 + $0x40] sm:$0xff] }
0x27d9   :  { %3381 = vmatpush.bf16.msrb.mxu2 %v4813_v28 }
0x27dd   :  { %v3047_v3 = vpop.f32.mrf.mxu1 }
0x27de   :  { %v3048_v49 = vadd.f32 %v4938_v14, %v3047_v3  ;;  %v4817_v3 = vld [vmem:[#allocation22] sm:$0xff] }
0x27df   :  { %3517 = vmatpush.bf16.msrb.mxu3 %v4817_v3 }
0x27e0   :  { %v3053_v52 = vmax.f32 %v3048_v49, 0.0 }
0x27e2   :  { %v3060_v45 = vpack.c.bf16 %v3053_v52, %v3052_v50 }
0x27e4   :  { %4529 = vmatmul.msk.bf16.gmra.mxu2 %vm635_vm1, %v3060_v45  ;;  %4559 = vmatmul.msk.bf16.gmra.mxu3 %vm635_vm1, %v3060_v45 }
0x27fa   :  { %v3093_v17 = vpop.f32.mrf.mxu2  ;;  %v3234_v36 = vpop.f32.mrf.mxu3 }
0x27fb   :  { %v3094_v47 = vadd.f32 %v6813_v6, %v3093_v17  ;;  %v3266_v1 = vadd.f32 %v3265_v42, %v3234_v36 }
0x27fd   :  { %v4530_v59 = vmul.f32 -1.442695, %v3094_v47  ;;  %v3278_v2 = vadd.f32 %v4940_v0, %v3266_v1 }
0x27ff   :  { %5104 = vpow2.f32 %v4530_v59  ;;  %v3282_v21 = vmax.f32 %v3278_v2, 0.0  ;;  %v4941_v2 = vld [vmem:[#allocation17 + $0x4] ss:$0 sm:$0xff] }
0x2802   :  { %v3236_v63 = vpop.f32.mrf.mxu3  ;;  %v6823_v24 = vpop.f32.mrf.mxu2 }
0x2803   :  { %v3268_v8 = vadd.f32 %v3267_v61, %v3236_v63 }
0x2805   :  { %v5105_v5 = vpop.eup %5104  ;;  %v3279_v10 = vadd.f32 %v4940_v0, %v3268_v8 }
0x2806   :  { %v3116_v53 = vadd.f32 1.0, %v5105_v5 }
0x2807   :  { %v3283_v57 = vmax.f32 %v3279_v10, 0.0 }
0x2808   :  { %5106 = vrcp.f32 %v3116_v53  ;;  %v3131_v51 = vand.u32 2147483648, %v3116_v53  ;;  %v3129_v60 = vand.u32 2147483647, %v3116_v53  ;;  %vm3125_vm15 = vweird.f32 %v3116_v53 }
0x2809   :  { %v3286_v12 = vpack.c.bf16 %v3283_v57, %v3282_v21 }
0x280a   :  { %v3132_v58 = vor.u32 1.1754944e-38, %v3131_v51  ;;  %vm3130_vm3 = vcmp.eq.f32.partialorder %v3129_v60, 8.507059e+37  ;;  %v4821_v51 = vld [vmem:[%s7245_s26 + $0x10] sm:$0xff] }
0x280b   :  { %4586 = vmatmul.msk.bf16.vlgmr.msra.gmra.mxu1 %vm2156_vm7, %v3286_v12 }
0x280e   :  { %v5107_v13 = vpop.eup %5106 }
0x280f   :  { %v3121_v62 = vmul.f32 %v5107_v13, %v3116_v53  ;;  %vm3126_vm14 = vweird.f32 %v5107_v13 }
0x2810   :  { %vm3127_vm2 = vmor %vm3125_vm15, %vm3126_vm14 }
0x2811   :  { %v3122_v15 = vsub.f32 1.0, %v3121_v62 }
0x2813   :  { %v3123_v19 = vmul.f32 %v5107_v13, %v3122_v15 }
0x2815   :  { %v3124_v41 = vadd.f32 %v5107_v13, %v3123_v19 }
0x2817   :  { %v3128_v20 = vsel %vm3127_vm2, %v5107_v13, %v3124_v41  ;;  %v4822_v13 = vld [vmem:[%s7245_s26 + $0x18] sm:$0xff]  ;;  %vm3393_vm2 = vcmp.eq.s32.totalorder %v6742_v7, 4 }
0x2818   :  { %v3133_v40 = vsel %vm3130_vm3, %v3132_v58, %v3128_v20  ;;  %3610 = vmatpush.bf16.msrb.mxu1 %v4822_v13  ;;  %v4820_v58 = vld [vmem:[%s7245_s26 + $0x8] sm:$0xff]  ;;  %v4819_v20 = vld [vmem:[%s7245_s26] sm:$0xff] }
0x2819   :  { %v3182_v22 = vsel %vm3103_vm0, %v3133_v40, 0.0  ;;  %v3550_v40 = vpop.f32.mrf.mxu0 }
0x281a   :  { %v6821_v23 = vadd.f32 %v3182_v22, %v6788_v18 }
0x281c   :  { %3611 = vmatpush.bf16.msrb.mxu1 %v4821_v51 }
0x2820   :  { %3612 = vmatpush.bf16.msrb.mxu1 %v4820_v58 }
0x2824   :  { %3613 = vmatpush.bf16.msrb.mxu1 %v4819_v20 }
0x2867   :  { %v3098_v26 = vpop.f32.mrf.mxu2  ;;  %v3239_v4 = vpop.f32.mrf.mxu3 }
0x2868   :  { %v3099_v11 = vadd.f32 %v6813_v6, %v3098_v26  ;;  %v3271_v14 = vadd.f32 %v3270_v29, %v3239_v4  ;;  %v4943_v26 = vld [vmem:[%s7246_s14] ss:$0 sm:$0xff]  ;;  %v3552_v4 = vpop.f32.mrf.mxu0 }
0x286a   :  { %v4532_v31 = vmul.f32 -1.442695, %v3099_v11  ;;  %v3280_v38 = vadd.f32 %v4940_v0, %v3271_v14 }
0x286c   :  { %5108 = vpow2.f32 %v4532_v31  ;;  %v3284_v49 = vmax.f32 %v3280_v38, 0.0 }
0x286f   :  { %v3241_v46 = vpop.f32.mrf.mxu3  ;;  %v6844_v38 = vpop.f32.mrf.mxu2 }
0x2870   :  { %v3273_v43 = vadd.f32 %v3272_v27, %v3241_v46 }
0x2872   :  { %v5109_v18 = vpop.eup %5108  ;;  %v3281_v44 = vadd.f32 %v4940_v0, %v3273_v43 }
0x2873   :  { %v3118_v35 = vadd.f32 1.0, %v5109_v18 }
0x2874   :  { %v3285_v34 = vmax.f32 %v3281_v44, 0.0  ;;  %v3555_v44 = vpop.f32.mrf.mxu0 }
0x2875   :  { %5110 = vrcp.f32 %v3118_v35  ;;  %v3161_v55 = vand.u32 2147483648, %v3118_v35  ;;  %v3159_v17 = vand.u32 2147483647, %v3118_v35  ;;  %vm3155_vm10 = vweird.f32 %v3118_v35 }
0x2876   :  { %v3287_v50 = vpack.c.bf16 %v3285_v34, %v3284_v49 }
0x2877   :  { %v3162_v47 = vor.u32 1.1754944e-38, %v3161_v55  ;;  %vm3160_vm12 = vcmp.eq.f32.partialorder %v3159_v17, 8.507059e+37  ;;  %v4828_v55 = vld [vmem:[#allocation29 + $0x8] sm:$0xff] }
0x2878   :  { %4587 = vmatmul.msk.bf16.gmra.mxu1 %vm2156_vm7, %v3287_v50  ;;  %3720 = vmatpush.bf16.msra.mxu3 %v4828_v55 }
0x287b   :  { %v5111_v52 = vpop.eup %5110 }
0x287c   :  { %v3151_v45 = vmul.f32 %v5111_v52, %v3118_v35  ;;  %vm3156_vm9 = vweird.f32 %v5111_v52  ;;  %v6850_v35 = vld [vmem:[#allocation19 + $0x4] ss:$0 sm:$0xff] }
0x287d   :  { %vm3157_vm11 = vmor %vm3155_vm10, %vm3156_vm9 }
0x287e   :  { %v3152_v54 = vsub.f32 1.0, %v3151_v45 }
0x2880   :  { %v3153_v42 = vmul.f32 %v5111_v52, %v3152_v54  ;;  %v4824_v54 = vld [vmem:[#allocation25 + $0x8] sm:$0xff] }
0x2881   :  { %3659 = vmatpush.bf16.msra.mxu2 %v4824_v54 }
0x2882   :  { %v3154_v36 = vadd.f32 %v5111_v52, %v3153_v42 }
0x2884   :  { %v3158_v59 = vsel %vm3157_vm11, %v5111_v52, %v3154_v36  ;;  %v3557_v52 = vpop.f32.mrf.mxu0 }
0x2885   :  { %v3163_v1 = vsel %vm3160_vm12, %v3162_v47, %v3158_v59 }
0x2886   :  { %v3184_v0 = vsel %vm3103_vm0, %v3163_v1, 0.0  ;;  %v4823_v1 = vld [vmem:[#allocation25] sm:$0xff] }
0x2887   :  { %v6832_v61 = vadd.f32 %v3184_v0, %v6801_v30  ;;  %v4827_v0 = vld [vmem:[#allocation29] sm:$0xff]  ;;  %3660 = vmatpush.bf16.msra.mxu2 %v4823_v1 }
0x2888   :  { %v3330_v63 = vpop.f32.mrf.mxu1  ;;  %3721 = vmatpush.bf16.msra.mxu3 %v4827_v0 }
0x2889   :  { %v3331_v8 = vadd.f32 %v4941_v2, %v3330_v63 }
0x288b   :  { %v3340_v53 = vmax.f32 %v3331_v8, 0.0 }
0x2890   :  { %v3332_v5 = vpop.f32.mrf.mxu1 }
0x2891   :  { %v3333_v10 = vadd.f32 %v4941_v2, %v3332_v5 }
0x2893   :  { %v3341_v21 = vmax.f32 %v3333_v10, 0.0 }
0x2895   :  { %v3349_v57 = vpack.c.bf16 %v3341_v21, %v3340_v53 }
0x2897   :  { %4600 = vmatmul.msk.bf16.vlgmr.msrb.gmra.mxu2 %vm635_vm1, %v3349_v57  ;;  %4614 = vmatmul.msk.bf16.vlgmr.msrb.gmra.mxu3 %vm635_vm1, %v3349_v57 }
0x28f5   :  { %v3335_v12 = vpop.f32.mrf.mxu1 }
0x28f6   :  { %v3336_v62 = vadd.f32 %v4941_v2, %v3335_v12 }
0x28f8   :  { %v3342_v19 = vmax.f32 %v3336_v62, 0.0 }
0x28fd   :  { %v3337_v30 = vpop.f32.mrf.mxu1 }
0x28fe   :  { %v3338_v15 = vadd.f32 %v4941_v2, %v3337_v30 }
0x2900   :  { %v3343_v60 = vmax.f32 %v3338_v15, 0.0 }
0x2902   :  { %v3350_v41 = vpack.c.bf16 %v3343_v60, %v3342_v19 }
0x2904   :  { %4601 = vmatmul.msk.bf16.gmra.mxu2 %vm635_vm1, %v3350_v41  ;;  %4615 = vmatmul.msk.bf16.gmra.mxu3 %vm635_vm1, %v3350_v41  ;;  %v4944_v41 = vld [vmem:[#allocation23] ss:$0 sm:$0xff] }
0x291a   :  { %v3519_v22 = vpop.f32.mrf.mxu3  ;;  %v6846_v43 = vpop.f32.mrf.mxu2 }
0x291b   :  { %v3551_v29 = vadd.f32 %v3550_v40, %v3519_v22 }
0x291d   :  { %v3563_v31 = vadd.f32 %v4943_v26, %v3551_v29 }
0x291f   :  { %v3567_v46 = vmax.f32 %v3563_v31, 0.0 }
0x2922   :  { %v3521_v11 = vpop.f32.mrf.mxu3  ;;  %v6848_v18 = vpop.f32.mrf.mxu2 }
0x2923   :  { %v3553_v14 = vadd.f32 %v3552_v4, %v3521_v11  ;;  %v4832_v11 = vld [vmem:[%s7247_s16 + $0x18] sm:$0xff] }
0x2924   :  { %3814 = vmatpush.bf16.msra.mxu1 %v4832_v11 }
0x2925   :  { %v3564_v27 = vadd.f32 %v4943_v26, %v3553_v14 }
0x2927   :  { %v3568_v39 = vmax.f32 %v3564_v27, 0.0  ;;  %v4831_v27 = vld [vmem:[%s7247_s16 + $0x10] sm:$0xff] }
0x2928   :  { %3815 = vmatpush.bf16.msra.mxu1 %v4831_v27 }
0x2929   :  { %v3571_v33 = vpack.c.bf16 %v3568_v39, %v3567_v46 }
0x292b   :  { %4642 = vmatmul.msk.bf16.vlgmr.msrb.gmra.mxu1 %vm2156_vm7, %v3571_v33 }
0x2987   :  { %v3388_v28 = vpop.f32.mrf.mxu2  ;;  %v3524_v3 = vpop.f32.mrf.mxu3 }
0x2988   :  { %v3389_v49 = vadd.f32 %v6850_v35, %v3388_v28  ;;  %v3556_v50 = vadd.f32 %v3555_v44, %v3524_v3  ;;  %v4830_v44 = vld [vmem:[%s7247_s16 + $0x8] sm:$0xff]  ;;  %v4829_v28 = vld [vmem:[%s7247_s16] sm:$0xff]  ;;  %v3754_v3 = vpop.f32.mrf.mxu0 }
0x2989   :  { %3816 = vmatpush.bf16.msra.mxu1 %v4830_v44 }
0x298a   :  { %v4604_v34 = vmul.f32 -1.442695, %v3389_v49  ;;  %v3565_v42 = vadd.f32 %v4943_v26, %v3556_v50  ;;  %v4945_v50 = vld [vmem:[#allocation31] ss:$0 sm:$0xff] }
0x298c   :  { %5112 = vpow2.f32 %v4604_v34  ;;  %v3569_v63 = vmax.f32 %v3565_v42, 0.0 }
0x298d   :  { %3817 = vmatpush.bf16.msra.mxu1 %v4829_v28 }
0x298f   :  { %v3526_v45 = vpop.f32.mrf.mxu3 }
0x2990   :  { %v3558_v17 = vadd.f32 %v3557_v52, %v3526_v45  ;;  %v3756_v52 = vpop.f32.mrf.mxu0 }
0x2992   :  { %v5113_v36 = vpop.eup %5112  ;;  %v3566_v47 = vadd.f32 %v4943_v26, %v3558_v17 }
0x2993   :  { %v3408_v59 = vadd.f32 1.0, %v5113_v36 }
0x2994   :  { %v3570_v2 = vmax.f32 %v3566_v47, 0.0 }
0x2995   :  { %5114 = vrcp.f32 %v3408_v59  ;;  %v3451_v21 = vand.u32 2147483648, %v3408_v59  ;;  %v3449_v12 = vand.u32 2147483647, %v3408_v59  ;;  %vm3445_vm8 = vweird.f32 %v3408_v59 }
0x2996   :  { %v3572_v8 = vpack.c.bf16 %v3570_v2, %v3569_v63 }
0x2997   :  { %v3452_v62 = vor.u32 1.1754944e-38, %v3451_v21  ;;  %vm3450_vm15 = vcmp.eq.f32.partialorder %v3449_v12, 8.507059e+37  ;;  %v4838_v12 = vld [vmem:[#allocation38 + $0x8] sm:$0xff] }
0x2998   :  { %4643 = vmatmul.msk.bf16.gmra.mxu1 %vm2156_vm7, %v3572_v8  ;;  %v3759_v63 = vpop.f32.mrf.mxu0  ;;  %3924 = vmatpush.bf16.msrb.mxu3 %v4838_v12 }
0x299b   :  { %v5115_v5 = vpop.eup %5114 }
0x299c   :  { %v3441_v10 = vmul.f32 %v5115_v5, %v3408_v59  ;;  %vm3446_vm13 = vweird.f32 %v5115_v5  ;;  %v6867_v59 = vpop.f32.mrf.mxu2 }
0x299d   :  { %vm3447_vm14 = vmor %vm3445_vm8, %vm3446_vm13 }
0x299e   :  { %v3442_v53 = vsub.f32 1.0, %v3441_v10 }
0x29a0   :  { %v3443_v57 = vmul.f32 %v5115_v5, %v3442_v53  ;;  %v3761_v53 = vpop.f32.mrf.mxu0 }
0x29a2   :  { %v3444_v13 = vadd.f32 %v5115_v5, %v3443_v57  ;;  %v4834_v57 = vld [vmem:[#allocation34 + $0x8] sm:$0xff] }
0x29a3   :  { %3863 = vmatpush.bf16.msrb.mxu2 %v4834_v57 }
0x29a4   :  { %v3448_v30 = vsel %vm3447_vm14, %v5115_v5, %v3444_v13 }
0x29a5   :  { %v3453_v15 = vsel %vm3450_vm15, %v3452_v62, %v3448_v30 }
0x29a6   :  { %v3474_v51 = vsel %vm3393_vm2, %v3453_v15, 0.0  ;;  %v4833_v15 = vld [vmem:[#allocation34] sm:$0xff] }
0x29a7   :  { %v3478_v19 = vadd.f32 %v3474_v51, %v6832_v61  ;;  %v4837_v51 = vld [vmem:[#allocation38] sm:$0xff]  ;;  %3864 = vmatpush.bf16.msrb.mxu2 %v4833_v15 }
0x29a8   :  { %v3615_v60 = vpop.f32.mrf.mxu1  ;;  %3925 = vmatpush.bf16.msrb.mxu3 %v4837_v51 }
0x29a9   :  { %v3616_v58 = vadd.f32 %v4944_v41, %v3615_v60 }
0x29ab   :  { %v3625_v22 = vmax.f32 %v3616_v58, 0.0 }
0x29b0   :  { %v3617_v20 = vpop.f32.mrf.mxu1 }
0x29b1   :  { %v3618_v40 = vadd.f32 %v4944_v41, %v3617_v20  ;;  %v4946_v20 = vld [vmem:[#allocation32] ss:$0 sm:$0xff] }
0x29b3   :  { %v3626_v29 = vmax.f32 %v3618_v40, 0.0 }
0x29b5   :  { %v3633_v26 = vpack.c.bf16 %v3626_v29, %v3625_v22 }
0x29b7   :  { %4652 = vmatmul.msk.bf16.vlgmr.msra.gmra.mxu2 %vm635_vm1, %v3633_v26  ;;  %4662 = vmatmul.msk.bf16.vlgmr.msra.gmra.mxu3 %vm635_vm1, %v3633_v26 }
0x2a15   :  { %v3620_v4 = vpop.f32.mrf.mxu1 }
0x2a16   :  { %v3621_v31 = vadd.f32 %v4944_v41, %v3620_v4 }
0x2a18   :  { %v3627_v46 = vmax.f32 %v3621_v31, 0.0 }
0x2a1d   :  { %v3622_v14 = vpop.f32.mrf.mxu1 }
0x2a1e   :  { %v3623_v61 = vadd.f32 %v4944_v41, %v3622_v14  ;;  %v4842_v14 = vld [vmem:[%s7248_s11 + $0x18] sm:$0xff] }
0x2a1f   :  { %4018 = vmatpush.bf16.msrb.mxu1 %v4842_v14 }
0x2a20   :  { %v3628_v39 = vmax.f32 %v3623_v61, 0.0 }
0x2a22   :  { %v3634_v33 = vpack.c.bf16 %v3628_v39, %v3627_v46  ;;  %v4841_v39 = vld [vmem:[%s7248_s11 + $0x10] sm:$0xff] }
0x2a23   :  { %4019 = vmatpush.bf16.msrb.mxu1 %v4841_v39  ;;  %v6905_v39 = vld [vmem:[#allocation19] ss:$0 sm:$0xff] }
0x2a24   :  { %4653 = vmatmul.msk.bf16.gmra.mxu2 %vm635_vm1, %v3634_v33  ;;  %4663 = vmatmul.msk.bf16.gmra.mxu3 %vm635_vm1, %v3634_v33 }
0x2a3a   :  { %v3723_v49 = vpop.f32.mrf.mxu3  ;;  %v6869_v1 = vpop.f32.mrf.mxu2 }
0x2a3b   :  { %v3755_v34 = vadd.f32 %v3754_v3, %v3723_v49  ;;  %v4840_v3 = vld [vmem:[%s7248_s11 + $0x8] sm:$0xff]  ;;  %v4839_v49 = vld [vmem:[%s7248_s11] sm:$0xff] }
0x2a3c   :  { %4020 = vmatpush.bf16.msrb.mxu1 %v4840_v3 }
0x2a3d   :  { %v3767_v54 = vadd.f32 %v4945_v50, %v3755_v34  ;;  %v3958_v34 = vpop.f32.mrf.mxu0 }
0x2a3f   :  { %v3771_v17 = vmax.f32 %v3767_v54, 0.0 }
0x2a40   :  { %4021 = vmatpush.bf16.msrb.mxu1 %v4839_v49 }
0x2a42   :  { %v3725_v45 = vpop.f32.mrf.mxu3  ;;  %v6871_v0 = vpop.f32.mrf.mxu2 }
0x2a43   :  { %v3757_v55 = vadd.f32 %v3756_v52, %v3725_v45  ;;  %v4948_v45 = vld [vmem:[#allocation40] ss:$0 sm:$0xff] }
0x2a45   :  { %v3768_v42 = vadd.f32 %v4945_v50, %v3757_v55  ;;  %v3960_v54 = vpop.f32.mrf.mxu0 }
0x2a47   :  { %v3772_v36 = vmax.f32 %v3768_v42, 0.0 }
0x2a49   :  { %v3775_v47 = vpack.c.bf16 %v3772_v36, %v3771_v17 }
0x2a4b   :  { %4690 = vmatmul.msk.bf16.vlgmr.msra.gmra.mxu1 %vm2156_vm7, %v3775_v47 }
0x2a4d   :  { %v3963_v57 = vpop.f32.mrf.mxu0 }
0x2a55   :  { %v3965_v51 = vpop.f32.mrf.mxu0 }
0x2aa7   :  { %v3667_v2 = vpop.f32.mrf.mxu2  ;;  %v3728_v8 = vpop.f32.mrf.mxu3 }
0x2aa8   :  { %v6873_v5 = vadd.f32 %v3667_v2, %v3478_v19  ;;  %v3760_v10 = vadd.f32 %v3759_v63, %v3728_v8 }
0x2aaa   :  { %v3769_v13 = vadd.f32 %v4945_v50, %v3760_v10 }
0x2aac   :  { %v3773_v60 = vmax.f32 %v3769_v13, 0.0 }
0x2aaf   :  { %v3730_v21 = vpop.f32.mrf.mxu3  ;;  %v6885_v8 = vpop.f32.mrf.mxu2 }
0x2ab0   :  { %v3762_v62 = vadd.f32 %v3761_v53, %v3730_v21  ;;  %v6891_v21 = vld [vmem:[#allocation26] ss:$0 sm:$0xff] }
0x2ab1   :  { %v3682_v12 = vadd.f32 %v6891_v21, %v6873_v5 }
0x2ab2   :  { %v3770_v30 = vadd.f32 %v4945_v50, %v3762_v62 }
0x2ab4   :  { %v3774_v41 = vmax.f32 %v3770_v30, 0.0 }
0x2ab6   :  { %v3776_v58 = vpack.c.bf16 %v3774_v41, %v3773_v60  ;;  %v4844_v41 = vld [vmem:[%s6112_s29 + $0x8] sm:$0xff] }
0x2ab7   :  { %4067 = vmatpush.bf16.msra.mxu2 %v4844_v41 }
0x2ab8   :  { %4691 = vmatmul.msk.bf16.gmra.mxu1 %vm2156_vm7, %v3776_v58 }
0x2ac8   :  { %v3819_v19 = vpop.f32.mrf.mxu1 }
0x2ac9   :  { %v3820_v40 = vadd.f32 %v4946_v20, %v3819_v19 }
0x2acb   :  { %v3829_v26 = vmax.f32 %v3820_v40, 0.0  ;;  %v4843_v40 = vld [vmem:[%s6112_s29] sm:$0xff] }
0x2acc   :  { %4068 = vmatpush.bf16.msra.mxu2 %v4843_v40 }
0x2ad0   :  { %v3821_v22 = vpop.f32.mrf.mxu1 }
0x2ad1   :  { %v3822_v29 = vadd.f32 %v4946_v20, %v3821_v22 }
0x2ad3   :  { %v3830_v4 = vmax.f32 %v3822_v29, 0.0 }
0x2ad5   :  { %v3837_v11 = vpack.c.bf16 %v3830_v4, %v3829_v26  ;;  %v6900_v4 = vld [vmem:[#allocation41] ss:$0 sm:$0xff] }
0x2ad7   :  { %4700 = vmatmul.msk.bf16.vlgmr.msrb.gmra.mxu2 %vm635_vm1, %v3837_v11  ;;  %4710 = vmatmul.msk.bf16.vlgmr.msrb.gmra.mxu3 %vm635_vm1, %v3837_v11 }
0x2b35   :  { %v3824_v31 = vpop.f32.mrf.mxu1 }
0x2b36   :  { %v3825_v61 = vadd.f32 %v4946_v20, %v3824_v31 }
0x2b38   :  { %v3831_v33 = vmax.f32 %v3825_v61, 0.0 }
0x2b3d   :  { %v3826_v27 = vpop.f32.mrf.mxu1 }
0x2b3e   :  { %v3827_v46 = vadd.f32 %v4946_v20, %v3826_v27 }
0x2b40   :  { %v3832_v44 = vmax.f32 %v3827_v46, 0.0 }
0x2b42   :  { %v3838_v28 = vpack.c.bf16 %v3832_v44, %v3831_v33  ;;  %v2226_v33 = vadd.f32 %v6905_v39, %v6721_v25  ;;  %v3384_v44 = vadd.f32 %v6850_v35, %v6846_v43  ;;  %v3386_v25 = vadd.f32 %v6850_v35, %v6848_v18 }
0x2b44   :  { %4701 = vmatmul.msk.bf16.gmra.mxu2 %vm635_vm1, %v3838_v28  ;;  %4711 = vmatmul.msk.bf16.gmra.mxu3 %vm635_vm1, %v3838_v28  ;;  %v6911_v28 = vld [vmem:[#allocation19 + $0x1] ss:$0 sm:$0xff]  ;;  %v4315_v49 = vmul.f32 -1.442695, %v2226_v33 }
0x2b45   :  { %v2516_v3 = vadd.f32 %v6911_v28, %v6754_v16 }
0x2b46   :  { %5116 = vpow2.f32 %v4315_v49 }
0x2b4c   :  { %v5117_v16 = vpop.eup %5116 }
0x2b5a   :  { %v3927_v50 = vpop.f32.mrf.mxu3  ;;  %v6887_v10 = vpop.f32.mrf.mxu2 }
0x2b5b   :  { %v3959_v52 = vadd.f32 %v3958_v34, %v3927_v50  ;;  %v2806_v34 = vadd.f32 %v6780_v37, %v6790_v56  ;;  %v4602_v50 = vmul.f32 -1.442695, %v3384_v44  ;;  %v2247_v37 = vadd.f32 1.0, %v5117_v16 }
0x2b5d   :  { %v3971_v42 = vadd.f32 %v4948_v45, %v3959_v52  ;;  %v4387_v52 = vmul.f32 -1.442695, %v2516_v3  ;;  %5118 = vpow2.f32 %v4602_v50  ;;  %v2274_v49 = vand.u32 2147483647, %v2247_v37 }
0x2b5f   :  { %v3975_v47 = vmax.f32 %v3971_v42, 0.0  ;;  %5120 = vpow2.f32 %v4387_v52  ;;  %vm6982_vm13 = vcmp.eq.f32.partialorder %v2274_v49, 8.507059e+37 }
0x2b62   :  { %v3929_v55 = vpop.f32.mrf.mxu3  ;;  %v6889_v53 = vpop.f32.mrf.mxu2 }
0x2b63   :  { %v3961_v17 = vadd.f32 %v3960_v54, %v3929_v55  ;;  %v4459_v54 = vmul.f32 -1.442695, %v2806_v34  ;;  %v4603_v55 = vmul.f32 -1.442695, %v3386_v25  ;;  %v5119_v42 = vpop.eup %5118 }
0x2b65   :  { %v3972_v36 = vadd.f32 %v4948_v45, %v3961_v17  ;;  %5122 = vpow2.f32 %v4459_v54  ;;  %v5121_v17 = vpop.eup %5120 }
0x2b67   :  { %v3976_v63 = vmax.f32 %v3972_v36, 0.0  ;;  %v6921_v36 = vadd.f32 1.0, %v5119_v42 }
0x2b69   :  { %v3979_v2 = vpack.c.bf16 %v3976_v63, %v3975_v47  ;;  %v3421_v16 = vand.u32 2147483648, %v6921_v36  ;;  %vm3415_vm11 = vweird.f32 %v6921_v36 }
0x2b6b   :  { %4738 = vmatmul.msk.bf16.vlgmr.msrb.gmra.mxu1 %vm2156_vm7, %v3979_v2  ;;  %v5123_v56 = vpop.eup %5122 }
0x2b6c   :  { %v6925_v63 = vadd.f32 1.0, %v5123_v56 }
0x2bc7   :  { %v3871_v13 = vpop.f32.mrf.mxu2  ;;  %v3932_v62 = vpop.f32.mrf.mxu3 }
0x2bc8   :  { %v6895_v30 = vadd.f32 %v3871_v13, %v3682_v12  ;;  %v3964_v15 = vadd.f32 %v3963_v57, %v3932_v62 }
0x2bca   :  { %v3973_v58 = vadd.f32 %v4948_v45, %v3964_v15 }
0x2bcc   :  { %v3977_v22 = vmax.f32 %v3973_v58, 0.0 }
0x2bcf   :  { %v3934_v60 = vpop.f32.mrf.mxu3 }
0x2bd0   :  { %v3966_v19 = vadd.f32 %v3965_v51, %v3934_v60 }
0x2bd2   :  { %v3974_v20 = vadd.f32 %v4948_v45, %v3966_v19  ;;  %v3096_v45 = vadd.f32 %v6813_v6, %v6823_v24  ;;  %v6923_v24 = vadd.f32 1.0, %v5121_v17 }
0x2bd4   :  { %v3978_v29 = vmax.f32 %v3974_v20, 0.0  ;;  %v4531_v43 = vmul.f32 -1.442695, %v3096_v45  ;;  %v2564_v52 = vand.u32 2147483647, %v6923_v24  ;;  %vm2560_vm15 = vweird.f32 %v6923_v24 }
0x2bd6   :  { %v3980_v26 = vpack.c.bf16 %v3978_v29, %v3977_v22  ;;  %5124 = vpow2.f32 %v4531_v43 }
0x2bd7   :  { %5126 = vpow2.f32 %v4603_v55 }
0x2bd8   :  { %4739 = vmatmul.msk.bf16.gmra.mxu1 %vm2156_vm7, %v3980_v26  ;;  %5128 = vrcp.f32 %v2247_v37  ;;  %vm2270_vm7 = vweird.f32 %v2247_v37 }
0x2bd9   :  { %5130 = vrcp.f32 %v6921_v36 }
0x2bda   :  { %5132 = vrcp.f32 %v6923_v24 }
0x2bdb   :  { %5134 = vrcp.f32 %v6925_v63 }
0x2bdc   :  { %v5125_v47 = vpop.eup %5124 }
0x2bdd   :  { %v5127_v18 = vpop.eup %5126  ;;  %v6929_v2 = vadd.f32 1.0, %v5125_v47 }
0x2bde   :  { %v6932_v57 = vadd.f32 1.0, %v5127_v18  ;;  %v6934_v12 = vpop.eup %5128 }
0x2bdf   :  { %v6936_v13 = vpop.eup %5130  ;;  %5136 = vrcp.f32 %v6929_v2  ;;  %v2266_v15 = vmul.f32 %v6934_v12, %v2247_v37  ;;  %vm2271_vm3 = vweird.f32 %v6934_v12 }
0x2be0   :  { %v6939_v62 = vpop.eup %5132  ;;  %5138 = vrcp.f32 %v6932_v57  ;;  %v3411_v60 = vmul.f32 %v6936_v13, %v6921_v36  ;;  %vm3416_vm9 = vweird.f32 %v6936_v13  ;;  %vm6978_vm12 = vmor %vm2270_vm7, %vm2271_vm3  ;;  %vm7003_vm7 = vcmp.eq.f32.partialorder %v2564_v52, 8.507059e+37 }
0x2be1   :  { %v6943_v51 = vpop.eup %5134  ;;  %v2556_v41 = vmul.f32 %v6939_v62, %v6923_v24  ;;  %v2267_v20 = vsub.f32 1.0, %v2266_v15  ;;  %vm2561_vm10 = vweird.f32 %v6939_v62  ;;  %vm6989_vm8 = vmor %vm3415_vm11, %vm3416_vm9  ;;  %vm2850_vm9 = vweird.f32 %v6925_v63 }
0x2be2   :  { %v2846_v40 = vmul.f32 %v6943_v51, %v6925_v63  ;;  %v3412_v22 = vsub.f32 1.0, %v3411_v60  ;;  %vm2851_vm14 = vweird.f32 %v6943_v51  ;;  %vm7011_vm3 = vmor %vm2560_vm15, %vm2561_vm10  ;;  %vm3140_vm10 = vweird.f32 %v6929_v2 }
0x2be3   :  { %v2557_v26 = vsub.f32 1.0, %v2556_v41 }
0x2be5   :  { %v6949_v19 = vpop.eup %5136  ;;  %v2558_v33 = vmul.f32 %v6939_v62, %v2557_v26 }
0x2be6   :  { %v6953_v29 = vpop.eup %5138 }
0x2be7   :  { %v2559_v17 = vadd.f32 %v6939_v62, %v2558_v33 }
0x2be8   :  { %v4023_v5 = vpop.f32.mrf.mxu1 }
0x2be9   :  { %v4024_v11 = vadd.f32 %v6900_v4, %v4023_v5  ;;  %v3136_v5 = vmul.f32 %v6949_v19, %v6929_v2  ;;  %v2563_v26 = vsel %vm7011_vm3, %v6939_v62, %v2559_v17  ;;  %v3144_v62 = vand.u32 2147483647, %v6929_v2 }
0x2bea   :  { %vm3430_vm3 = vweird.f32 %v6932_v57 }
0x2beb   :  { %v4033_v61 = vmax.f32 %v4024_v11, 0.0  ;;  %v2847_v11 = vsub.f32 1.0, %v2846_v40  ;;  %v3137_v3 = vsub.f32 1.0, %v3136_v5  ;;  %v5162_v5 = vld [vmem:[#allocation19 + $0x2] ss:$0 sm:$0xff] }
0x2bed   :  { %v2848_v45 = vmul.f32 %v6943_v51, %v2847_v11  ;;  %v3138_v18 = vmul.f32 %v6949_v19, %v3137_v3 }
0x2bef   :  { %v2849_v41 = vadd.f32 %v6943_v51, %v2848_v45  ;;  %v3139_v11 = vadd.f32 %v6949_v19, %v3138_v18 }
0x2bf0   :  { %v4025_v31 = vpop.f32.mrf.mxu1 }
0x2bf1   :  { %v4026_v14 = vadd.f32 %v6900_v4, %v4025_v31  ;;  %v2268_v31 = vmul.f32 %v6934_v12, %v2267_v20 }
0x2bf3   :  { %v4034_v27 = vmax.f32 %v4026_v14, 0.0  ;;  %v3413_v14 = vmul.f32 %v6936_v13, %v3412_v22  ;;  %v2269_v50 = vadd.f32 %v6934_v12, %v2268_v31 }
0x2bf5   :  { %v4041_v46 = vpack.c.bf16 %v4034_v27, %v4033_v61  ;;  %v3426_v61 = vmul.f32 %v6953_v29, %v6932_v57  ;;  %v3414_v54 = vadd.f32 %v6936_v13, %v3413_v14 }
0x2bf7   :  { %4748 = vmatmul.msk.bf16.vlgmr.msra.gmra.mxu2 %vm635_vm1, %v4041_v46  ;;  %v2276_v46 = vand.u32 2147483648, %v2247_v37  ;;  %v3427_v25 = vsub.f32 1.0, %v3426_v61  ;;  %v2273_v37 = vsel %vm6978_vm12, %v6934_v12, %v2269_v50  ;;  %v3422_v12 = vor.u32 1.1754944e-38, %v3421_v16  ;;  %vm7021_vm12 = vmor %vm2850_vm9, %vm2851_vm14 }
0x2bf8   :  { %v2853_v61 = vsel %vm7021_vm12, %v6943_v51, %v2849_v41  ;;  %vm3145_vm9 = vcmp.eq.f32.partialorder %v3144_v62, 8.507059e+37 }
0x2bf9   :  { %v2277_v42 = vor.u32 1.1754944e-38, %v2276_v46  ;;  %v3428_v40 = vmul.f32 %v6953_v29, %v3427_v25 }
0x2bfb   :  { %v2278_v49 = vsel %vm6982_vm13, %v2277_v42, %v2273_v37 }
0x2c55   :  { %v4028_v58 = vpop.f32.mrf.mxu1 }
0x2c56   :  { %v4029_v27 = vadd.f32 %v6900_v4, %v4028_v58  ;;  %v3418_v58 = vsel %vm6989_vm8, %v6936_v13, %v3414_v54  ;;  %v2854_v13 = vand.u32 2147483647, %v6925_v63  ;;  %vm3431_vm8 = vweird.f32 %v6953_v29 }
0x2c58   :  { %v4035_v43 = vmax.f32 %v4029_v27, 0.0  ;;  %v3429_v27 = vadd.f32 %v6953_v29, %v3428_v40  ;;  %vm2855_vm14 = vcmp.eq.f32.partialorder %v2854_v13, 8.507059e+37 }
0x2c5d   :  { %v4030_v44 = vpop.f32.mrf.mxu1 }
0x2c5e   :  { %v4031_v34 = vadd.f32 %v6900_v4, %v4030_v44  ;;  %v3419_v4 = vand.u32 2147483647, %v6921_v36  ;;  %v2566_v36 = vand.u32 2147483648, %v6923_v24  ;;  %v2856_v24 = vand.u32 2147483648, %v6925_v63 }
0x2c5f   :  { %v3146_v63 = vand.u32 2147483648, %v6929_v2  ;;  %v3436_v44 = vand.u32 2147483648, %v6932_v57  ;;  %v3434_v2 = vand.u32 2147483647, %v6932_v57 }
0x2c60   :  { %v4036_v55 = vmax.f32 %v4031_v34, 0.0  ;;  %vm3420_vm11 = vcmp.eq.f32.partialorder %v3419_v4, 8.507059e+37  ;;  %v2567_v14 = vor.u32 1.1754944e-38, %v2566_v36  ;;  %v2857_v33 = vor.u32 1.1754944e-38, %v2856_v24  ;;  %v7066_v36 = vld [vmem:[#allocation43] ss:$0 sm:$0xff] }
0x2c61   :  { %v3423_v31 = vsel %vm3420_vm11, %v3422_v12, %v3418_v58  ;;  %v3147_v50 = vor.u32 1.1754944e-38, %v3146_v63  ;;  %vm3435_vm13 = vcmp.eq.f32.partialorder %v3434_v2, 8.507059e+37  ;;  %v3391_v63 = vadd.f32 %v6850_v35, %v6867_v59 }
0x2c62   :  { %v4042_v15 = vpack.c.bf16 %v4036_v55, %v4035_v43  ;;  %v2568_v46 = vsel %vm7003_vm7, %v2567_v14, %v2563_v26  ;;  %v3472_v51 = vsel %vm3393_vm2, %v3423_v31, 0.0  ;;  %v2858_v34 = vsel %vm2855_vm14, %v2857_v33, %v2853_v61  ;;  %vm3432_vm7 = vmor %vm3430_vm3, %vm3431_vm8 }
0x2c63   :  { %v2603_v52 = vsel %vm2523_vm5, %v2568_v46, 0.0  ;;  %v3433_v45 = vsel %vm3432_vm7, %v6953_v29, %v3429_v27  ;;  %v3476_v54 = vadd.f32 %v3472_v51, %v6821_v23  ;;  %v2313_v43 = vsel %vm2233_vm4, %v2278_v49, 0.0  ;;  %v7058_v29 = vpop.f32.mrf.mxu2 }
0x2c64   :  { %4749 = vmatmul.msk.bf16.gmra.mxu2 %vm635_vm1, %v4042_v15  ;;  %vm3141_vm1 = vweird.f32 %v6949_v19  ;;  %v2893_v57 = vsel %vm2813_vm6, %v2858_v34, 0.0  ;;  %v2607_v16 = vadd.f32 %v2603_v52, %v2313_v43  ;;  %v2521_v26 = vadd.f32 %v6911_v28, %v6778_v9 }
0x2c65   :  { %vm3142_vm15 = vmor %vm3140_vm10, %vm3141_vm1  ;;  %v3672_v55 = vadd.f32 %v6869_v1, %v3476_v54  ;;  %v7062_v1 = vld [vmem:[#allocation35] ss:$0 sm:$0xff]  ;;  %v3101_v14 = vadd.f32 %v6813_v6, %v6844_v38 }
0x2c66   :  { %v3143_v3 = vsel %vm3142_vm15, %v6949_v19, %v3139_v11  ;;  %v3437_v19 = vor.u32 1.1754944e-38, %v3436_v44  ;;  %v2897_v4 = vadd.f32 %v2893_v57, %v2607_v16  ;;  %v2811_v11 = vadd.f32 %v5162_v5, %v6811_v48 }
0x2c67   :  { %v3148_v25 = vsel %vm3145_vm9, %v3147_v50, %v3143_v3  ;;  %v3680_v47 = vadd.f32 %v6891_v21, %v3672_v55  ;;  %v4389_v31 = vmul.f32 -1.442695, %v2521_v26  ;;  %v4533_v62 = vmul.f32 -1.442695, %v3101_v14 }
0x2c68   :  { %v3438_v42 = vsel %vm3435_vm13, %v3437_v19, %v3433_v45  ;;  %v3183_v17 = vsel %vm3103_vm0, %v3148_v25, 0.0  ;;  %v4461_v61 = vmul.f32 -1.442695, %v2811_v11 }
0x2c69   :  { %v3473_v23 = vsel %vm3393_vm2, %v3438_v42, 0.0  ;;  %v3187_v56 = vadd.f32 %v3183_v17, %v2897_v4  ;;  %v3876_v15 = vadd.f32 %v6887_v10, %v3680_v47 }
0x2c6b   :  { %v3477_v18 = vadd.f32 %v3473_v23, %v3187_v56  ;;  %v3884_v37 = vadd.f32 %v7062_v1, %v3876_v15 }
0x2c6d   :  { %v3673_v60 = vadd.f32 %v6871_v0, %v3477_v18  ;;  %v2231_v0 = vadd.f32 %v6905_v39, %v6732_v32  ;;  %v4605_v32 = vmul.f32 -1.442695, %v3391_v63 }
0x2c6f   :  { %v3681_v58 = vadd.f32 %v6891_v21, %v3673_v60 }
0x2c71   :  { %v3877_v40 = vadd.f32 %v6889_v53, %v3681_v58  ;;  %v4317_v53 = vmul.f32 -1.442695, %v2231_v0 }
0x2c73   :  { %v3885_v22 = vadd.f32 %v7062_v1, %v3877_v40  ;;  %5140 = vpow2.f32 %v4317_v53 }
0x2c74   :  { %5142 = vpow2.f32 %v4389_v31 }
0x2c75   :  { %5144 = vpow2.f32 %v4461_v61 }
0x2c76   :  { %5146 = vpow2.f32 %v4533_v62 }
0x2c77   :  { %5148 = vpow2.f32 %v4605_v32 }
0x2c79   :  { %v5141_v39 = vpop.eup %5140 }
0x2c7a   :  { %v4070_v41 = vpop.f32.mrf.mxu2  ;;  %v5143_v9 = vpop.eup %5142  ;;  %v7084_v48 = vadd.f32 1.0, %v5141_v39 }
0x2c7b   :  { %v4080_v20 = vadd.f32 %v4070_v41, %v3884_v37  ;;  %v5145_v28 = vpop.eup %5144  ;;  %v2539_v27 = vadd.f32 1.0, %v5143_v9 }
0x2c7c   :  { %v5147_v46 = vpop.eup %5146  ;;  %v7086_v33 = vadd.f32 1.0, %v5145_v28  ;;  %5150 = vrcp.f32 %v7084_v48  ;;  %v2304_v4 = vand.u32 2147483647, %v7084_v48  ;;  %vm2300_vm12 = vweird.f32 %v7084_v48 }
0x2c7d   :  { %v4088_v12 = vadd.f32 %v7066_v36, %v4080_v20  ;;  %v5149_v6 = vpop.eup %5148  ;;  %5152 = vrcp.f32 %v2539_v27  ;;  %v7089_v38 = vadd.f32 1.0, %v5147_v46  ;;  %v2594_v47 = vand.u32 2147483647, %v2539_v27 }
0x2c7e   :  { %5154 = vrcp.f32 %v7086_v33  ;;  %v7092_v35 = vadd.f32 1.0, %v5149_v6  ;;  %v2596_v18 = vand.u32 2147483648, %v2539_v27  ;;  %v2306_v37 = vand.u32 2147483648, %v7084_v48 }
0x2c7f   :  { %4092 = vst [vmem:[%s6122_s8] sm:$0xff] %v4088_v12  ;;  %5156 = vrcp.f32 %v7089_v38  ;;  %vm2590_vm14 = vweird.f32 %v2539_v27  ;;  %vm7124_vm15 = vcmp.eq.f32.partialorder %v2304_v4, 8.507059e+37  ;;  %vm2880_vm7 = vweird.f32 %v7086_v33 }
0x2c80   :  { %5158 = vrcp.f32 %v7092_v35  ;;  %v2886_v12 = vand.u32 2147483648, %v7086_v33  ;;  %v2597_v0 = vor.u32 1.1754944e-38, %v2596_v18  ;;  %v3176_v5 = vand.u32 2147483648, %v7089_v38 }
0x2c81   :  { %v3174_v11 = vand.u32 2147483647, %v7089_v38  ;;  %v2307_v31 = vor.u32 1.1754944e-38, %v2306_v37  ;;  %v3466_v63 = vand.u32 2147483648, %v7092_v35  ;;  %v3464_v32 = vand.u32 2147483647, %v7092_v35 }
0x2c82   :  { %v4072_v10 = vpop.f32.mrf.mxu2  ;;  %v7095_v59 = vpop.eup %5150  ;;  %v2887_v61 = vor.u32 1.1754944e-38, %v2886_v12  ;;  %v3177_v28 = vor.u32 1.1754944e-38, %v3176_v5 }
0x2c83   :  { %v4081_v13 = vadd.f32 %v4072_v10, %v3885_v22  ;;  %v5153_v44 = vpop.eup %5152  ;;  %v2296_v3 = vmul.f32 %v7095_v59, %v7084_v48  ;;  %vm2301_vm11 = vweird.f32 %v7095_v59 }
0x2c84   :  { %v5155_v51 = vpop.eup %5154  ;;  %v2586_v2 = vmul.f32 %v5153_v44, %v2539_v27  ;;  %vm2591_vm1 = vweird.f32 %v5153_v44  ;;  %vm7115_vm8 = vmor %vm2300_vm12, %vm2301_vm11  ;;  %vm2595_vm11 = vcmp.eq.f32.partialorder %v2594_v47, 8.507059e+37  ;;  %vm3170_vm12 = vweird.f32 %v7089_v38 }
0x2c85   :  { %v4089_v24 = vadd.f32 %v7066_v36, %v4081_v13  ;;  %v7100_v49 = vpop.eup %5156  ;;  %v2876_v34 = vmul.f32 %v5155_v51, %v7086_v33  ;;  %v2297_v52 = vsub.f32 1.0, %v2296_v3  ;;  %vm2881_vm10 = vweird.f32 %v5155_v51  ;;  %vm7128_vm3 = vmor %vm2590_vm14, %vm2591_vm1 }
0x2c86   :  { %v7103_v50 = vpop.eup %5158  ;;  %v2587_v45 = vsub.f32 1.0, %v2586_v2  ;;  %v3166_v54 = vmul.f32 %v7100_v49, %v7089_v38  ;;  %vm7136_vm9 = vmor %vm2880_vm7, %vm2881_vm10  ;;  %v2884_v13 = vand.u32 2147483647, %v7086_v33  ;;  %vm3171_vm13 = vweird.f32 %v7100_v49 }
0x2c87   :  { %4093 = vst [vmem:[%s6122_s8 + $0x8] sm:$0xff] %v4089_v24  ;;  %v2877_v25 = vsub.f32 1.0, %v2876_v34  ;;  %v3456_v19 = vmul.f32 %v7103_v50, %v7092_v35  ;;  %v2298_v43 = vmul.f32 %v7095_v59, %v2297_v52  ;;  %vm3461_vm1 = vweird.f32 %v7103_v50  ;;  %vm3172_vm10 = vmor %vm3170_vm12, %vm3171_vm13 }
0x2c88   :  { %v3167_v57 = vsub.f32 1.0, %v3166_v54  ;;  %v2588_v55 = vmul.f32 %v5153_v44, %v2587_v45  ;;  %vm3460_vm14 = vweird.f32 %v7092_v35  ;;  %vm3175_vm7 = vcmp.eq.f32.partialorder %v3174_v11, 8.507059e+37 }
0x2c89   :  { %v2878_v16 = vmul.f32 %v5155_v51, %v2877_v25  ;;  %v3457_v42 = vsub.f32 1.0, %v3456_v19  ;;  %v2299_v17 = vadd.f32 %v7095_v59, %v2298_v43  ;;  %v3467_v33 = vor.u32 1.1754944e-38, %v3466_v63 }
0x2c8a   :  { %v2589_v23 = vadd.f32 %v5153_v44, %v2588_v55  ;;  %v3168_v56 = vmul.f32 %v7100_v49, %v3167_v57 }
0x2c8b   :  { %v2879_v15 = vadd.f32 %v5155_v51, %v2878_v16  ;;  %v3458_v41 = vmul.f32 %v7103_v50, %v3457_v42  ;;  %v2303_v58 = vsel %vm7115_vm8, %v7095_v59, %v2299_v17  ;;  %vm2885_vm8 = vcmp.eq.f32.partialorder %v2884_v13, 8.507059e+37 }
0x2c8c   :  { %v2593_v22 = vsel %vm7128_vm3, %v5153_v44, %v2589_v23  ;;  %v3169_v24 = vadd.f32 %v7100_v49, %v3168_v56  ;;  %v2308_v39 = vsel %vm7124_vm15, %v2307_v31, %v2303_v58  ;;  %vm3462_vm3 = vmor %vm3460_vm14, %vm3461_vm1 }
0x2c8d   :  { %v2883_v26 = vsel %vm7136_vm9, %v5155_v51, %v2879_v15  ;;  %v3459_v53 = vadd.f32 %v7103_v50, %v3458_v41  ;;  %v2598_v14 = vsel %vm2595_vm11, %v2597_v0, %v2593_v22  ;;  %v2315_v6 = vsel %vm2233_vm4, %v2308_v39, 0.0 }
0x2c8e   :  { %v3173_v62 = vsel %vm3172_vm10, %v7100_v49, %v3169_v24  ;;  %v2888_v9 = vsel %vm2885_vm8, %v2887_v61, %v2883_v26  ;;  %v2605_v48 = vsel %vm2523_vm5, %v2598_v14, 0.0  ;;  %vm3465_vm9 = vcmp.eq.f32.partialorder %v3464_v32, 8.507059e+37 }
0x2c8f   :  { %v3463_v27 = vsel %vm3462_vm3, %v7103_v50, %v3459_v53  ;;  %v3178_v46 = vsel %vm3175_vm7, %v3177_v28, %v3173_v62  ;;  %v2895_v38 = vsel %vm2813_vm6, %v2888_v9, 0.0  ;;  %v2609_v35 = vadd.f32 %v2605_v48, %v2315_v6 }
0x2c90   :  { %v3468_v59 = vsel %vm3465_vm9, %v3467_v33, %v3463_v27  ;;  %v3185_v44 = vsel %vm3103_vm0, %v3178_v46, 0.0  ;;  %v3886_v50 = vadd.f32 %v7062_v1, %v6895_v30 }
0x2c91   :  { %v2899_v51 = vadd.f32 %v2895_v38, %v2609_v35  ;;  %v3475_v3 = vsel %vm3393_vm2, %v3468_v59, 0.0 }
0x2c93   :  { %v3189_v2 = vadd.f32 %v3185_v44, %v2899_v51 }
0x2c95   :  { %v3479_v49 = vadd.f32 %v3475_v3, %v3189_v2 }
0x2c97   :  { %v3675_v34 = vadd.f32 %v6885_v8, %v3479_v49 }
0x2c99   :  { %v3683_v45 = vadd.f32 %v6891_v21, %v3675_v34 }
0x2c9b   :  { %v3879_v25 = vadd.f32 %v7058_v29, %v3683_v45 }
0x2c9d   :  { %v3887_v7 = vadd.f32 %v7062_v1, %v3879_v25 }
0x2ce7   :  { %v4075_v52 = vpop.f32.mrf.mxu2 }
0x2ce8   :  { %v4082_v54 = vadd.f32 %v4075_v52, %v3886_v50 }
0x2cea   :  { %v4090_v19 = vadd.f32 %v7066_v36, %v4082_v54 }
0x2cec   :  { %4094 = vst [vmem:[%s6122_s8 + $0x10] sm:$0xff] %v4090_v19 }
0x2cef   :  { %v4077_v43 = vpop.f32.mrf.mxu2 }
0x2cf0   :  { %v4083_v57 = vadd.f32 %v4077_v43, %v3887_v7 }
0x2cf2   :  { %v4091_v55 = vadd.f32 %v7066_v36, %v4083_v57 }
0x2cf4   :  { %4095 = vst [vmem:[%s6122_s8 + $0x18] sm:$0xff] %v4091_v55 }
0x2cf5   :  { %4104 = vsyncpa [#allocation4], 1 }
0x2cf6   :  { %4105 = vsyncpa [#allocation6], 1 }
0x2cf7   :  { %4106 = vsyncpa [#allocation9], 1 }
0x2cf8   :  { %4107 = vsyncpa [#allocation12], 1 }
0x2cf9   :  { %4108 = vsyncpa [#allocation15], 1 }
0x2cfa   :  { %4109 = vsyncpa [#allocation18], 1 }
0x2cfb   :  { %4110 = vsyncpa [#allocation21], 1 }
0x2cfc   :  { %4111 = vsyncpa [#allocation24], 1 }
0x2cfd   :  { %4112 = vsyncpa [#allocation27], 1 }
0x2cfe   :  { %4113 = vsyncpa [#allocation30], 1 }
0x2cff   :  { %4114 = vsyncpa [#allocation33], 1 }
0x2d00   :  { %4115 = vsyncpa [#allocation36], 1 }
0x2d01   :  { %4116 = vsyncpa [#allocation39], 1 }
0x2d02   :  { %4117 = vsyncpa [#allocation42], 1 }

</bundles_post_ra>
